<compile_context>
chip_gen: v7x
topology: tpu7x:2x2x1
jax: 0.10.0
libtpu: 0.0.40
codegen_flags: <defaults>
</compile_context>

<pallas_src>
import jax
import jax.numpy as jnp
import numpy as np
from jax.experimental import pallas as pl
from jax.experimental.pallas import tpu as pltpu


INTERM_DIM = 128


def _lossnet_kernel(
    x1_ref, x2_ref, x3_ref, x4_ref,
    w1_ref, b1_ref, w2_ref, b2_ref,
    w3_ref, b3_ref, w4_ref, b4_ref,
    wf_ref, bf_ref,
    o_ref,
):
    """One batch tile of the LossNet forward.

    branch = GAP (spatial sum; 1/(H*W) pre-folded into the FC weight) -> FC -> ReLU.
    Branches 1/2: (tb, C, H*W) -> lane-axis reduce.
    Branches 3/4: (tb, H*W, C) -> sublane-axis reduce (C lane-dense).
    Final Linear(4*D -> 1): elementwise multiply + lane-sum (VPU/XLU), no MXU.
    """

    def branch(x_ref, w_ref, b_ref, reduce_axis):
        # Cast to f32 before the reduction (works for bf16 feature maps too).
        pooled = jnp.sum(x_ref[...].astype(jnp.float32), axis=reduce_axis)
        h = jnp.dot(pooled, w_ref[...], preferred_element_type=jnp.float32)
        return jnp.maximum(h + b_ref[...], 0.0)

    h1 = branch(x1_ref, w1_ref, b1_ref, -1)   # (tb, C1, HW1): lane reduce
    h2 = branch(x2_ref, w2_ref, b2_ref, -1)   # (tb, C2, HW2): lane reduce
    h3 = branch(x3_ref, w3_ref, b3_ref, 1)    # (tb, HW3, C3): sublane reduce
    h4 = branch(x4_ref, w4_ref, b4_ref, 1)    # (tb, HW4, C4): sublane reduce

    # linear(cat([h1..h4], -1)) with out_features == 1:
    #   out = sum_i sum_lane(h_i * wf_row_i) + bf
    wf = wf_ref[...]                           # (4, D), lane-dense
    acc = (h1 * wf[0:1, :] + h2 * wf[1:2, :]
           + h3 * wf[2:3, :] + h4 * wf[3:4, :])
    out = jnp.sum(acc, axis=-1, keepdims=True) + bf_ref[...]
    o_ref[...] = out.astype(o_ref.dtype)


def lossnet_forward(features, params, *, batch_tile=None):
    """features: list of 4 NCHW arrays (f32 or bf16); params: dict of weights/biases."""
    f1, f2, f3, f4 = features
    b = f1.shape[0]
    c = [f.shape[1] for f in features]
    hw = [f.shape[2] * f.shape[3] for f in features]
    d = INTERM_DIM

    if batch_tile is None:
        # Batch tile must be a multiple of 8 (sublane) or equal to the full batch
        # (it is the second-minor dim of the (tb, 1) output block).
        batch_tile = 8 if (b % 8 == 0 and b > 8) else b
    assert b % batch_tile == 0, (b, batch_tile)
    grid = (b // batch_tile,)

    # ---- layout glue (XLA side, cheap) ------------------------------------
    x1 = f1.reshape(b, c[0], hw[0])                            # (B, 64, 1024)
    x2 = f2.reshape(b, c[1], hw[1])                            # (B, 128, 256)
    x3 = jnp.transpose(f3.reshape(b, c[2], hw[2]), (0, 2, 1))  # (B, 64, 256)
    x4 = jnp.transpose(f4.reshape(b, c[3], hw[3]), (0, 2, 1))  # (B, 16, 512)

    # Fold GAP's 1/(H*W) into the tiny static FC weights (kernel sums only).
    w1 = params["w1"] * (1.0 / hw[0])
    w2 = params["w2"] * (1.0 / hw[1])
    w3 = params["w3"] * (1.0 / hw[2])
    w4 = params["w4"] * (1.0 / hw[3])
    # (4*D, 1) final weight repacked lane-dense as (4, D); row i = wf[i*D:(i+1)*D, 0].
    wf_r = params["wf"].reshape(4, d)

    def feat_spec(s1, s2):
        return pl.BlockSpec((batch_tile, s1, s2), lambda i: (i, 0, 0))

    def full2d_spec(r, cc):
        return pl.BlockSpec((r, cc), lambda i: (0, 0))

    in_specs = [
        feat_spec(c[0], hw[0]),
        feat_spec(c[1], hw[1]),
        feat_spec(hw[2], c[2]),
        feat_spec(hw[3], c[3]),
        full2d_spec(c[0], d), full2d_spec(1, d),
        full2d_spec(c[1], d), full2d_spec(1, d),
        full2d_spec(c[2], d), full2d_spec(1, d),
        full2d_spec(c[3], d), full2d_spec(1, d),
        full2d_spec(4, d), full2d_spec(1, 1),
    ]
    out_specs = pl.BlockSpec((batch_tile, 1), lambda i: (i, 0))

    return pl.pallas_call(
        _lossnet_kernel,
        out_shape=jax.ShapeDtypeStruct((b, 1), jnp.float32),
        grid=grid,
        in_specs=in_specs,
        out_specs=out_specs,
        compiler_params=pltpu.CompilerParams(
            dimension_semantics=("parallel",),        # v7x: split batch across TCs
            vmem_limit_bytes=48 * 1024 * 1024,        # headroom below v7x 64 MiB
        ),
    )(x1, x2, x3, x4,
      w1, params["b1"], w2, params["b2"],
      w3, params["b3"], w4, params["b4"],
      wf_r, params["bf"])


def _init_params(key, num_channels, interm_dim):
    """Deterministic synthetic init (shapes match nn.Linear in the module)."""
    keys = jax.random.split(key, 10)
    params = {}
    for i, ch in enumerate(num_channels, start=1):
        bound = 1.0 / np.sqrt(ch)
        params[f"w{i}"] = jax.random.uniform(
            keys[2 * (i - 1)], (ch, interm_dim), jnp.float32, -bound, bound)
        params[f"b{i}"] = jax.random.uniform(
            keys[2 * (i - 1) + 1], (1, interm_dim), jnp.float32, -bound, bound)
    bound = 1.0 / np.sqrt(4 * interm_dim)
    params["wf"] = jax.random.uniform(
        keys[8], (4 * interm_dim, 1), jnp.float32, -bound, bound)
    params["bf"] = jax.random.uniform(
        keys[9], (1, 1), jnp.float32, -bound, bound)
    return params


def _reference_forward(features, params):
    """Pure-JAX reference mirroring the PyTorch module."""
    hs = []
    for i, f in enumerate(features, start=1):
        pooled = jnp.mean(f, axis=(2, 3))                      # GAP -> (B, C)
        h = pooled @ params[f"w{i}"] + params[f"b{i}"]         # FC
        hs.append(jax.nn.relu(h))                              # ReLU
    cat = jnp.concatenate(hs, axis=1)                          # (B, 4*D)
    return cat @ params["wf"] + params["bf"]                   # (B, 1)


if __name__ == "__main__":
    feature_sizes = [32, 16, 8, 4]
    num_channels = [64, 128, 256, 512]
    batch = 16  # batch_tile=8 -> grid of 2, exercises the pipelined batch axis

    key = jax.random.PRNGKey(0)
    k_feat, k_param = jax.random.split(key)
    fkeys = jax.random.split(k_feat, 4)
    features = [
        jax.random.normal(fkeys[i], (batch, num_channels[i],
                                     feature_sizes[i], feature_sizes[i]),
                          dtype=jnp.float32)
        for i in range(4)
    ]
    params = _init_params(k_param, num_channels, INTERM_DIM)

    out = lossnet_forward(features, params)
    out = jax.block_until_ready(out)

    ref = _reference_forward(features, params)
    assert out.shape == (batch, 1), out.shape
    np.testing.assert_allclose(np.asarray(out), np.asarray(ref),
                               rtol=1e-4, atol=1e-4)
    print("KERNEL_OK")
</pallas_src>

<mosaic_0001>
module attributes {stable_mosaic.version = 11 : i64} {
  func.func @_lossnet_kernel(%arg0: i32, %arg1: memref<8x64x1024xf32, #tpu.memory_space<vmem>>, %arg2: memref<8x128x256xf32, #tpu.memory_space<vmem>>, %arg3: memref<8x64x256xf32, #tpu.memory_space<vmem>>, %arg4: memref<8x16x512xf32, #tpu.memory_space<vmem>>, %arg5: memref<64x128xf32, #tpu.memory_space<vmem>>, %arg6: memref<1x128xf32, #tpu.memory_space<vmem>>, %arg7: memref<128x128xf32, #tpu.memory_space<vmem>>, %arg8: memref<1x128xf32, #tpu.memory_space<vmem>>, %arg9: memref<256x128xf32, #tpu.memory_space<vmem>>, %arg10: memref<1x128xf32, #tpu.memory_space<vmem>>, %arg11: memref<512x128xf32, #tpu.memory_space<vmem>>, %arg12: memref<1x128xf32, #tpu.memory_space<vmem>>, %arg13: memref<4x128xf32, #tpu.memory_space<vmem>>, %arg14: memref<1x1xf32, #tpu.memory_space<vmem>>, %arg15: memref<8x1xf32, #tpu.memory_space<vmem>>) attributes {dimension_semantics = [#tpu.dimension_semantics<parallel>], iteration_bounds = array<i64: 2>, scalar_prefetch = 0 : i64, scratch_operands = 0 : i64, tpu.core_type = #tpu.core_type<tc>, window_params = [{transform_indices = @transform_0, window_bounds = array<i64: 8, 64, 1024>}, {transform_indices = @transform_1, window_bounds = array<i64: 8, 128, 256>}, {transform_indices = @transform_2, window_bounds = array<i64: 8, 64, 256>}, {transform_indices = @transform_3, window_bounds = array<i64: 8, 16, 512>}, {pipeline_mode = #tpu.pipeline_mode<synchronous>, transform_indices = @transform_4, window_bounds = array<i64: 64, 128>}, {pipeline_mode = #tpu.pipeline_mode<synchronous>, transform_indices = @transform_5, window_bounds = array<i64: 1, 128>}, {pipeline_mode = #tpu.pipeline_mode<synchronous>, transform_indices = @transform_6, window_bounds = array<i64: 128, 128>}, {pipeline_mode = #tpu.pipeline_mode<synchronous>, transform_indices = @transform_7, window_bounds = array<i64: 1, 128>}, {pipeline_mode = #tpu.pipeline_mode<synchronous>, transform_indices = @transform_8, window_bounds = array<i64: 256, 128>}, {pipeline_mode = #tpu.pipeline_mode<synchronous>, transform_indices = @transform_9, window_bounds = array<i64: 1, 128>}, {pipeline_mode = #tpu.pipeline_mode<synchronous>, transform_indices = @transform_10, window_bounds = array<i64: 512, 128>}, {pipeline_mode = #tpu.pipeline_mode<synchronous>, transform_indices = @transform_11, window_bounds = array<i64: 1, 128>}, {pipeline_mode = #tpu.pipeline_mode<synchronous>, transform_indices = @transform_12, window_bounds = array<i64: 4, 128>}, {pipeline_mode = #tpu.pipeline_mode<synchronous>, transform_indices = @transform_13, window_bounds = array<i64: 1, 1>}, {transform_indices = @transform_14, window_bounds = array<i64: 8, 1>}]} {
    %c0 = arith.constant 0 : index
    %c0_0 = arith.constant 0 : index
    %c0_1 = arith.constant 0 : index
    %0 = vector.load %arg1[%c0, %c0_0, %c0_1] : memref<8x64x1024xf32, #tpu.memory_space<vmem>>, vector<8x64x1024xf32>
    %cst = arith.constant dense<0.000000e+00> : vector<8x64xf32>
    %1 = vector.multi_reduction <add>, %0, %cst [2] : vector<8x64x1024xf32> to vector<8x64xf32>
    %c0_2 = arith.constant 0 : index
    %c0_3 = arith.constant 0 : index
    %2 = vector.load %arg5[%c0_2, %c0_3] : memref<64x128xf32, #tpu.memory_space<vmem>>, vector<64x128xf32>
    %cst_4 = arith.constant dense<0.000000e+00> : vector<8x128xf32>
    %3 = tpu.matmul %1, %2, %cst_4 {dimension_numbers = #tpu.dot_dimension_numbers<[1], [0], [0], [1], [0, 0, 1, 1], [], []>} : vector<8x64xf32>, vector<64x128xf32>, vector<8x128xf32> -> vector<8x128xf32>
    %c0_5 = arith.constant 0 : index
    %c0_6 = arith.constant 0 : index
    %4 = vector.load %arg6[%c0_5, %c0_6] : memref<1x128xf32, #tpu.memory_space<vmem>>, vector<1x128xf32>
    %5 = vector.broadcast %4 : vector<1x128xf32> to vector<8x128xf32>
    %6 = arith.addf %3, %5 : vector<8x128xf32>
    %cst_7 = arith.constant 0.000000e+00 : f32
    %7 = vector.broadcast %cst_7 : f32 to vector<8x128xf32>
    %8 = arith.maximumf %6, %7 : vector<8x128xf32>
    %c0_8 = arith.constant 0 : index
    %c0_9 = arith.constant 0 : index
    %c0_10 = arith.constant 0 : index
    %9 = vector.load %arg2[%c0_8, %c0_9, %c0_10] : memref<8x128x256xf32, #tpu.memory_space<vmem>>, vector<8x128x256xf32>
    %cst_11 = arith.constant dense<0.000000e+00> : vector<8x128xf32>
    %10 = vector.multi_reduction <add>, %9, %cst_11 [2] : vector<8x128x256xf32> to vector<8x128xf32>
    %c0_12 = arith.constant 0 : index
    %c0_13 = arith.constant 0 : index
    %11 = vector.load %arg7[%c0_12, %c0_13] : memref<128x128xf32, #tpu.memory_space<vmem>>, vector<128x128xf32>
    %cst_14 = arith.constant dense<0.000000e+00> : vector<8x128xf32>
    %12 = tpu.matmul %10, %11, %cst_14 {dimension_numbers = #tpu.dot_dimension_numbers<[1], [0], [0], [1], [0, 0, 1, 1], [], []>} : vector<8x128xf32>, vector<128x128xf32>, vector<8x128xf32> -> vector<8x128xf32>
    %c0_15 = arith.constant 0 : index
    %c0_16 = arith.constant 0 : index
    %13 = vector.load %arg8[%c0_15, %c0_16] : memref<1x128xf32, #tpu.memory_space<vmem>>, vector<1x128xf32>
    %14 = vector.broadcast %13 : vector<1x128xf32> to vector<8x128xf32>
    %15 = arith.addf %12, %14 : vector<8x128xf32>
    %cst_17 = arith.constant 0.000000e+00 : f32
    %16 = vector.broadcast %cst_17 : f32 to vector<8x128xf32>
    %17 = arith.maximumf %15, %16 : vector<8x128xf32>
    %c0_18 = arith.constant 0 : index
    %c0_19 = arith.constant 0 : index
    %c0_20 = arith.constant 0 : index
    %18 = vector.load %arg3[%c0_18, %c0_19, %c0_20] : memref<8x64x256xf32, #tpu.memory_space<vmem>>, vector<8x64x256xf32>
    %cst_21 = arith.constant dense<0.000000e+00> : vector<8x256xf32>
    %19 = vector.multi_reduction <add>, %18, %cst_21 [1] : vector<8x64x256xf32> to vector<8x256xf32>
    %c0_22 = arith.constant 0 : index
    %c0_23 = arith.constant 0 : index
    %20 = vector.load %arg9[%c0_22, %c0_23] : memref<256x128xf32, #tpu.memory_space<vmem>>, vector<256x128xf32>
    %cst_24 = arith.constant dense<0.000000e+00> : vector<8x128xf32>
    %21 = tpu.matmul %19, %20, %cst_24 {dimension_numbers = #tpu.dot_dimension_numbers<[1], [0], [0], [1], [0, 0, 1, 1], [], []>} : vector<8x256xf32>, vector<256x128xf32>, vector<8x128xf32> -> vector<8x128xf32>
    %c0_25 = arith.constant 0 : index
    %c0_26 = arith.constant 0 : index
    %22 = vector.load %arg10[%c0_25, %c0_26] : memref<1x128xf32, #tpu.memory_space<vmem>>, vector<1x128xf32>
    %23 = vector.broadcast %22 : vector<1x128xf32> to vector<8x128xf32>
    %24 = arith.addf %21, %23 : vector<8x128xf32>
    %cst_27 = arith.constant 0.000000e+00 : f32
    %25 = vector.broadcast %cst_27 : f32 to vector<8x128xf32>
    %26 = arith.maximumf %24, %25 : vector<8x128xf32>
    %c0_28 = arith.constant 0 : index
    %c0_29 = arith.constant 0 : index
    %c0_30 = arith.constant 0 : index
    %27 = vector.load %arg4[%c0_28, %c0_29, %c0_30] : memref<8x16x512xf32, #tpu.memory_space<vmem>>, vector<8x16x512xf32>
    %cst_31 = arith.constant dense<0.000000e+00> : vector<8x512xf32>
    %28 = vector.multi_reduction <add>, %27, %cst_31 [1] : vector<8x16x512xf32> to vector<8x512xf32>
    %c0_32 = arith.constant 0 : index
    %c0_33 = arith.constant 0 : index
    %29 = vector.load %arg11[%c0_32, %c0_33] : memref<512x128xf32, #tpu.memory_space<vmem>>, vector<512x128xf32>
    %cst_34 = arith.constant dense<0.000000e+00> : vector<8x128xf32>
    %30 = tpu.matmul %28, %29, %cst_34 {dimension_numbers = #tpu.dot_dimension_numbers<[1], [0], [0], [1], [0, 0, 1, 1], [], []>} : vector<8x512xf32>, vector<512x128xf32>, vector<8x128xf32> -> vector<8x128xf32>
    %c0_35 = arith.constant 0 : index
    %c0_36 = arith.constant 0 : index
    %31 = vector.load %arg12[%c0_35, %c0_36] : memref<1x128xf32, #tpu.memory_space<vmem>>, vector<1x128xf32>
    %32 = vector.broadcast %31 : vector<1x128xf32> to vector<8x128xf32>
    %33 = arith.addf %30, %32 : vector<8x128xf32>
    %cst_37 = arith.constant 0.000000e+00 : f32
    %34 = vector.broadcast %cst_37 : f32 to vector<8x128xf32>
    %35 = arith.maximumf %33, %34 : vector<8x128xf32>
    %c0_38 = arith.constant 0 : index
    %c0_39 = arith.constant 0 : index
    %36 = vector.load %arg13[%c0_38, %c0_39] : memref<4x128xf32, #tpu.memory_space<vmem>>, vector<4x128xf32>
    %37 = vector.extract_strided_slice %36 {offsets = [0, 0], sizes = [1, 128], strides = [1, 1]} : vector<4x128xf32> to vector<1x128xf32>
    %38 = vector.broadcast %37 : vector<1x128xf32> to vector<8x128xf32>
    %39 = arith.mulf %8, %38 : vector<8x128xf32>
    %40 = vector.extract_strided_slice %36 {offsets = [1, 0], sizes = [1, 128], strides = [1, 1]} : vector<4x128xf32> to vector<1x128xf32>
    %41 = vector.broadcast %40 : vector<1x128xf32> to vector<8x128xf32>
    %42 = arith.mulf %17, %41 : vector<8x128xf32>
    %43 = arith.addf %39, %42 : vector<8x128xf32>
    %44 = vector.extract_strided_slice %36 {offsets = [2, 0], sizes = [1, 128], strides = [1, 1]} : vector<4x128xf32> to vector<1x128xf32>
    %45 = vector.broadcast %44 : vector<1x128xf32> to vector<8x128xf32>
    %46 = arith.mulf %26, %45 : vector<8x128xf32>
    %47 = arith.addf %43, %46 : vector<8x128xf32>
    %48 = vector.extract_strided_slice %36 {offsets = [3, 0], sizes = [1, 128], strides = [1, 1]} : vector<4x128xf32> to vector<1x128xf32>
    %49 = vector.broadcast %48 : vector<1x128xf32> to vector<8x128xf32>
    %50 = arith.mulf %35, %49 : vector<8x128xf32>
    %51 = arith.addf %47, %50 : vector<8x128xf32>
    %cst_40 = arith.constant dense<0.000000e+00> : vector<8xf32>
    %52 = vector.multi_reduction <add>, %51, %cst_40 [1] : vector<8x128xf32> to vector<8xf32>
    %53 = vector.shape_cast %52 : vector<8xf32> to vector<8x1xf32>
    %c0_41 = arith.constant 0 : index
    %c0_42 = arith.constant 0 : index
    %54 = vector.load %arg14[%c0_41, %c0_42] : memref<1x1xf32, #tpu.memory_space<vmem>>, vector<1x1xf32>
    %55 = vector.broadcast %54 : vector<1x1xf32> to vector<8x1xf32>
    %56 = arith.addf %53, %55 : vector<8x1xf32>
    %c0_43 = arith.constant 0 : index
    %c0_44 = arith.constant 0 : index
    %57 = vector.load %arg15[%c0_43, %c0_44] : memref<8x1xf32, #tpu.memory_space<vmem>>, vector<8x1xf32>
    tpu.vector_store %arg15[%c0_43, %c0_44], %56 {strides = array<i32>} : memref<8x1xf32, #tpu.memory_space<vmem>>, vector<8x1xf32>,
    return
  }
  func.func @transform_0(%arg0: i32) -> (i32, i32, i32) {
    %c0_i32 = arith.constant 0 : i32
    %c0_i32_0 = arith.constant 0 : i32
    %c0_i32_1 = arith.constant 0 : i32
    return %arg0, %c0_i32, %c0_i32_0 : i32, i32, i32
  }
  func.func @transform_1(%arg0: i32) -> (i32, i32, i32) {
    %c0_i32 = arith.constant 0 : i32
    %c0_i32_0 = arith.constant 0 : i32
    %c0_i32_1 = arith.constant 0 : i32
    return %arg0, %c0_i32, %c0_i32_0 : i32, i32, i32
  }
  func.func @transform_2(%arg0: i32) -> (i32, i32, i32) {
    %c0_i32 = arith.constant 0 : i32
    %c0_i32_0 = arith.constant 0 : i32
    %c0_i32_1 = arith.constant 0 : i32
    return %arg0, %c0_i32, %c0_i32_0 : i32, i32, i32
  }
  func.func @transform_3(%arg0: i32) -> (i32, i32, i32) {
    %c0_i32 = arith.constant 0 : i32
    %c0_i32_0 = arith.constant 0 : i32
    %c0_i32_1 = arith.constant 0 : i32
    return %arg0, %c0_i32, %c0_i32_0 : i32, i32, i32
  }
  func.func @transform_4(%arg0: i32) -> (i32, i32) {
    %c0_i32 = arith.constant 0 : i32
    %c0_i32_0 = arith.constant 0 : i32
    %c0_i32_1 = arith.constant 0 : i32
    return %c0_i32, %c0_i32_0 : i32, i32
  }
  func.func @transform_5(%arg0: i32) -> (i32, i32) {
    %c0_i32 = arith.constant 0 : i32
    %c0_i32_0 = arith.constant 0 : i32
    %c0_i32_1 = arith.constant 0 : i32
    return %c0_i32, %c0_i32_0 : i32, i32
  }
  func.func @transform_6(%arg0: i32) -> (i32, i32) {
    %c0_i32 = arith.constant 0 : i32
    %c0_i32_0 = arith.constant 0 : i32
    %c0_i32_1 = arith.constant 0 : i32
    return %c0_i32, %c0_i32_0 : i32, i32
  }
  func.func @transform_7(%arg0: i32) -> (i32, i32) {
    %c0_i32 = arith.constant 0 : i32
    %c0_i32_0 = arith.constant 0 : i32
    %c0_i32_1 = arith.constant 0 : i32
    return %c0_i32, %c0_i32_0 : i32, i32
  }
  func.func @transform_8(%arg0: i32) -> (i32, i32) {
    %c0_i32 = arith.constant 0 : i32
    %c0_i32_0 = arith.constant 0 : i32
    %c0_i32_1 = arith.constant 0 : i32
    return %c0_i32, %c0_i32_0 : i32, i32
  }
  func.func @transform_9(%arg0: i32) -> (i32, i32) {
    %c0_i32 = arith.constant 0 : i32
    %c0_i32_0 = arith.constant 0 : i32
    %c0_i32_1 = arith.constant 0 : i32
    return %c0_i32, %c0_i32_0 : i32, i32
  }
  func.func @transform_10(%arg0: i32) -> (i32, i32) {
    %c0_i32 = arith.constant 0 : i32
    %c0_i32_0 = arith.constant 0 : i32
    %c0_i32_1 = arith.constant 0 : i32
    return %c0_i32, %c0_i32_0 : i32, i32
  }
  func.func @transform_11(%arg0: i32) -> (i32, i32) {
    %c0_i32 = arith.constant 0 : i32
    %c0_i32_0 = arith.constant 0 : i32
    %c0_i32_1 = arith.constant 0 : i32
    return %c0_i32, %c0_i32_0 : i32, i32
  }
  func.func @transform_12(%arg0: i32) -> (i32, i32) {
    %c0_i32 = arith.constant 0 : i32
    %c0_i32_0 = arith.constant 0 : i32
    %c0_i32_1 = arith.constant 0 : i32
    return %c0_i32, %c0_i32_0 : i32, i32
  }
  func.func @transform_13(%arg0: i32) -> (i32, i32) {
    %c0_i32 = arith.constant 0 : i32
    %c0_i32_0 = arith.constant 0 : i32
    %c0_i32_1 = arith.constant 0 : i32
    return %c0_i32, %c0_i32_0 : i32, i32
  }
  func.func @transform_14(%arg0: i32) -> (i32, i32) {
    %c0_i32 = arith.constant 0 : i32
    %c0_i32_0 = arith.constant 0 : i32
    return %arg0, %c0_i32 : i32, i32
  }
}

</mosaic_0001>

<bundles_post_ra>
// kernel: tpu_custom_call.1
= control target key start
LH: loop header
LB: loop body
LE: loop exit
PB: predicated region body
PF: predicated region fallthrough
CT: control target
= control target key end

     0   :  { %s8849_s0 = inlined_call_operand.hbm [shape: f32[16,64,1024], index: 0, kind: input, shape index: {}]   ;;  %s8850_s1 = inlined_call_operand.hbm [shape: f32[16,128,256], index: 1, kind: input, shape index: {}]   ;;  %s8851_s2 = inlined_call_operand.hbm [shape: f32[16,64,256], index: 2, kind: input, shape index: {}]   ;;  %s8852_s3 = inlined_call_operand.hbm [shape: f32[16,16,512], index: 3, kind: input, shape index: {}]   ;;  %s8853_s4 = inlined_call_operand.hbm [shape: f32[64,128], index: 4, kind: input, shape index: {}]   ;;  %s8854_s5 = inlined_call_operand.hbm [shape: f32[1,128], index: 5, kind: input, shape index: {}]   ;;  %s8855_s6 = inlined_call_operand.hbm [shape: f32[128,128], index: 6, kind: input, shape index: {}]   ;;  %s8856_s7 = inlined_call_operand.hbm [shape: f32[1,128], index: 7, kind: input, shape index: {}]   ;;  %s8857_s8 = inlined_call_operand.hbm [shape: f32[256,128], index: 8, kind: input, shape index: {}]   ;;  %s8858_s9 = inlined_call_operand.hbm [shape: f32[1,128], index: 9, kind: input, shape index: {}]   ;;  %s8859_s10 = inlined_call_operand.hbm [shape: f32[512,128], index: 10, kind: input, shape index: {}]   ;;  %s8860_s11 = inlined_call_operand.hbm [shape: f32[1,128], index: 11, kind: input, shape index: {}]   ;;  %s8861_s12 = inlined_call_operand.hbm [shape: f32[4,128], index: 12, kind: input, shape index: {}]   ;;  %s8862_s13 = inlined_call_operand.<no memory space> [shape: f32[1,1], index: 13, kind: input, shape index: {}]   ;;  %s8863_s14 = inlined_call_operand.vmem [shape: f32[16,1], index: 14, kind: output, shape index: {}]  }
   0x1   :  { %8915 = sst [smem:[#allocation56_spill]] %s8849_s0  ;;  %v19_v0 = vstv %s8862_s13 }
   0x2   :  { %8916 = sst [smem:[#allocation57_spill]] %s8850_s1  ;;  %20 = vst [vmem:[#allocation2] sm:$0x1] %v19_v0 }
   0x3   :  { %8917 = sst [smem:[#allocation58_spill]] %s8851_s2 }
   0x4   :  { %8918 = sst [smem:[#allocation59_spill]] %s8852_s3 }
   0x5   :  { %8919 = sst [smem:[#allocation60_spill]] %s8853_s4 }
   0x6   :  { %8920 = sst [smem:[#allocation61_spill]] %s8854_s5 }
   0x7   :  { %8921 = sst [smem:[#allocation62_spill]] %s8856_s7 }
   0x8   :  { %8922 = sst [smem:[#allocation63_spill]] %s8858_s9 }
   0x9   :  { %8923 = sst [smem:[#allocation64_spill]] %s8860_s11 }
   0xa   :  { %8924 = sst [smem:[#allocation65_spill]] %s8863_s14 }
   0xb   :  { %21 = vsyncpa [#allocation4], 0 }
   0xc   :  { %23 = vsyncpa [#allocation4 + $0x1], 0 }
   0xd   :  { %24 = vsyncpa [#allocation6], 0 }
   0xe   :  { %26 = vsyncpa [#allocation6 + $0x1], 0 }
   0xf   :  { %27 = vsyncpa [#allocation9], 0 }
  0x10   :  { %29 = vsyncpa [#allocation9 + $0x1], 0 }
  0x11   :  { %30 = vsyncpa [#allocation12], 0 }
  0x12   :  { %31 = vsyncpa [#allocation15], 0 }
  0x13   :  { %32 = vsyncpa [#allocation18], 0 }
  0x14   :  { %33 = vsyncpa [#allocation21], 0  ;;  %s6198_s15 = smov 0   ;;  %s6200_s16 = smov 0  }
  0x15   :  { %s6202_s17 = smov 0   ;;  %s6204_s18 = smov 0  }
  0x16 LB: > { %s6096_s13 = smov [#allocation10]   ;;  %s6219_s20 = sadd.s32 4294967295, %s6094_s18   ;;  %s6094_s18 = sphi %s6204_s18, %s9058_s18   ;;  %s6090_s17 = sphi %s6202_s17, %s9057_s17   ;;  %s6086_s16 = sphi %s6200_s16, %s9056_s16   ;;  %s6082_s15 = sphi %s6198_s15, %s9055_s15  }
  0x17   : > { %s396_s19 = sshll.u32 %s6096_s13, 4  ;;  %p5129_p0 = scmp.ge.s32.totalorder %s6094_s18, 1  ;;  %s6224_s19 = int_to_ptr.vmem [resolvable:$true] %s396_s19 }
  0x18   : > { %p8870_p1 = scmp.eq.s32.totalorder %s6219_s20, 0  ;;  %p384_p2 = scmp.lt.s32.totalorder %s6094_s18, 3 }
  0x19   : > { %s6097_s22 = smov [#allocation11]   ;;  %s6098_s25 = smov [#allocation14]  }
  0x1a   : > { %p6226_p3 = pnand %p5129_p0, %p384_p2  ;;  %s410_s23 = sshll.u32 %s6097_s22, 4  ;;  %s6238_s23 = int_to_ptr.vmem [resolvable:$true] %s410_s23 }
  0x1b   : > { %s434_s26 = sshll.u32 %s6098_s25, 4  ;;  %s8928_s4 = sld [smem:[#allocation60_spill]]  ;;  %s6240_s26 = int_to_ptr.vmem [resolvable:$true] %s434_s26 }
  0x1c   : > { %s8925_s21 = scalar_select %p6226_p3, 1, 0 }
  0x1d   : > { %p5548_p4 = pneg %p6226_p3 }
  0x1e   : > { %8926 = sst [smem:[#allocation31_spill]] %s8925_s21 }
  0x1f   : > { %p6234_p5 = pnand %p5548_p4, %p8870_p1 }
  0x21   : > { %s8927_s24 = scalar_select %p6234_p5, 1, 0 }
  0x22   : > { %s5660_s29 = scalar_lea.hbm %s8928_s4, 1024  ;;  %p6250_p7 = pneg %p6234_p5 }
  0x23   : > { %p5661_p6 = scmp.ne.s32.totalorder %s8928_s4, %s5660_s29  ;;  %p5667_p10 = scmp.lt.u32.totalorder %s5660_s29, %s8928_s4 }
  0x24   : > { %s8929_s22 = scalar_select %p6250_p7, 1, 0 }
  0x25   : > { %p5663_p8 = pnand %p6250_p7, %p5661_p6 }
  0x27   : > { %p5664_p9 = pneg %p5663_p8 }
  0x29   : > { %p5669_p11 = pnand %p5667_p10, %p5664_p9 }
  0x2b   : > { %5672 = shalt.err (!%p5669_p11)
}
  0x2c   : > { %s5673_s27 = scalar_lea.vmem %s6224_s19, 1024  ;;  %p5681_p2 = scmp.lt.s32.totalorder %s6224_s19, %s6224_s19 }
  0x2d   : > { %p5674_p12 = scmp.ne.s32.totalorder %s6224_s19, %s5673_s27  ;;  %p5682_p4 = scmp.lt.s32.totalorder %s5673_s27, %s5673_s27 }
  0x2f   : > { %p5676_p13 = pnand %p5674_p12, %p6250_p7  ;;  %p5683_p6 = por %p5682_p4, %p5681_p2 }
  0x31   : > { %p5677_p0 = pneg %p5676_p13 }
  0x33   : > { %p5684_p8 = pnand %p5683_p6, %p5677_p0 }
  0x35   : > { %5687 = shalt.err (!%p5684_p8)
}
  0x36   : > { %s8868_s28 = smov 128   ;;  %s8872_s14 = smov 8  }
  0x37   : > { %5551 = dma.hbm_to_vmem [thread:$0]  (!%p6234_p5), %s8928_s4, 1024, %s6224_s19, [#allocation9], %s8868_s28, %s8868_s28, %s8872_s14  }
  0x38   : > { %s8930_s5 = sld [smem:[#allocation61_spill]] }
  0x3e   : > { %s5688_s27 = scalar_lea.hbm %s8930_s5, 16 }
  0x3f   : > { %p5689_p9 = scmp.ne.s32.totalorder %s8930_s5, %s5688_s27  ;;  %p5695_p12 = scmp.lt.u32.totalorder %s5688_s27, %s8930_s5 }
  0x41   : > { %p5691_p10 = pnand %p5689_p9, %p6250_p7 }
  0x43   : > { %p5692_p11 = pneg %p5691_p10 }
  0x45   : > { %p5697_p13 = pnand %p5695_p12, %p5692_p11 }
  0x47   : > { %5700 = shalt.err (!%p5697_p13)
}
  0x48   : > { %s5701_s19 = scalar_lea.vmem %s6238_s23, 16  ;;  %s5708_s3 = scalar_lea.vmem %s6238_s23, 32 }
  0x49   : > { %p5702_p0 = scmp.ne.s32.totalorder %s6238_s23, %s5701_s19  ;;  %p5709_p6 = scmp.lt.s32.totalorder %s6238_s23, %s6238_s23 }
  0x4a   : > { %p5710_p8 = scmp.lt.s32.totalorder %s5708_s3, %s5701_s19 }
  0x4b   : > { %p5704_p2 = pnand %p5702_p0, %p6250_p7 }
  0x4c   : > { %p5711_p9 = por %p5710_p8, %p5709_p6 }
  0x4d   : > { %p5705_p4 = pneg %p5704_p2 }
  0x4f   : > { %p5712_p10 = pnand %p5711_p9, %p5705_p4 }
  0x51   : > { %5715 = shalt.err (!%p5712_p10)
}
  0x52   : > { %5554 = dma.hbm_to_vmem [thread:$0]  (!%p6234_p5), %s8930_s5, 16, %s6238_s23, [#allocation12]  }
  0x53   : > { %s8931_s7 = sld [smem:[#allocation62_spill]] }
  0x59   : > { %s5716_s30 = scalar_lea.hbm %s8931_s7, 16 }
  0x5a   : > { %p5717_p11 = scmp.ne.s32.totalorder %s8931_s7, %s5716_s30  ;;  %p5723_p0 = scmp.lt.u32.totalorder %s5716_s30, %s8931_s7 }
  0x5c   : > { %p5719_p12 = pnand %p5717_p11, %p6250_p7 }
  0x5e   : > { %p5720_p13 = pneg %p5719_p12 }
  0x60   : > { %p5725_p2 = pnand %p5723_p0, %p5720_p13 }
  0x62   : > { %5728 = shalt.err (!%p5725_p2)
}
  0x63   : > { %s5729_s23 = scalar_lea.vmem %s6240_s26, 16  ;;  %s5736_s3 = scalar_lea.vmem %s6240_s26, 32 }
  0x64   : > { %p5730_p4 = scmp.ne.s32.totalorder %s6240_s26, %s5729_s23  ;;  %p5737_p9 = scmp.lt.s32.totalorder %s6240_s26, %s6240_s26 }
  0x65   : > { %p5738_p10 = scmp.lt.s32.totalorder %s5736_s3, %s5729_s23 }
  0x66   : > { %p5732_p6 = pnand %p5730_p4, %p6250_p7 }
  0x67   : > { %p5739_p11 = por %p5738_p10, %p5737_p9 }
  0x68   : > { %p5733_p8 = pneg %p5732_p6 }
  0x6a   : > { %p5740_p12 = pnand %p5739_p11, %p5733_p8 }
  0x6c   : > { %5743 = shalt.err (!%p5740_p12)
}
  0x6d   : > { %5560 = dma.hbm_to_vmem [thread:$0]  (!%p6234_p5), %s8931_s7, 16, %s6240_s26, [#allocation15]  }
  0x6e   : > { %s6101_s21 = smov [#allocation17]   ;;  %s6102_s30 = smov [#allocation20]  }
  0x6f   : > { %s458_s29 = sshll.u32 %s6101_s21, 4  ;;  %s482_s13 = sshll.u32 %s6102_s30, 4  ;;  %s459_s29 = int_to_ptr.vmem [resolvable:$true] %s458_s29  ;;  %s483_s13 = int_to_ptr.vmem [resolvable:$true] %s482_s13 }
  0x70   : > { %s8932_s9 = sld [smem:[#allocation63_spill]] }
  0x76   : > { %s5744_s19 = scalar_lea.hbm %s8932_s9, 16 }
  0x77   : > { %p5745_p13 = scmp.ne.s32.totalorder %s8932_s9, %s5744_s19  ;;  %p5751_p4 = scmp.lt.u32.totalorder %s5744_s19, %s8932_s9 }
  0x79   : > { %p5747_p0 = pnand %p5745_p13, %p6250_p7 }
  0x7b   : > { %p5748_p2 = pneg %p5747_p0 }
  0x7d   : > { %p5753_p6 = pnand %p5751_p4, %p5748_p2 }
  0x7f   : > { %5756 = shalt.err (!%p5753_p6)
}
  0x80   : > { %s5757_s26 = scalar_lea.vmem %s459_s29, 16  ;;  %s5764_s2 = scalar_lea.vmem %s459_s29, 32 }
  0x81   : > { %p5758_p8 = scmp.ne.s32.totalorder %s459_s29, %s5757_s26  ;;  %p5765_p11 = scmp.lt.s32.totalorder %s459_s29, %s459_s29 }
  0x82   : > { %p5766_p12 = scmp.lt.s32.totalorder %s5764_s2, %s5757_s26 }
  0x83   : > { %p5760_p9 = pnand %p5758_p8, %p6250_p7 }
  0x84   : > { %p5767_p1 = por %p5766_p12, %p5765_p11 }
  0x85   : > { %p5761_p10 = pneg %p5760_p9 }
  0x87   : > { %p5768_p3 = pnand %p5767_p1, %p5761_p10 }
  0x89   : > { %5771 = shalt.err (!%p5768_p3)
}
  0x8a   : > { %5566 = dma.hbm_to_vmem [thread:$0]  (!%p6234_p5), %s8932_s9, 16, %s459_s29, [#allocation18]  }
  0x8b   : > { %s8933_s11 = sld [smem:[#allocation64_spill]] }
  0x91   : > { %s5772_s27 = scalar_lea.hbm %s8933_s11, 16 }
  0x92   : > { %p5773_p13 = scmp.ne.s32.totalorder %s8933_s11, %s5772_s27  ;;  %p5779_p3 = scmp.lt.u32.totalorder %s5772_s27, %s8933_s11 }
  0x94   : > { %p5775_p0 = pnand %p5773_p13, %p6250_p7 }
  0x96   : > { %p5776_p1 = pneg %p5775_p0 }
  0x98   : > { %p5781_p2 = pnand %p5779_p3, %p5776_p1 }
  0x9a   : > { %5784 = shalt.err (!%p5781_p2)
}
  0x9b   : > { %s5785_s26 = scalar_lea.vmem %s483_s13, 16  ;;  %s5792_s29 = scalar_lea.vmem %s483_s13, 32 }
  0x9c   : > { %p5786_p4 = scmp.ne.s32.totalorder %s483_s13, %s5785_s26  ;;  %p5793_p9 = scmp.lt.s32.totalorder %s483_s13, %s483_s13 }
  0x9d   : > { %p5794_p10 = scmp.lt.s32.totalorder %s5792_s29, %s5785_s26 }
  0x9e   : > { %p5788_p6 = pnand %p5786_p4, %p6250_p7 }
  0x9f   : > { %p5795_p11 = por %p5794_p10, %p5793_p9 }
  0xa0   : > { %p5789_p8 = pneg %p5788_p6 }
  0xa2   : > { %p5796_p12 = pnand %p5795_p11, %p5789_p8 }
  0xa4   : > { %5799 = shalt.err (!%p5796_p12)
}
  0xa5   : > { %5572 = dma.hbm_to_vmem [thread:$0]  (!%p6234_p5), %s8933_s11, 16, %s483_s13, [#allocation21]  }
  0xa6   : > { %s6359_s30 = sadd.s32 1, %s6094_s18   ;;  %s46_s25 = sadd.s32 1, %s6090_s17 }
  0xa7   : > { %s43_s28 = ssub.s32 %s6094_s18, %s6359_s30  ;;  %p53_p0 = scmp.ne.s32.totalorder %s6090_s17, %s6086_s16 }
  0xa8   : > { %p44_p13 = scmp.eq.s32.totalorder %s43_s28, 0  ;;  %p54_p1 = scmp.eq.s32.totalorder %s6094_s18, 0 }
  0xa9   : > { %p59_p3 = scmp.ne.s32.totalorder %s6086_s16, %s6082_s15  ;;  %p8935_p4 = scmp.eq.s32.totalorder %s6219_s20, 0 }
  0xaa   : > { %s6370_s27 = scalar_select %p44_p13, %s6090_s17, %s46_s25  }
  0xab   : > { %p55_p2 = por %p54_p1, %p53_p0  ;;  %p6374_p6 = por %p8935_p4, %p59_p3 }
  0xac   : > { %8934 = sst [smem:[#allocation32_spill]] %s6370_s27  ;;  %p5598_p8 = scmp.lt.s32.totalorder %s6094_s18, 2 }
  0xad   : > { %s8936_s19 = scalar_select %p6374_p6, 1, 0 }
  0xae   : > { %s6380_s13 = sand.u32 1, %s6090_s17   ;;  %s8874_s23 = sand.u32 1, %s6094_s18  }
  0xaf   : > { %s5144_s3 = sshll.u32 %s6380_s13, 11  ;;  %p6384_p9 = pnand %p5598_p8, %p55_p2 }
  0xb0   : > { %s5182_s15 = sshll.u32 %s6094_s18, 15  ;;  %s8938_s1 = sld [smem:[#allocation57_spill]] }
  0xb1   : > { %s8937_s0 = scalar_select %p6384_p9, 1, 0 }
  0xb2   : > { %s533_s21 = scalar_lea.vmem [#allocation5], %s5144_s3  ;;  %s6398_s25 = scalar_lea.sflag [#allocation6], %s8874_s23 }
  0xb3   : > { %s541_s28 = sshll.u32 %s533_s21, 4  ;;  %p6404_p11 = pneg %p6384_p9  ;;  %s6394_s28 = int_to_ptr.vmem [resolvable:$true] %s541_s28 }
  0xb5   : > { %s8939_s4 = scalar_select %p6404_p11, 1, 0 }
  0xb6   : > { %s6392_s2 = scalar_lea.hbm %s8938_s1, %s5182_s15  ;;  %s5805_s3 = scalar_lea.hbm %s8938_s1, 65536 }
  0xb7   : > { %s5800_s14 = scalar_lea.hbm %s6392_s2, 32768  ;;  %p5806_p0 = scmp.lt.u32.totalorder %s6392_s2, %s8938_s1 }
  0xb8   : > { %p5801_p10 = scmp.ne.s32.totalorder %s6392_s2, %s5800_s14  ;;  %p5807_p1 = scmp.lt.u32.totalorder %s5805_s3, %s5800_s14 }
  0xb9   : > { %p5809_p2 = scmp.lt.u32.totalorder %s5800_s14, %s6392_s2 }
  0xba   : > { %p5803_p12 = pnand %p6404_p11, %p5801_p10  ;;  %p5808_p3 = por %p5807_p1, %p5806_p0 }
  0xbc   : > { %p5804_p13 = pneg %p5803_p12  ;;  %p5810_p4 = por %p5809_p2, %p5808_p3 }
  0xbe   : > { %p5811_p8 = pnand %p5810_p4, %p5804_p13 }
  0xc0   : > { %5814 = shalt.err (!%p5811_p8)
}
  0xc1   : > { %s5815_s23 = scalar_lea.vmem %s6394_s28, 32768  ;;  %s6103_s15 = smov [#allocation5]  }
  0xc2   : > { %p5816_p10 = scmp.ne.s32.totalorder %s6394_s28, %s5815_s23  ;;  %s5820_s26 = sshll.u32 %s6103_s15, 4  ;;  %s5821_s26 = int_to_ptr.vmem [resolvable:$false] %s5820_s26 }
  0xc3   : > { %s5822_s29 = scalar_lea.vmem %s5821_s26, 65536  ;;  %p5823_p5 = scmp.lt.s32.totalorder %s6394_s28, %s5821_s26 }
  0xc4   : > { %p5818_p12 = pnand %p5816_p10, %p6404_p11  ;;  %p5824_p7 = scmp.lt.s32.totalorder %s5822_s29, %s5815_s23 }
  0xc6   : > { %p5819_p6 = pneg %p5818_p12  ;;  %p5825_p0 = por %p5824_p7, %p5823_p5 }
  0xc8   : > { %p5826_p1 = pnand %p5825_p0, %p5819_p6 }
  0xca   : > { %5829 = shalt.err (!%p5826_p1)
}
  0xcb   : > { %s8884_s14 = smov 256   ;;  %s8885_s3 = smov 16  }
  0xcc   : > { %5582 = dma.hbm_to_vmem [thread:$0]  (!%p6384_p9), %s6392_s2, 32768, %s6394_s28, %s6398_s25, %s8884_s14, %s8884_s14, %s8885_s3  }
  0xcd   : > { %s6106_s21 = smov [#allocation13]   ;;  %s6107_s26 = smov [#allocation16]  }
  0xce   : > { %s420_s15 = sshll.u32 %s6106_s21, 4  ;;  %s444_s23 = sshll.u32 %s6107_s26, 4  ;;  %s421_s15 = int_to_ptr.vmem [resolvable:$true] %s420_s15  ;;  %s445_s23 = int_to_ptr.vmem [resolvable:$true] %s444_s23 }
  0xcf   : > { %s5830_s5 = scalar_lea.hbm %s8855_s6, 2048  ;;  %p8940_p7 = scmp.ne.s32.totalorder %s8929_s22, 0 }
  0xd0   : > { %p5831_p5 = scmp.ne.s32.totalorder %s8855_s6, %s5830_s5  ;;  %p5837_p3 = scmp.lt.u32.totalorder %s5830_s5, %s8855_s6 }
  0xd2   : > { %p5833_p6 = pnand %p5831_p5, %p8940_p7 }
  0xd4   : > { %p5834_p13 = pneg %p5833_p6 }
  0xd6   : > { %p5839_p2 = pnand %p5837_p3, %p5834_p13 }
  0xd8   : > { %5842 = shalt.err (!%p5839_p2)
}
  0xd9   : > { %s5843_s2 = scalar_lea.vmem %s421_s15, 2048  ;;  %p5851_p12 = scmp.lt.s32.totalorder %s421_s15, %s421_s15 }
  0xda   : > { %p5844_p4 = scmp.ne.s32.totalorder %s421_s15, %s5843_s2  ;;  %p5852_p0 = scmp.lt.s32.totalorder %s5843_s2, %s5843_s2 }
  0xdc   : > { %p5846_p8 = pnand %p5844_p4, %p8940_p7  ;;  %p5853_p1 = por %p5852_p0, %p5851_p12 }
  0xde   : > { %p5847_p10 = pneg %p5846_p8 }
  0xe0   : > { %p5854_p9 = pnand %p5853_p1, %p5847_p10 }
  0xe2   : > { %5857 = shalt.err (!%p5854_p9)
}
  0xe3   : > { %p8941_p5 = scmp.ne.s32.totalorder %s8927_s24, 0  ;;  %s8942_s1 = smov 8  }
  0xe4   : > { %s8943_s7 = smov 128   ;;  %s5858_s28 = scalar_lea.hbm %s8857_s8, 4096 }
  0xe5   : > { %5557 = dma.hbm_to_vmem [thread:$0]  (!%p8941_p5), %s8855_s6, 2048, %s421_s15, [#allocation12], %s8943_s7, %s8943_s7, %s8942_s1  }
  0xe6   : > { %p5859_p6 = scmp.ne.s32.totalorder %s8857_s8, %s5858_s28  ;;  %p5865_p3 = scmp.lt.u32.totalorder %s5858_s28, %s8857_s8 }
  0xe8   : > { %p5861_p9 = pnand %p5859_p6, %p8940_p7 }
  0xea   : > { %p5862_p13 = pneg %p5861_p9 }
  0xec   : > { %p5867_p2 = pnand %p5865_p3, %p5862_p13 }
  0xee   : > { %5870 = shalt.err (!%p5867_p2)
}
  0xef   : > { %s5871_s9 = scalar_lea.vmem %s445_s23, 4096  ;;  %p5879_p12 = scmp.lt.s32.totalorder %s445_s23, %s445_s23 }
  0xf0   : > { %p5872_p4 = scmp.ne.s32.totalorder %s445_s23, %s5871_s9  ;;  %p5880_p0 = scmp.lt.s32.totalorder %s5871_s9, %s5871_s9 }
  0xf2   : > { %p5874_p8 = pnand %p5872_p4, %p8940_p7  ;;  %p5881_p1 = por %p5880_p0, %p5879_p12 }
  0xf4   : > { %p5875_p10 = pneg %p5874_p8 }
  0xf6   : > { %p5882_p11 = pnand %p5881_p1, %p5875_p10 }
  0xf8   : > { %5885 = shalt.err (!%p5882_p11)
}
  0xf9   : > { %5563 = dma.hbm_to_vmem [thread:$0]  (!%p8941_p5), %s8857_s8, 4096, %s445_s23, [#allocation15], %s8943_s7, %s8943_s7, %s8942_s1  }
  0xfa   : > { %s6108_s11 = smov [#allocation19]   ;;  %s6109_s28 = smov [#allocation22]  }
  0xfb   : > { %s468_s27 = sshll.u32 %s6108_s11, 4  ;;  %s493_s21 = sshll.u32 %s6109_s28, 4  ;;  %s469_s27 = int_to_ptr.vmem [resolvable:$true] %s468_s27  ;;  %s494_s21 = int_to_ptr.vmem [resolvable:$true] %s493_s21 }
  0xfc   : > { %s5886_s2 = scalar_lea.hbm %s8859_s10, 8192 }
  0xfd   : > { %p5887_p11 = scmp.ne.s32.totalorder %s8859_s10, %s5886_s2  ;;  %p5893_p13 = scmp.lt.u32.totalorder %s5886_s2, %s8859_s10 }
  0xff   : > { %p5889_p6 = pnand %p5887_p11, %p8940_p7 }
 0x101   : > { %p5890_p9 = pneg %p5889_p6 }
 0x103   : > { %p5895_p3 = pnand %p5893_p13, %p5890_p9 }
 0x105   : > { %5898 = shalt.err (!%p5895_p3)
}
 0x106   : > { %s5899_s23 = scalar_lea.vmem %s469_s27, 8192  ;;  %p5907_p10 = scmp.lt.s32.totalorder %s469_s27, %s469_s27 }
 0x107   : > { %p5900_p2 = scmp.ne.s32.totalorder %s469_s27, %s5899_s23  ;;  %p5908_p12 = scmp.lt.s32.totalorder %s5899_s23, %s5899_s23 }
 0x109   : > { %p5902_p4 = pnand %p5900_p2, %p8940_p7  ;;  %p5909_p0 = por %p5908_p12, %p5907_p10 }
 0x10b   : > { %p5903_p8 = pneg %p5902_p4 }
 0x10d   : > { %p5910_p1 = pnand %p5909_p0, %p5903_p8 }
 0x10f   : > { %5913 = shalt.err (!%p5910_p1)
}
 0x110   : > { %5569 = dma.hbm_to_vmem [thread:$0]  (!%p8941_p5), %s8859_s10, 8192, %s469_s27, [#allocation18], %s8943_s7, %s8943_s7, %s8942_s1  }
 0x111   : > { %s5914_s28 = scalar_lea.hbm %s8861_s12, 64 }
 0x112   : > { %p5915_p11 = scmp.ne.s32.totalorder %s8861_s12, %s5914_s28  ;;  %p5921_p13 = scmp.lt.u32.totalorder %s5914_s28, %s8861_s12 }
 0x114   : > { %p5917_p6 = pnand %p5915_p11, %p8940_p7 }
 0x116   : > { %p5918_p9 = pneg %p5917_p6 }
 0x118   : > { %p5923_p3 = pnand %p5921_p13, %p5918_p9 }
 0x11a   : > { %5926 = shalt.err (!%p5923_p3)
}
 0x11b   : > { %s5927_s15 = scalar_lea.vmem %s494_s21, 64  ;;  %p5935_p10 = scmp.lt.s32.totalorder %s494_s21, %s494_s21 }
 0x11c   : > { %p5928_p2 = scmp.ne.s32.totalorder %s494_s21, %s5927_s15  ;;  %p5936_p12 = scmp.lt.s32.totalorder %s5927_s15, %s5927_s15 }
 0x11e   : > { %p5930_p4 = pnand %p5928_p2, %p8940_p7  ;;  %p5937_p0 = por %p5936_p12, %p5935_p10 }
 0x120   : > { %p5931_p8 = pneg %p5930_p4 }
 0x122   : > { %p5938_p1 = pnand %p5937_p0, %p5931_p8 }
 0x124   : > { %5941 = shalt.err (!%p5938_p1)
}
 0x125   : > { %5575 = dma.hbm_to_vmem [thread:$0]  (!%p8941_p5), %s8861_s12, 64, %s494_s21, [#allocation21]  }
 0x126   : > { %s5140_s27 = sshll.u32 %s6380_s13, 12  ;;  %s5180_s23 = sshll.u32 %s6094_s18, 16 }
 0x127   : > { %s8944_s3 = sld [smem:[#allocation56_spill]]  ;;  %s511_s24 = scalar_lea.vmem [#allocation3], %s5140_s27 }
 0x128   : > { %s519_s11 = sshll.u32 %s511_s24, 4  ;;  %s508_s28 = scalar_lea.sflag [#allocation4], %s6380_s13  ;;  %s6519_s11 = int_to_ptr.vmem [resolvable:$true] %s519_s11 }
 0x129   : > { %p8945_p11 = scmp.ne.s32.totalorder %s8939_s4, 0 }
 0x12d   : > { %s6517_s5 = scalar_lea.hbm %s8944_s3, %s5180_s23  ;;  %s5947_s2 = scalar_lea.hbm %s8944_s3, 131072 }
 0x12e   : > { %s5942_s26 = scalar_lea.hbm %s6517_s5, 65536  ;;  %p5948_p9 = scmp.lt.u32.totalorder %s6517_s5, %s8944_s3 }
 0x12f   : > { %p5943_p7 = scmp.ne.s32.totalorder %s6517_s5, %s5942_s26  ;;  %p5949_p13 = scmp.lt.u32.totalorder %s5947_s2, %s5942_s26 }
 0x130   : > { %p5951_p2 = scmp.lt.u32.totalorder %s5942_s26, %s6517_s5 }
 0x131   : > { %p5945_p5 = pnand %p5943_p7, %p8945_p11  ;;  %p5950_p3 = por %p5949_p13, %p5948_p9 }
 0x133   : > { %p5946_p6 = pneg %p5945_p5  ;;  %p5952_p4 = por %p5951_p2, %p5950_p3 }
 0x135   : > { %p5953_p8 = pnand %p5952_p4, %p5946_p6 }
 0x137   : > { %5956 = shalt.err (!%p5953_p8)
}
 0x138   : > { %s5957_s1 = scalar_lea.vmem %s6519_s11, 65536  ;;  %s6110_s7 = smov [#allocation3]  }
 0x139   : > { %p5958_p10 = scmp.ne.s32.totalorder %s6519_s11, %s5957_s1  ;;  %s5962_s27 = sshll.u32 %s6110_s7, 4  ;;  %s5963_s27 = int_to_ptr.vmem [resolvable:$false] %s5962_s27 }
 0x13a   : > { %s5964_s23 = scalar_lea.vmem %s5963_s27, 131072  ;;  %p5965_p1 = scmp.lt.s32.totalorder %s6519_s11, %s5963_s27 }
 0x13b   : > { %p5960_p12 = pnand %p5958_p10, %p8945_p11  ;;  %p5966_p7 = scmp.lt.s32.totalorder %s5964_s23, %s5957_s1 }
 0x13d   : > { %p5961_p0 = pneg %p5960_p12  ;;  %p5967_p5 = por %p5966_p7, %p5965_p1 }
 0x13f   : > { %p5968_p9 = pnand %p5967_p5, %p5961_p0 }
 0x141   : > { %5971 = shalt.err (!%p5968_p9)
}
 0x142   : > { %s6111_s22 = smov 1024   ;;  %s6112_s14 = smov 64  }
 0x143   : > { %p8946_p6 = scmp.ne.s32.totalorder %s8937_s0, 0  ;;  %s5148_s24 = sshll.u32 %s6380_s13, 10 }
 0x144   : > { %s5184_s26 = sshll.u32 %s6094_s18, 14  ;;  %s8947_s2 = sld [smem:[#allocation58_spill]] }
 0x145   : > { %5579 = dma.hbm_to_vmem [thread:$0]  (!%p8946_p6), %s6517_s5, 65536, %s6519_s11, %s508_s28, %s6111_s22, %s6111_s22, %s6112_s14  }
 0x146   : > { %s555_s15 = scalar_lea.vmem [#allocation7], %s5148_s24  ;;  %s5152_s7 = sshll.u32 %s6380_s13, 9 }
 0x147   : > { %s563_s1 = sshll.u32 %s555_s15, 4  ;;  %s6553_s1 = int_to_ptr.vmem [resolvable:$true] %s563_s1 }
 0x14a   : > { %s6550_s9 = scalar_lea.hbm %s8947_s2, %s5184_s26  ;;  %s5977_s28 = scalar_lea.hbm %s8947_s2, 32768 }
 0x14b   : > { %s5972_s27 = scalar_lea.hbm %s6550_s9, 16384  ;;  %p5978_p4 = scmp.lt.u32.totalorder %s6550_s9, %s8947_s2 }
 0x14c   : > { %p5973_p13 = scmp.ne.s32.totalorder %s6550_s9, %s5972_s27  ;;  %p5979_p8 = scmp.lt.u32.totalorder %s5977_s28, %s5972_s27 }
 0x14d   : > { %p5981_p12 = scmp.lt.u32.totalorder %s5972_s27, %s6550_s9 }
 0x14e   : > { %p5975_p3 = pnand %p5973_p13, %p8945_p11  ;;  %p5980_p10 = por %p5979_p8, %p5978_p4 }
 0x150   : > { %p5976_p2 = pneg %p5975_p3  ;;  %p5982_p0 = por %p5981_p12, %p5980_p10 }
 0x152   : > { %p5983_p1 = pnand %p5982_p0, %p5976_p2 }
 0x154   : > { %5986 = shalt.err (!%p5983_p1)
}
 0x155   : > { %s5987_s14 = scalar_lea.vmem %s6553_s1, 16384  ;;  %s6113_s24 = smov [#allocation7]  }
 0x156   : > { %p5988_p7 = scmp.ne.s32.totalorder %s6553_s1, %s5987_s14  ;;  %s5992_s26 = sshll.u32 %s6113_s24, 4  ;;  %s5993_s26 = int_to_ptr.vmem [resolvable:$false] %s5992_s26 }
 0x157   : > { %s5994_s21 = scalar_lea.vmem %s5993_s26, 32768  ;;  %p5995_p13 = scmp.lt.s32.totalorder %s6553_s1, %s5993_s26 }
 0x158   : > { %p5990_p5 = pnand %p5988_p7, %p8945_p11  ;;  %p5996_p3 = scmp.lt.s32.totalorder %s5994_s21, %s5987_s14 }
 0x15a   : > { %p5991_p9 = pneg %p5990_p5  ;;  %p5997_p4 = por %p5996_p3, %p5995_p13 }
 0x15c   : > { %p5998_p8 = pnand %p5997_p4, %p5991_p9 }
 0x15e   : > { %6001 = shalt.err (!%p5998_p8)
}
 0x15f   : > { %s8948_s29 = smov 16   ;;  %s8949_s15 = smov 256  }
 0x160   : > { %5585 = dma.hbm_to_vmem [thread:$0]  (!%p8946_p6), %s6550_s9, 16384, %s6553_s1, %s6398_s25, %s8949_s15, %s8949_s15, %s8948_s29  }
 0x161   : > { %s5186_s27 = sshll.u32 %s6094_s18, 13  ;;  %s577_s5 = scalar_lea.vmem [#allocation8], %s5152_s7 }
 0x162   : > { %s585_s11 = sshll.u32 %s577_s5, 4  ;;  %s8950_s22 = sld [smem:[#allocation59_spill]]  ;;  %s6588_s11 = int_to_ptr.vmem [resolvable:$true] %s585_s11 }
 0x163   : > { %s8951_s24 = sand.u32 1, %s6094_s18  }
 0x164   : > { %s6592_s26 = scalar_lea.sflag [#allocation9], %s8951_s24 }
 0x168   : > { %s6586_s14 = scalar_lea.hbm %s8950_s22, %s5186_s27  ;;  %s6007_s9 = scalar_lea.hbm %s8950_s22, 16384 }
 0x169   : > { %s6002_s21 = scalar_lea.hbm %s6586_s14, 8192  ;;  %p6008_p0 = scmp.lt.u32.totalorder %s6586_s14, %s8950_s22 }
 0x16a   : > { %p6003_p2 = scmp.ne.s32.totalorder %s6586_s14, %s6002_s21  ;;  %p6009_p1 = scmp.lt.u32.totalorder %s6007_s9, %s6002_s21 }
 0x16b   : > { %p6011_p5 = scmp.lt.u32.totalorder %s6002_s21, %s6586_s14 }
 0x16c   : > { %p6005_p10 = pnand %p6003_p2, %p8945_p11  ;;  %p6010_p7 = por %p6009_p1, %p6008_p0 }
 0x16e   : > { %p6006_p12 = pneg %p6005_p10  ;;  %p6012_p9 = por %p6011_p5, %p6010_p7 }
 0x170   : > { %p6013_p13 = pnand %p6012_p9, %p6006_p12 }
 0x172   : > { %6016 = shalt.err (!%p6013_p13)
}
 0x173   : > { %s6017_s18 = scalar_lea.vmem %s6588_s11, 8192  ;;  %s6114_s29 = smov [#allocation8]  }
 0x174   : > { %p6018_p3 = scmp.ne.s32.totalorder %s6588_s11, %s6017_s18  ;;  %s6022_s15 = sshll.u32 %s6114_s29, 4  ;;  %s6023_s15 = int_to_ptr.vmem [resolvable:$false] %s6022_s15 }
 0x175   : > { %s6024_s27 = scalar_lea.vmem %s6023_s15, 16384  ;;  %p6025_p2 = scmp.lt.s32.totalorder %s6588_s11, %s6023_s15 }
 0x176   : > { %p6020_p4 = pnand %p6018_p3, %p8945_p11  ;;  %p6026_p10 = scmp.lt.s32.totalorder %s6024_s27, %s6017_s18 }
 0x178   : > { %p6021_p8 = pneg %p6020_p4  ;;  %p6027_p0 = por %p6026_p10, %p6025_p2 }
 0x17a   : > { %p6028_p1 = pnand %p6027_p0, %p6021_p8 }
 0x17c   : > { %6031 = shalt.err (!%p6028_p1)
}
 0x17d   : > { %s6115_s5 = smov 512   ;;  %s6116_s28 = smov 32  }
 0x17e   : > { %5588 = dma.hbm_to_vmem [thread:$0]  (!%p8946_p6), %s6586_s14, 8192, %s6588_s11, %s6592_s26, %s6115_s5, %s6115_s5, %s6116_s28  }
 0x17f   : > { %s8952_s4 = sld [smem:[#allocation31_spill]] }
 0x185   : > { %p8953_p11 = scmp.ne.s32.totalorder %s8952_s4, 0 }
 0x187   : > { %597 = sbr.rel (%p8953_p11) target bundleno = 1414 (0x586), region = 76 }
 0x18e   : > { %s599_s23 = sand.u32 1, %s6086_s16   ;;  %p8954_p12 = scmp.ne.s32.totalorder %s8936_s19, 0 }
 0x18f   : > { %s5157_s24 = sshll.u32 %s599_s23, 12  ;;  %s600_s21 = scalar_lea.sflag [#allocation4], %s599_s23 }
 0x190   : > { %s6619_s13 = scalar_lea.vmem [#allocation3], %s5157_s24 }
 0x191   : > { %6049 = dma.done.wait (%p8954_p12), %s600_s21, 65536  }
 0x192   : > { %6051 = vsyncadd (%p8954_p12), %s600_s21, 4294901760  ;;  %s608_s25 = sand.u32 1, %s6219_s20   ;;  %s5158_s0 = sshll.u32 %s599_s23, 11 }
 0x193   : > { %s609_s11 = scalar_lea.sflag [#allocation6], %s608_s25  ;;  %s6626_s14 = scalar_lea.vmem [#allocation5], %s5158_s0 }
 0x194   : > { %6053 = dma.done.wait (%p8954_p12), %s609_s11, 49152  }
 0x195   : > { %6055 = vsyncadd (%p8954_p12), %s609_s11, 4294918144  ;;  %s5159_s26 = sshll.u32 %s599_s23, 10  ;;  %s5160_s9 = sshll.u32 %s599_s23, 9 }
 0x196   : > { %s6632_s1 = scalar_lea.vmem [#allocation7], %s5159_s26  ;;  %s627_s7 = scalar_lea.sflag [#allocation9], %s608_s25 }
 0x197   : > { %s6634_s18 = scalar_lea.vmem [#allocation8], %s5160_s9 }
 0x198   : > { %6057 = dma.done.wait (%p8954_p12), %s627_s7, 8192  }
 0x199   : > { %6059 = vsyncadd (%p8954_p12), %s627_s7, 4294959104  ;;  %p8955_p6 = scmp.eq.s32.totalorder %s6219_s20, 0 }
 0x19b   : > { %6061 = dma.done.wait (%p8955_p6), [#allocation9], 1024   ;;  %p8956_p7 = pmov %p8955_p6 }
 0x19c   : > { %p8957_p5 = pmov %p8955_p6 }
 0x19d   : > { %6063 = vsyncadd (%p8956_p7), [#allocation9], 4294966272 }
 0x19e   : > { %6065 = dma.done.wait (%p8957_p5), [#allocation12], 2064   ;;  %p8958_p9 = pmov %p8957_p5 }
 0x19f   : > { %p8959_p13 = pmov %p8957_p5 }
 0x1a0   : > { %6067 = vsyncadd (%p8958_p9), [#allocation12], 4294965232 }
 0x1a1   : > { %6069 = dma.done.wait (%p8959_p13), [#allocation15], 4112   ;;  %p8960_p3 = pmov %p8957_p5 }
 0x1a3   : > { %6071 = vsyncadd (%p8960_p3), [#allocation15], 4294963184  ;;  %p8961_p4 = pmov %p8960_p3 }
 0x1a4   : > { %p8962_p8 = pmov %p8960_p3 }
 0x1a5   : > { %6073 = dma.done.wait (%p8961_p4), [#allocation18], 8208  }
 0x1a6   : > { %6075 = vsyncadd (%p8962_p8), [#allocation18], 4294959088  ;;  %p8963_p2 = pmov %p8960_p3 }
 0x1a8   : > { %6077 = dma.done.wait (%p8963_p2), [#allocation21], 80   ;;  %p8964_p10 = pmov %p8963_p2 }
 0x1a9   : > { %v797_v1 = vld [vmem:[%s6619_s13 + $0x200] sm:$0xff]  ;;  %v798_v2 = vld [vmem:[%s6619_s13 + $0x208] sm:$0xff]  ;;  %v799_v3 = vld [vmem:[%s6619_s13 + $0x210] sm:$0xff]  ;;  %vm6118_vm0 = vmmov 0   ;;  %vm1911_vm1 = vcmask 130112   ;;  %vm1918_vm2 = vcmask 195712  }
 0x1aa   : > { %6079 = vsyncadd (%p8964_p10), [#allocation21], 4294967216  ;;  %v1317_v4 = vadd.f32 %v798_v2, %v797_v1  ;;  %v800_v5 = vld [vmem:[%s6619_s13 + $0x218] sm:$0xff]  ;;  %v733_v6 = vld [vmem:[%s6619_s13] sm:$0xff]  ;;  %vm1925_vm3 = vcmask 261312   ;;  %vm1932_vm4 = vcmask 326912  }
 0x1ab   : > { %v734_v8 = vld [vmem:[%s6619_s13 + $0x8] sm:$0xff]  ;;  %v735_v9 = vld [vmem:[%s6619_s13 + $0x10] sm:$0xff]  ;;  %v801_v10 = vld [vmem:[%s6619_s13 + $0x220] sm:$0xff]  ;;  %vm1939_vm5 = vcmask 392512   ;;  %vm1946_vm6 = vcmask 458112   ;;  %vm1953_vm7 = vcmask 523712  }
 0x1ac   : > { %v1318_v7 = vadd.f32 %v1317_v4, %v799_v3  ;;  %v1245_v11 = vadd.f32 %v734_v8, %v733_v6  ;;  %v736_v13 = vld [vmem:[%s6619_s13 + $0x18] sm:$0xff]  ;;  %v805_v14 = vld [vmem:[%s6619_s13 + $0x240] sm:$0xff]  ;;  %v806_v15 = vld [vmem:[%s6619_s13 + $0x248] sm:$0xff]  ;;  %vm2228_vm8 = vcmask 1041409   ;;  %vm2230_vm9 = vcmask 1042434   ;;  %p729_p0 = scmp.lt.s32.totalorder %s6219_s20, 1 }
 0x1ad   : > { %v802_v16 = vld [vmem:[%s6619_s13 + $0x228] sm:$0xff]  ;;  %v807_v18 = vld [vmem:[%s6619_s13 + $0x250] sm:$0xff]  ;;  %v1326_v19 = vadd.f32 %v806_v15, %v805_v14  ;;  %v737_v22 = vld [vmem:[%s6619_s13 + $0x20] sm:$0xff]  ;;  %vm2232_vm10 = vcmask 1043459   ;;  %vm2234_vm11 = vcmask 1044484   ;;  %vm2236_vm12 = vcmask 1045509  }
 0x1ae   : > { %v1319_v12 = vadd.f32 %v1318_v7, %v800_v5  ;;  %v1246_v17 = vadd.f32 %v1245_v11, %v735_v9  ;;  %v803_v20 = vld [vmem:[%s6619_s13 + $0x230] sm:$0xff]  ;;  %v808_v23 = vld [vmem:[%s6619_s13 + $0x258] sm:$0xff]  ;;  %v741_v26 = vld [vmem:[%s6619_s13 + $0x40] sm:$0xff]  ;;  %vm2238_vm13 = vcmask 1046534   ;;  %vm2240_vm14 = vcmask 1047559   ;;  %s9060_s20 = smov (!%p729_p0, %s6219_s20), 1 }
 0x1af   : > { %v1327_v25 = vadd.f32 %v1326_v19, %v807_v18  ;;  %v742_v27 = vld [vmem:[%s6619_s13 + $0x48] sm:$0xff]  ;;  %v743_v28 = vld [vmem:[%s6619_s13 + $0x50] sm:$0xff]  ;;  %v804_v29 = vld [vmem:[%s6619_s13 + $0x238] sm:$0xff]  ;;  %vm2242_vm15 = vcmask 523264   ;;  %s5170_s19 = sshll.u32 %s9060_s20, 3  ;;  %s9053_s27 = sld [smem:[#allocation65_spill]] }
 0x1b0   : > { %v1320_v21 = vadd.f32 %v1319_v12, %v801_v10  ;;  %v1247_v24 = vadd.f32 %v1246_v17, %v736_v13  ;;  %v738_v31 = vld [vmem:[%s6619_s13 + $0x28] sm:$0xff]  ;;  %v809_v32 = vld [vmem:[%s6619_s13 + $0x260] sm:$0xff]  ;;  %v1254_v33 = vadd.f32 %v742_v27, %v741_v26  ;;  %v739_v34 = vld [vmem:[%s6619_s13 + $0x30] sm:$0xff] }
 0x1b1   : > { %v1328_v36 = vadd.f32 %v1327_v25, %v808_v23  ;;  %v744_v37 = vld [vmem:[%s6619_s13 + $0x58] sm:$0xff]  ;;  %v813_v38 = vld [vmem:[%s6619_s13 + $0x280] sm:$0xff]  ;;  %v810_v40 = vld [vmem:[%s6619_s13 + $0x268] sm:$0xff] }
 0x1b2   : > { %v1321_v30 = vadd.f32 %v1320_v21, %v802_v16  ;;  %v1248_v35 = vadd.f32 %v1247_v24, %v737_v22  ;;  %v1255_v41 = vadd.f32 %v1254_v33, %v743_v28  ;;  %v814_v42 = vld [vmem:[%s6619_s13 + $0x288] sm:$0xff]  ;;  %v815_v43 = vld [vmem:[%s6619_s13 + $0x290] sm:$0xff]  ;;  %v740_v44 = vld [vmem:[%s6619_s13 + $0x38] sm:$0xff] }
 0x1b3   : > { %v811_v46 = vld [vmem:[%s6619_s13 + $0x270] sm:$0xff]  ;;  %v1329_v47 = vadd.f32 %v1328_v36, %v809_v32  ;;  %v745_v48 = vld [vmem:[%s6619_s13 + $0x60] sm:$0xff]  ;;  %v1335_v49 = vadd.f32 %v814_v42, %v813_v38  ;;  %v816_v52 = vld [vmem:[%s6619_s13 + $0x298] sm:$0xff] }
 0x1b4   : > { %v1322_v39 = vadd.f32 %v1321_v30, %v803_v20  ;;  %v1249_v45 = vadd.f32 %v1248_v35, %v738_v31  ;;  %v1256_v51 = vadd.f32 %v1255_v41, %v744_v37  ;;  %v749_v53 = vld [vmem:[%s6619_s13 + $0x80] sm:$0xff]  ;;  %v750_v54 = vld [vmem:[%s6619_s13 + $0x88] sm:$0xff]  ;;  %v812_v56 = vld [vmem:[%s6619_s13 + $0x278] sm:$0xff] }
 0x1b5   : > { %v1330_v57 = vadd.f32 %v1329_v47, %v810_v40  ;;  %v746_v58 = vld [vmem:[%s6619_s13 + $0x68] sm:$0xff]  ;;  %v1336_v59 = vadd.f32 %v1335_v49, %v815_v43  ;;  %v751_v60 = vld [vmem:[%s6619_s13 + $0x90] sm:$0xff]  ;;  %v1263_v61 = vadd.f32 %v750_v54, %v749_v53  ;;  %v817_v0 = vld [vmem:[%s6619_s13 + $0x2a0] sm:$0xff]  ;;  %s732_s5 = scalar_lea.vmem %s9053_s27, %s5170_s19 }
 0x1b6   : > { %v1323_v50 = vadd.f32 %v1322_v39, %v804_v29  ;;  %v1250_v55 = vadd.f32 %v1249_v45, %v739_v34  ;;  %v747_v62 = vld [vmem:[%s6619_s13 + $0x70] sm:$0xff]  ;;  %v1257_v63 = vadd.f32 %v1256_v51, %v745_v48  ;;  %v752_v1 = vld [vmem:[%s6619_s13 + $0x98] sm:$0xff]  ;;  %v869_v6 = vld [vmem:[%s6619_s13 + $0x440] sm:$0xff] }
 0x1b7   : > { %v1331_v3 = vadd.f32 %v1330_v57, %v811_v46  ;;  %v1337_v4 = vadd.f32 %v1336_v59, %v816_v52  ;;  %v1264_v5 = vadd.f32 %v1263_v61, %v751_v60  ;;  %v870_v7 = vld [vmem:[%s6619_s13 + $0x448] sm:$0xff]  ;;  %v871_v8 = vld [vmem:[%s6619_s13 + $0x450] sm:$0xff]  ;;  %v748_v9 = vld [vmem:[%s6619_s13 + $0x78] sm:$0xff] }
 0x1b8   : > { %1324 = vadd.xlane.f32.xlu1 %v1323_v50  ;;  %v1251_v2 = vadd.f32 %v1250_v55, %v740_v44  ;;  %v1258_v10 = vadd.f32 %v1257_v63, %v746_v58  ;;  %v818_v11 = vld [vmem:[%s6619_s13 + $0x2a8] sm:$0xff]  ;;  %v753_v12 = vld [vmem:[%s6619_s13 + $0xa0] sm:$0xff]  ;;  %v1398_v13 = vadd.f32 %v870_v7, %v869_v6  ;;  %v819_v15 = vld [vmem:[%s6619_s13 + $0x2b0] sm:$0xff] }
 0x1b9   : > { %v1332_v14 = vadd.f32 %v1331_v3, %v812_v56  ;;  %v1338_v16 = vadd.f32 %v1337_v4, %v817_v0  ;;  %v1265_v17 = vadd.f32 %v1264_v5, %v752_v1  ;;  %v872_v18 = vld [vmem:[%s6619_s13 + $0x458] sm:$0xff]  ;;  %v861_v19 = vld [vmem:[%s6619_s13 + $0x400] sm:$0xff]  ;;  %v754_v21 = vld [vmem:[%s6619_s13 + $0xa8] sm:$0xff] }
 0x1ba   : > { %1252 = vadd.xlane.f32.xlu0 %v1251_v2  ;;  %v1259_v20 = vadd.f32 %v1258_v10, %v747_v62  ;;  %v1399_v22 = vadd.f32 %v1398_v13, %v871_v8  ;;  %v862_v23 = vld [vmem:[%s6619_s13 + $0x408] sm:$0xff]  ;;  %v863_v24 = vld [vmem:[%s6619_s13 + $0x410] sm:$0xff]  ;;  %v820_v25 = vld [vmem:[%s6619_s13 + $0x2b8] sm:$0xff] }
 0x1bb   : > { %v1339_v26 = vadd.f32 %v1338_v16, %v818_v11  ;;  %v755_v27 = vld [vmem:[%s6619_s13 + $0xb0] sm:$0xff]  ;;  %v1266_v28 = vadd.f32 %v1265_v17, %v753_v12  ;;  %v873_v29 = vld [vmem:[%s6619_s13 + $0x460] sm:$0xff]  ;;  %v1389_v30 = vadd.f32 %v862_v23, %v861_v19  ;;  %v864_v33 = vld [vmem:[%s6619_s13 + $0x418] sm:$0xff] }
 0x1bc   : > { %1333 = vadd.xlane.f32.xlu1 %v1332_v14  ;;  %v1260_v31 = vadd.f32 %v1259_v20, %v748_v9  ;;  %v1400_v32 = vadd.f32 %v1399_v22, %v872_v18  ;;  %v821_v34 = vld [vmem:[%s6619_s13 + $0x2c0] sm:$0xff]  ;;  %v822_v35 = vld [vmem:[%s6619_s13 + $0x2c8] sm:$0xff]  ;;  %v756_v37 = vld [vmem:[%s6619_s13 + $0xb8] sm:$0xff] }
 0x1bd   : > { %v1340_v36 = vadd.f32 %v1339_v26, %v819_v15  ;;  %v1267_v38 = vadd.f32 %v1266_v28, %v754_v21  ;;  %v874_v39 = vld [vmem:[%s6619_s13 + $0x468] sm:$0xff]  ;;  %v1390_v40 = vadd.f32 %v1389_v30, %v863_v24  ;;  %v823_v41 = vld [vmem:[%s6619_s13 + $0x2d0] sm:$0xff]  ;;  %v1344_v42 = vadd.f32 %v822_v35, %v821_v34  ;;  %v865_v45 = vld [vmem:[%s6619_s13 + $0x420] sm:$0xff] }
 0x1be   : > { %1261 = vadd.xlane.f32.xlu0 %v1260_v31  ;;  %v875_v43 = vld [vmem:[%s6619_s13 + $0x470] sm:$0xff]  ;;  %v1401_v44 = vadd.f32 %v1400_v32, %v873_v29  ;;  %v824_v46 = vld [vmem:[%s6619_s13 + $0x2d8] sm:$0xff]  ;;  %v757_v51 = vld [vmem:[%s6619_s13 + $0xc0] sm:$0xff] }
 0x1bf   : > { %v1341_v47 = vadd.f32 %v1340_v36, %v820_v25  ;;  %v1268_v48 = vadd.f32 %v1267_v38, %v755_v27  ;;  %v1391_v49 = vadd.f32 %v1390_v40, %v864_v33  ;;  %v1345_v50 = vadd.f32 %v1344_v42, %v823_v41  ;;  %v758_v52 = vld [vmem:[%s6619_s13 + $0xc8] sm:$0xff]  ;;  %v759_v53 = vld [vmem:[%s6619_s13 + $0xd0] sm:$0xff]  ;;  %v876_v54 = vld [vmem:[%s6619_s13 + $0x478] sm:$0xff] }
 0x1c0   : > { %v1402_v55 = vadd.f32 %v1401_v44, %v874_v39  ;;  %v866_v56 = vld [vmem:[%s6619_s13 + $0x428] sm:$0xff]  ;;  %v825_v57 = vld [vmem:[%s6619_s13 + $0x2e0] sm:$0xff]  ;;  %v1272_v58 = vadd.f32 %v758_v52, %v757_v51  ;;  %v867_v60 = vld [vmem:[%s6619_s13 + $0x430] sm:$0xff] }
 0x1c1   : > { %1342 = vadd.xlane.f32.xlu1 %v1341_v47  ;;  %v1269_v59 = vadd.f32 %v1268_v48, %v756_v37  ;;  %v1392_v61 = vadd.f32 %v1391_v49, %v865_v45  ;;  %v1346_v62 = vadd.f32 %v1345_v50, %v824_v46  ;;  %v760_v63 = vld [vmem:[%s6619_s13 + $0xd8] sm:$0xff]  ;;  %v925_v0 = vld [vmem:[%s6619_s13 + $0x600] sm:$0xff]  ;;  %v826_v2 = vld [vmem:[%s6619_s13 + $0x2e8] sm:$0xff] }
 0x1c2   : > { %v1403_v1 = vadd.f32 %v1402_v55, %v875_v43  ;;  %v1273_v3 = vadd.f32 %v1272_v58, %v759_v53  ;;  %v926_v4 = vld [vmem:[%s6619_s13 + $0x608] sm:$0xff]  ;;  %v927_v5 = vld [vmem:[%s6619_s13 + $0x610] sm:$0xff]  ;;  %v868_v6 = vld [vmem:[%s6619_s13 + $0x438] sm:$0xff] }
 0x1c3   : > { %1270 = vadd.xlane.f32.xlu0 %v1269_v59  ;;  %v1393_v7 = vadd.f32 %v1392_v61, %v866_v56  ;;  %v827_v8 = vld [vmem:[%s6619_s13 + $0x2f0] sm:$0xff]  ;;  %v1347_v9 = vadd.f32 %v1346_v62, %v825_v57  ;;  %v761_v10 = vld [vmem:[%s6619_s13 + $0xe0] sm:$0xff]  ;;  %v1461_v11 = vadd.f32 %v926_v4, %v925_v0  ;;  %v928_v14 = vld [vmem:[%s6619_s13 + $0x618] sm:$0xff] }
 0x1c4   : > { %v1404_v12 = vadd.f32 %v1403_v1, %v876_v54  ;;  %v1274_v13 = vadd.f32 %v1273_v3, %v760_v63  ;;  %v877_v15 = vld [vmem:[%s6619_s13 + $0x480] sm:$0xff]  ;;  %v878_v16 = vld [vmem:[%s6619_s13 + $0x488] sm:$0xff]  ;;  %v828_v18 = vld [vmem:[%s6619_s13 + $0x2f8] sm:$0xff] }
 0x1c5   : > { %v1394_v17 = vadd.f32 %v1393_v7, %v867_v60  ;;  %v1348_v19 = vadd.f32 %v1347_v9, %v826_v2  ;;  %v762_v20 = vld [vmem:[%s6619_s13 + $0xe8] sm:$0xff]  ;;  %v1462_v21 = vadd.f32 %v1461_v11, %v927_v5  ;;  %v879_v22 = vld [vmem:[%s6619_s13 + $0x490] sm:$0xff]  ;;  %v1407_v23 = vadd.f32 %v878_v16, %v877_v15  ;;  %v929_v26 = vld [vmem:[%s6619_s13 + $0x620] sm:$0xff] }
 0x1c6   : > { %1405 = vadd.xlane.f32.xlu1 %v1404_v12  ;;  %v763_v24 = vld [vmem:[%s6619_s13 + $0xf0] sm:$0xff]  ;;  %v1275_v25 = vadd.f32 %v1274_v13, %v761_v10  ;;  %v880_v27 = vld [vmem:[%s6619_s13 + $0x498] sm:$0xff]  ;;  %v765_v32 = vld [vmem:[%s6619_s13 + $0x100] sm:$0xff] }
 0x1c7   : > { %v1395_v28 = vadd.f32 %v1394_v17, %v868_v6  ;;  %v1349_v29 = vadd.f32 %v1348_v19, %v827_v8  ;;  %v1463_v30 = vadd.f32 %v1462_v21, %v928_v14  ;;  %v1408_v31 = vadd.f32 %v1407_v23, %v879_v22  ;;  %v766_v33 = vld [vmem:[%s6619_s13 + $0x108] sm:$0xff]  ;;  %v767_v34 = vld [vmem:[%s6619_s13 + $0x110] sm:$0xff]  ;;  %v764_v35 = vld [vmem:[%s6619_s13 + $0xf8] sm:$0xff] }
 0x1c8   : > { %v1276_v36 = vadd.f32 %v1275_v25, %v762_v20  ;;  %v930_v37 = vld [vmem:[%s6619_s13 + $0x628] sm:$0xff]  ;;  %v881_v38 = vld [vmem:[%s6619_s13 + $0x4a0] sm:$0xff]  ;;  %v1281_v39 = vadd.f32 %v766_v33, %v765_v32  ;;  %v931_v41 = vld [vmem:[%s6619_s13 + $0x630] sm:$0xff] }
 0x1c9   : > { %1396 = vadd.xlane.f32.xlu0 %v1395_v28  ;;  %v1350_v40 = vadd.f32 %v1349_v29, %v828_v18  ;;  %v1464_v42 = vadd.f32 %v1463_v30, %v929_v26  ;;  %v1409_v43 = vadd.f32 %v1408_v31, %v880_v27  ;;  %v768_v44 = vld [vmem:[%s6619_s13 + $0x118] sm:$0xff]  ;;  %v933_v45 = vld [vmem:[%s6619_s13 + $0x640] sm:$0xff]  ;;  %v882_v47 = vld [vmem:[%s6619_s13 + $0x4a8] sm:$0xff] }
 0x1ca   : > { %v1277_v46 = vadd.f32 %v1276_v36, %v763_v24  ;;  %v1282_v48 = vadd.f32 %v1281_v39, %v767_v34  ;;  %v934_v49 = vld [vmem:[%s6619_s13 + $0x648] sm:$0xff]  ;;  %v935_v50 = vld [vmem:[%s6619_s13 + $0x650] sm:$0xff]  ;;  %v932_v51 = vld [vmem:[%s6619_s13 + $0x638] sm:$0xff] }
 0x1cb   : > { %1351 = vadd.xlane.f32.xlu1 %v1350_v40  ;;  %v1465_v52 = vadd.f32 %v1464_v42, %v930_v37  ;;  %v883_v53 = vld [vmem:[%s6619_s13 + $0x4b0] sm:$0xff]  ;;  %v1410_v54 = vadd.f32 %v1409_v43, %v881_v38  ;;  %v769_v55 = vld [vmem:[%s6619_s13 + $0x120] sm:$0xff]  ;;  %v1470_v56 = vadd.f32 %v934_v49, %v933_v45  ;;  %v936_v59 = vld [vmem:[%s6619_s13 + $0x658] sm:$0xff] }
 0x1cc   : > { %v1278_v57 = vadd.f32 %v1277_v46, %v764_v35  ;;  %v1283_v58 = vadd.f32 %v1282_v48, %v768_v44  ;;  %v885_v60 = vld [vmem:[%s6619_s13 + $0x4c0] sm:$0xff]  ;;  %v886_v61 = vld [vmem:[%s6619_s13 + $0x4c8] sm:$0xff]  ;;  %v884_v63 = vld [vmem:[%s6619_s13 + $0x4b8] sm:$0xff] }
 0x1cd   : > { %v1466_v62 = vadd.f32 %v1465_v52, %v931_v41  ;;  %v1411_v0 = vadd.f32 %v1410_v54, %v882_v47  ;;  %v770_v1 = vld [vmem:[%s6619_s13 + $0x128] sm:$0xff]  ;;  %v1471_v2 = vadd.f32 %v1470_v56, %v935_v50  ;;  %v887_v3 = vld [vmem:[%s6619_s13 + $0x4d0] sm:$0xff]  ;;  %v1416_v4 = vadd.f32 %v886_v61, %v885_v60  ;;  %v937_v7 = vld [vmem:[%s6619_s13 + $0x660] sm:$0xff] }
 0x1ce   : > { %1279 = vadd.xlane.f32.xlu0 %v1278_v57  ;;  %v771_v5 = vld [vmem:[%s6619_s13 + $0x130] sm:$0xff]  ;;  %v1284_v6 = vadd.f32 %v1283_v58, %v769_v55  ;;  %v888_v8 = vld [vmem:[%s6619_s13 + $0x4d8] sm:$0xff]  ;;  %v829_v13 = vld [vmem:[%s6619_s13 + $0x300] sm:$0xff] }
 0x1cf   : > { %v1467_v9 = vadd.f32 %v1466_v62, %v932_v51  ;;  %v1412_v10 = vadd.f32 %v1411_v0, %v883_v53  ;;  %v1472_v11 = vadd.f32 %v1471_v2, %v936_v59  ;;  %v1417_v12 = vadd.f32 %v1416_v4, %v887_v3  ;;  %v830_v14 = vld [vmem:[%s6619_s13 + $0x308] sm:$0xff]  ;;  %v831_v15 = vld [vmem:[%s6619_s13 + $0x310] sm:$0xff]  ;;  %v772_v16 = vld [vmem:[%s6619_s13 + $0x138] sm:$0xff] }
 0x1d0   : > { %v1285_v17 = vadd.f32 %v1284_v6, %v770_v1  ;;  %v938_v18 = vld [vmem:[%s6619_s13 + $0x668] sm:$0xff]  ;;  %v889_v19 = vld [vmem:[%s6619_s13 + $0x4e0] sm:$0xff]  ;;  %v1353_v20 = vadd.f32 %v830_v14, %v829_v13  ;;  %v939_v22 = vld [vmem:[%s6619_s13 + $0x670] sm:$0xff] }
 0x1d1   : > { %1468 = vadd.xlane.f32.xlu1 %v1467_v9  ;;  %v1413_v21 = vadd.f32 %v1412_v10, %v884_v63  ;;  %v1473_v23 = vadd.f32 %v1472_v11, %v937_v7  ;;  %v1418_v24 = vadd.f32 %v1417_v12, %v888_v8  ;;  %v832_v25 = vld [vmem:[%s6619_s13 + $0x318] sm:$0xff]  ;;  %v989_v26 = vld [vmem:[%s6619_s13 + $0x800] sm:$0xff]  ;;  %v890_v28 = vld [vmem:[%s6619_s13 + $0x4e8] sm:$0xff] }
 0x1d2   : > { %v1286_v27 = vadd.f32 %v1285_v17, %v771_v5  ;;  %v1354_v29 = vadd.f32 %v1353_v20, %v831_v15  ;;  %v990_v30 = vld [vmem:[%s6619_s13 + $0x808] sm:$0xff]  ;;  %v991_v31 = vld [vmem:[%s6619_s13 + $0x810] sm:$0xff]  ;;  %v940_v32 = vld [vmem:[%s6619_s13 + $0x678] sm:$0xff] }
 0x1d3   : > { %1414 = vadd.xlane.f32.xlu0 %v1413_v21  ;;  %v1474_v33 = vadd.f32 %v1473_v23, %v938_v18  ;;  %v891_v34 = vld [vmem:[%s6619_s13 + $0x4f0] sm:$0xff]  ;;  %v1419_v35 = vadd.f32 %v1418_v24, %v889_v19  ;;  %v833_v36 = vld [vmem:[%s6619_s13 + $0x320] sm:$0xff]  ;;  %v1533_v37 = vadd.f32 %v990_v30, %v989_v26  ;;  %v992_v40 = vld [vmem:[%s6619_s13 + $0x818] sm:$0xff] }
 0x1d4   : > { %v1287_v38 = vadd.f32 %v1286_v27, %v772_v16  ;;  %v1355_v39 = vadd.f32 %v1354_v29, %v832_v25  ;;  %v941_v41 = vld [vmem:[%s6619_s13 + $0x680] sm:$0xff]  ;;  %v942_v42 = vld [vmem:[%s6619_s13 + $0x688] sm:$0xff]  ;;  %v892_v44 = vld [vmem:[%s6619_s13 + $0x4f8] sm:$0xff] }
 0x1d5   : > { %v1475_v43 = vadd.f32 %v1474_v33, %v939_v22  ;;  %v1420_v45 = vadd.f32 %v1419_v35, %v890_v28  ;;  %v834_v46 = vld [vmem:[%s6619_s13 + $0x328] sm:$0xff]  ;;  %v1534_v47 = vadd.f32 %v1533_v37, %v991_v31  ;;  %v943_v48 = vld [vmem:[%s6619_s13 + $0x690] sm:$0xff]  ;;  %v1479_v49 = vadd.f32 %v942_v42, %v941_v41  ;;  %v993_v52 = vld [vmem:[%s6619_s13 + $0x820] sm:$0xff] }
 0x1d6   : > { %1288 = vadd.xlane.f32.xlu1 %v1287_v38  ;;  %v835_v50 = vld [vmem:[%s6619_s13 + $0x330] sm:$0xff]  ;;  %v1356_v51 = vadd.f32 %v1355_v39, %v833_v36  ;;  %v944_v53 = vld [vmem:[%s6619_s13 + $0x698] sm:$0xff]  ;;  %v773_v58 = vld [vmem:[%s6619_s13 + $0x140] sm:$0xff] }
 0x1d7   : > { %v1476_v54 = vadd.f32 %v1475_v43, %v940_v32  ;;  %v1421_v55 = vadd.f32 %v1420_v45, %v891_v34  ;;  %v1535_v56 = vadd.f32 %v1534_v47, %v992_v40  ;;  %v1480_v57 = vadd.f32 %v1479_v49, %v943_v48  ;;  %v774_v59 = vld [vmem:[%s6619_s13 + $0x148] sm:$0xff]  ;;  %v775_v60 = vld [vmem:[%s6619_s13 + $0x150] sm:$0xff]  ;;  %v836_v61 = vld [vmem:[%s6619_s13 + $0x338] sm:$0xff] }
 0x1d8   : > { %v1357_v62 = vadd.f32 %v1356_v51, %v834_v46  ;;  %v994_v63 = vld [vmem:[%s6619_s13 + $0x828] sm:$0xff]  ;;  %v945_v0 = vld [vmem:[%s6619_s13 + $0x6a0] sm:$0xff]  ;;  %v1290_v1 = vadd.f32 %v774_v59, %v773_v58  ;;  %v995_v3 = vld [vmem:[%s6619_s13 + $0x830] sm:$0xff] }
 0x1d9   : > { %1477 = vadd.xlane.f32.xlu0 %v1476_v54  ;;  %v1422_v2 = vadd.f32 %v1421_v55, %v892_v44  ;;  %v1536_v4 = vadd.f32 %v1535_v56, %v993_v52  ;;  %v1481_v5 = vadd.f32 %v1480_v57, %v944_v53  ;;  %v776_v6 = vld [vmem:[%s6619_s13 + $0x158] sm:$0xff]  ;;  %v997_v7 = vld [vmem:[%s6619_s13 + $0x840] sm:$0xff]  ;;  %v946_v9 = vld [vmem:[%s6619_s13 + $0x6a8] sm:$0xff] }
 0x1da   : > { %v1358_v8 = vadd.f32 %v1357_v62, %v835_v50  ;;  %v1291_v10 = vadd.f32 %v1290_v1, %v775_v60  ;;  %v998_v11 = vld [vmem:[%s6619_s13 + $0x848] sm:$0xff]  ;;  %v999_v12 = vld [vmem:[%s6619_s13 + $0x850] sm:$0xff]  ;;  %v996_v13 = vld [vmem:[%s6619_s13 + $0x838] sm:$0xff] }
 0x1db   : > { %1423 = vadd.xlane.f32.xlu1 %v1422_v2  ;;  %v1537_v14 = vadd.f32 %v1536_v4, %v994_v63  ;;  %v947_v15 = vld [vmem:[%s6619_s13 + $0x6b0] sm:$0xff]  ;;  %v1482_v16 = vadd.f32 %v1481_v5, %v945_v0  ;;  %v777_v17 = vld [vmem:[%s6619_s13 + $0x160] sm:$0xff]  ;;  %v1542_v18 = vadd.f32 %v998_v11, %v997_v7  ;;  %v1000_v21 = vld [vmem:[%s6619_s13 + $0x858] sm:$0xff] }
 0x1dc   : > { %v1359_v19 = vadd.f32 %v1358_v8, %v836_v61  ;;  %v1292_v20 = vadd.f32 %v1291_v10, %v776_v6  ;;  %v893_v22 = vld [vmem:[%s6619_s13 + $0x500] sm:$0xff]  ;;  %v894_v23 = vld [vmem:[%s6619_s13 + $0x508] sm:$0xff]  ;;  %v948_v25 = vld [vmem:[%s6619_s13 + $0x6b8] sm:$0xff] }
 0x1dd   : > { %v1538_v24 = vadd.f32 %v1537_v14, %v995_v3  ;;  %v1483_v26 = vadd.f32 %v1482_v16, %v946_v9  ;;  %v778_v27 = vld [vmem:[%s6619_s13 + $0x168] sm:$0xff]  ;;  %v1543_v28 = vadd.f32 %v1542_v18, %v999_v12  ;;  %v895_v29 = vld [vmem:[%s6619_s13 + $0x510] sm:$0xff]  ;;  %v1425_v30 = vadd.f32 %v894_v23, %v893_v22  ;;  %v1001_v33 = vld [vmem:[%s6619_s13 + $0x860] sm:$0xff] }
 0x1de   : > { %1360 = vadd.xlane.f32.xlu0 %v1359_v19  ;;  %v779_v31 = vld [vmem:[%s6619_s13 + $0x170] sm:$0xff]  ;;  %v1293_v32 = vadd.f32 %v1292_v20, %v777_v17  ;;  %v896_v34 = vld [vmem:[%s6619_s13 + $0x518] sm:$0xff]  ;;  %v837_v39 = vld [vmem:[%s6619_s13 + $0x340] sm:$0xff] }
 0x1df   : > { %v1539_v35 = vadd.f32 %v1538_v24, %v996_v13  ;;  %v1484_v36 = vadd.f32 %v1483_v26, %v947_v15  ;;  %v1544_v37 = vadd.f32 %v1543_v28, %v1000_v21  ;;  %v1426_v38 = vadd.f32 %v1425_v30, %v895_v29  ;;  %v838_v40 = vld [vmem:[%s6619_s13 + $0x348] sm:$0xff]  ;;  %v839_v41 = vld [vmem:[%s6619_s13 + $0x350] sm:$0xff]  ;;  %v780_v42 = vld [vmem:[%s6619_s13 + $0x178] sm:$0xff] }
 0x1e0   : > { %v1294_v43 = vadd.f32 %v1293_v32, %v778_v27  ;;  %v1002_v44 = vld [vmem:[%s6619_s13 + $0x868] sm:$0xff]  ;;  %v897_v45 = vld [vmem:[%s6619_s13 + $0x520] sm:$0xff]  ;;  %v1362_v46 = vadd.f32 %v838_v40, %v837_v39  ;;  %v1003_v48 = vld [vmem:[%s6619_s13 + $0x870] sm:$0xff] }
 0x1e1   : > { %1540 = vadd.xlane.f32.xlu1 %v1539_v35  ;;  %v1485_v47 = vadd.f32 %v1484_v36, %v948_v25  ;;  %v1545_v49 = vadd.f32 %v1544_v37, %v1001_v33  ;;  %v1427_v50 = vadd.f32 %v1426_v38, %v896_v34  ;;  %v840_v51 = vld [vmem:[%s6619_s13 + $0x358] sm:$0xff]  ;;  %v1005_v52 = vld [vmem:[%s6619_s13 + $0x880] sm:$0xff]  ;;  %v898_v54 = vld [vmem:[%s6619_s13 + $0x528] sm:$0xff] }
 0x1e2   : > { %v1295_v53 = vadd.f32 %v1294_v43, %v779_v31  ;;  %v1363_v55 = vadd.f32 %v1362_v46, %v839_v41  ;;  %v1006_v56 = vld [vmem:[%s6619_s13 + $0x888] sm:$0xff]  ;;  %v1007_v57 = vld [vmem:[%s6619_s13 + $0x890] sm:$0xff]  ;;  %v1004_v58 = vld [vmem:[%s6619_s13 + $0x878] sm:$0xff] }
 0x1e3   : > { %1486 = vadd.xlane.f32.xlu0 %v1485_v47  ;;  %v1546_v59 = vadd.f32 %v1545_v49, %v1002_v44  ;;  %v899_v60 = vld [vmem:[%s6619_s13 + $0x530] sm:$0xff]  ;;  %v1428_v61 = vadd.f32 %v1427_v50, %v897_v45  ;;  %v841_v62 = vld [vmem:[%s6619_s13 + $0x360] sm:$0xff]  ;;  %v1551_v63 = vadd.f32 %v1006_v56, %v1005_v52  ;;  %v1008_v2 = vld [vmem:[%s6619_s13 + $0x898] sm:$0xff] }
 0x1e4   : > { %v1296_v0 = vadd.f32 %v1295_v53, %v780_v42  ;;  %v1364_v1 = vadd.f32 %v1363_v55, %v840_v51  ;;  %v949_v3 = vld [vmem:[%s6619_s13 + $0x6c0] sm:$0xff]  ;;  %v950_v4 = vld [vmem:[%s6619_s13 + $0x6c8] sm:$0xff]  ;;  %v900_v6 = vld [vmem:[%s6619_s13 + $0x538] sm:$0xff] }
 0x1e5   : > { %v1547_v5 = vadd.f32 %v1546_v59, %v1003_v48  ;;  %v1429_v7 = vadd.f32 %v1428_v61, %v898_v54  ;;  %v842_v8 = vld [vmem:[%s6619_s13 + $0x368] sm:$0xff]  ;;  %v1552_v9 = vadd.f32 %v1551_v63, %v1007_v57  ;;  %v951_v10 = vld [vmem:[%s6619_s13 + $0x6d0] sm:$0xff]  ;;  %v1488_v11 = vadd.f32 %v950_v4, %v949_v3  ;;  %v1009_v14 = vld [vmem:[%s6619_s13 + $0x8a0] sm:$0xff] }
 0x1e6   : > { %1297 = vadd.xlane.f32.xlu1 %v1296_v0  ;;  %v843_v12 = vld [vmem:[%s6619_s13 + $0x370] sm:$0xff]  ;;  %v1365_v13 = vadd.f32 %v1364_v1, %v841_v62  ;;  %v952_v15 = vld [vmem:[%s6619_s13 + $0x6d8] sm:$0xff]  ;;  %v1061_v20 = vld [vmem:[%s6619_s13 + $0xa40] sm:$0xff] }
 0x1e7   : > { %v1548_v16 = vadd.f32 %v1547_v5, %v1004_v58  ;;  %v1430_v17 = vadd.f32 %v1429_v7, %v899_v60  ;;  %v1553_v18 = vadd.f32 %v1552_v9, %v1008_v2  ;;  %v1489_v19 = vadd.f32 %v1488_v11, %v951_v10  ;;  %v1062_v21 = vld [vmem:[%s6619_s13 + $0xa48] sm:$0xff]  ;;  %v1063_v22 = vld [vmem:[%s6619_s13 + $0xa50] sm:$0xff]  ;;  %v844_v23 = vld [vmem:[%s6619_s13 + $0x378] sm:$0xff] }
 0x1e8   : > { %v1366_v24 = vadd.f32 %v1365_v13, %v842_v8  ;;  %v1010_v25 = vld [vmem:[%s6619_s13 + $0x8a8] sm:$0xff]  ;;  %v953_v26 = vld [vmem:[%s6619_s13 + $0x6e0] sm:$0xff]  ;;  %v1614_v27 = vadd.f32 %v1062_v21, %v1061_v20  ;;  %v1011_v29 = vld [vmem:[%s6619_s13 + $0x8b0] sm:$0xff] }
 0x1e9   : > { %1549 = vadd.xlane.f32.xlu0 %v1548_v16  ;;  %v1431_v28 = vadd.f32 %v1430_v17, %v900_v6  ;;  %v1554_v30 = vadd.f32 %v1553_v18, %v1009_v14  ;;  %v1490_v31 = vadd.f32 %v1489_v19, %v952_v15  ;;  %v1064_v32 = vld [vmem:[%s6619_s13 + $0xa58] sm:$0xff]  ;;  %v1053_v33 = vld [vmem:[%s6619_s13 + $0xa00] sm:$0xff]  ;;  %v954_v35 = vld [vmem:[%s6619_s13 + $0x6e8] sm:$0xff] }
 0x1ea   : > { %v1367_v34 = vadd.f32 %v1366_v24, %v843_v12  ;;  %v1615_v36 = vadd.f32 %v1614_v27, %v1063_v22  ;;  %v1054_v37 = vld [vmem:[%s6619_s13 + $0xa08] sm:$0xff]  ;;  %v1055_v38 = vld [vmem:[%s6619_s13 + $0xa10] sm:$0xff]  ;;  %v1012_v39 = vld [vmem:[%s6619_s13 + $0x8b8] sm:$0xff] }
 0x1eb   : > { %1432 = vadd.xlane.f32.xlu1 %v1431_v28  ;;  %v1555_v40 = vadd.f32 %v1554_v30, %v1010_v25  ;;  %v955_v41 = vld [vmem:[%s6619_s13 + $0x6f0] sm:$0xff]  ;;  %v1491_v42 = vadd.f32 %v1490_v31, %v953_v26  ;;  %v1065_v43 = vld [vmem:[%s6619_s13 + $0xa60] sm:$0xff]  ;;  %v1605_v44 = vadd.f32 %v1054_v37, %v1053_v33  ;;  %v1056_v47 = vld [vmem:[%s6619_s13 + $0xa18] sm:$0xff] }
 0x1ec   : > { %v1368_v45 = vadd.f32 %v1367_v34, %v844_v23  ;;  %v1616_v46 = vadd.f32 %v1615_v36, %v1064_v32  ;;  %v845_v48 = vld [vmem:[%s6619_s13 + $0x380] sm:$0xff]  ;;  %v846_v49 = vld [vmem:[%s6619_s13 + $0x388] sm:$0xff]  ;;  %v956_v51 = vld [vmem:[%s6619_s13 + $0x6f8] sm:$0xff] }
 0x1ed   : > { %v1556_v50 = vadd.f32 %v1555_v40, %v1011_v29  ;;  %v1492_v52 = vadd.f32 %v1491_v42, %v954_v35  ;;  %v1066_v53 = vld [vmem:[%s6619_s13 + $0xa68] sm:$0xff]  ;;  %v1606_v54 = vadd.f32 %v1605_v44, %v1055_v38  ;;  %v847_v55 = vld [vmem:[%s6619_s13 + $0x390] sm:$0xff]  ;;  %v1371_v56 = vadd.f32 %v846_v49, %v845_v48  ;;  %v1057_v59 = vld [vmem:[%s6619_s13 + $0xa20] sm:$0xff] }
 0x1ee   : > { %1369 = vadd.xlane.f32.xlu0 %v1368_v45  ;;  %v1067_v57 = vld [vmem:[%s6619_s13 + $0xa70] sm:$0xff]  ;;  %v1617_v58 = vadd.f32 %v1616_v46, %v1065_v43  ;;  %v848_v60 = vld [vmem:[%s6619_s13 + $0x398] sm:$0xff]  ;;  %v781_v1 = vld [vmem:[%s6619_s13 + $0x180] sm:$0xff] }
 0x1ef   : > { %v1557_v61 = vadd.f32 %v1556_v50, %v1012_v39  ;;  %v1493_v62 = vadd.f32 %v1492_v52, %v955_v41  ;;  %v1607_v63 = vadd.f32 %v1606_v54, %v1056_v47  ;;  %v1372_v0 = vadd.f32 %v1371_v56, %v847_v55  ;;  %v782_v2 = vld [vmem:[%s6619_s13 + $0x188] sm:$0xff]  ;;  %v783_v3 = vld [vmem:[%s6619_s13 + $0x190] sm:$0xff]  ;;  %v1068_v4 = vld [vmem:[%s6619_s13 + $0xa78] sm:$0xff] }
 0x1f0   : > { %v1618_v5 = vadd.f32 %v1617_v58, %v1066_v53  ;;  %v1058_v6 = vld [vmem:[%s6619_s13 + $0xa28] sm:$0xff]  ;;  %v849_v7 = vld [vmem:[%s6619_s13 + $0x3a0] sm:$0xff]  ;;  %v1299_v8 = vadd.f32 %v782_v2, %v781_v1  ;;  %v1059_v10 = vld [vmem:[%s6619_s13 + $0xa30] sm:$0xff] }
 0x1f1   : > { %1558 = vadd.xlane.f32.xlu1 %v1557_v61  ;;  %v1494_v9 = vadd.f32 %v1493_v62, %v956_v51  ;;  %v1608_v11 = vadd.f32 %v1607_v63, %v1057_v59  ;;  %v1373_v12 = vadd.f32 %v1372_v0, %v848_v60  ;;  %v784_v13 = vld [vmem:[%s6619_s13 + $0x198] sm:$0xff]  ;;  %v957_v14 = vld [vmem:[%s6619_s13 + $0x700] sm:$0xff]  ;;  %v850_v16 = vld [vmem:[%s6619_s13 + $0x3a8] sm:$0xff] }
 0x1f2   : > { %v1619_v15 = vadd.f32 %v1618_v5, %v1067_v57  ;;  %v1300_v17 = vadd.f32 %v1299_v8, %v783_v3  ;;  %v958_v18 = vld [vmem:[%s6619_s13 + $0x708] sm:$0xff]  ;;  %v959_v19 = vld [vmem:[%s6619_s13 + $0x710] sm:$0xff]  ;;  %v1060_v20 = vld [vmem:[%s6619_s13 + $0xa38] sm:$0xff] }
 0x1f3   : > { %1495 = vadd.xlane.f32.xlu0 %v1494_v9  ;;  %v1609_v21 = vadd.f32 %v1608_v11, %v1058_v6  ;;  %v851_v22 = vld [vmem:[%s6619_s13 + $0x3b0] sm:$0xff]  ;;  %v1374_v23 = vadd.f32 %v1373_v12, %v849_v7  ;;  %v785_v24 = vld [vmem:[%s6619_s13 + $0x1a0] sm:$0xff]  ;;  %v1497_v25 = vadd.f32 %v958_v18, %v957_v14  ;;  %v960_v28 = vld [vmem:[%s6619_s13 + $0x718] sm:$0xff] }
 0x1f4   : > { %v1620_v26 = vadd.f32 %v1619_v15, %v1068_v4  ;;  %v1301_v27 = vadd.f32 %v1300_v17, %v784_v13  ;;  %v901_v29 = vld [vmem:[%s6619_s13 + $0x540] sm:$0xff]  ;;  %v902_v30 = vld [vmem:[%s6619_s13 + $0x548] sm:$0xff]  ;;  %v852_v32 = vld [vmem:[%s6619_s13 + $0x3b8] sm:$0xff] }
 0x1f5   : > { %v1610_v31 = vadd.f32 %v1609_v21, %v1059_v10  ;;  %v1375_v33 = vadd.f32 %v1374_v23, %v850_v16  ;;  %v786_v34 = vld [vmem:[%s6619_s13 + $0x1a8] sm:$0xff]  ;;  %v1498_v35 = vadd.f32 %v1497_v25, %v959_v19  ;;  %v903_v36 = vld [vmem:[%s6619_s13 + $0x550] sm:$0xff]  ;;  %v1434_v37 = vadd.f32 %v902_v30, %v901_v29  ;;  %v961_v40 = vld [vmem:[%s6619_s13 + $0x720] sm:$0xff] }
 0x1f6   : > { %1621 = vadd.xlane.f32.xlu1 %v1620_v26  ;;  %v787_v38 = vld [vmem:[%s6619_s13 + $0x1b0] sm:$0xff]  ;;  %v1302_v39 = vadd.f32 %v1301_v27, %v785_v24  ;;  %v904_v41 = vld [vmem:[%s6619_s13 + $0x558] sm:$0xff]  ;;  %v1069_v46 = vld [vmem:[%s6619_s13 + $0xa80] sm:$0xff] }
 0x1f7   : > { %v1611_v42 = vadd.f32 %v1610_v31, %v1060_v20  ;;  %v1376_v43 = vadd.f32 %v1375_v33, %v851_v22  ;;  %v1499_v44 = vadd.f32 %v1498_v35, %v960_v28  ;;  %v1435_v45 = vadd.f32 %v1434_v37, %v903_v36  ;;  %v1070_v47 = vld [vmem:[%s6619_s13 + $0xa88] sm:$0xff]  ;;  %v1071_v48 = vld [vmem:[%s6619_s13 + $0xa90] sm:$0xff]  ;;  %v788_v49 = vld [vmem:[%s6619_s13 + $0x1b8] sm:$0xff] }
 0x1f8   : > { %v1303_v50 = vadd.f32 %v1302_v39, %v786_v34  ;;  %v962_v51 = vld [vmem:[%s6619_s13 + $0x728] sm:$0xff]  ;;  %v905_v52 = vld [vmem:[%s6619_s13 + $0x560] sm:$0xff]  ;;  %v1623_v53 = vadd.f32 %v1070_v47, %v1069_v46  ;;  %v963_v55 = vld [vmem:[%s6619_s13 + $0x730] sm:$0xff] }
 0x1f9   : > { %1612 = vadd.xlane.f32.xlu0 %v1611_v42  ;;  %v1377_v54 = vadd.f32 %v1376_v43, %v852_v32  ;;  %v1500_v56 = vadd.f32 %v1499_v44, %v961_v40  ;;  %v1436_v57 = vadd.f32 %v1435_v45, %v904_v41  ;;  %v1072_v58 = vld [vmem:[%s6619_s13 + $0xa98] sm:$0xff]  ;;  %v1013_v59 = vld [vmem:[%s6619_s13 + $0x8c0] sm:$0xff]  ;;  %v906_v61 = vld [vmem:[%s6619_s13 + $0x568] sm:$0xff] }
 0x1fa   : > { %v1304_v60 = vadd.f32 %v1303_v50, %v787_v38  ;;  %v1624_v62 = vadd.f32 %v1623_v53, %v1071_v48  ;;  %v1014_v63 = vld [vmem:[%s6619_s13 + $0x8c8] sm:$0xff]  ;;  %v1015_v0 = vld [vmem:[%s6619_s13 + $0x8d0] sm:$0xff]  ;;  %v964_v1 = vld [vmem:[%s6619_s13 + $0x738] sm:$0xff] }
 0x1fb   : > { %1378 = vadd.xlane.f32.xlu1 %v1377_v54  ;;  %v1501_v2 = vadd.f32 %v1500_v56, %v962_v51  ;;  %v907_v3 = vld [vmem:[%s6619_s13 + $0x570] sm:$0xff]  ;;  %v1437_v4 = vadd.f32 %v1436_v57, %v905_v52  ;;  %v1073_v5 = vld [vmem:[%s6619_s13 + $0xaa0] sm:$0xff]  ;;  %v1560_v6 = vadd.f32 %v1014_v63, %v1013_v59  ;;  %v1016_v9 = vld [vmem:[%s6619_s13 + $0x8d8] sm:$0xff] }
 0x1fc   : > { %v1305_v7 = vadd.f32 %v1304_v60, %v788_v49  ;;  %v1625_v8 = vadd.f32 %v1624_v62, %v1072_v58  ;;  %v1125_v10 = vld [vmem:[%s6619_s13 + $0xc40] sm:$0xff]  ;;  %v1126_v11 = vld [vmem:[%s6619_s13 + $0xc48] sm:$0xff]  ;;  %v908_v13 = vld [vmem:[%s6619_s13 + $0x578] sm:$0xff] }
 0x1fd   : > { %v1502_v12 = vadd.f32 %v1501_v2, %v963_v55  ;;  %v1438_v14 = vadd.f32 %v1437_v4, %v906_v61  ;;  %v1074_v15 = vld [vmem:[%s6619_s13 + $0xaa8] sm:$0xff]  ;;  %v1561_v16 = vadd.f32 %v1560_v6, %v1015_v0  ;;  %v1127_v17 = vld [vmem:[%s6619_s13 + $0xc50] sm:$0xff]  ;;  %v1686_v18 = vadd.f32 %v1126_v11, %v1125_v10  ;;  %v1017_v21 = vld [vmem:[%s6619_s13 + $0x8e0] sm:$0xff] }
 0x1fe   : > { %1306 = vadd.xlane.f32.xlu0 %v1305_v7  ;;  %v1075_v19 = vld [vmem:[%s6619_s13 + $0xab0] sm:$0xff]  ;;  %v1626_v20 = vadd.f32 %v1625_v8, %v1073_v5  ;;  %v1128_v22 = vld [vmem:[%s6619_s13 + $0xc58] sm:$0xff]  ;;  %v1117_v27 = vld [vmem:[%s6619_s13 + $0xc00] sm:$0xff] }
 0x1ff   : > { %v1503_v23 = vadd.f32 %v1502_v12, %v964_v1  ;;  %v1439_v24 = vadd.f32 %v1438_v14, %v907_v3  ;;  %v1562_v25 = vadd.f32 %v1561_v16, %v1016_v9  ;;  %v1687_v26 = vadd.f32 %v1686_v18, %v1127_v17  ;;  %v1118_v28 = vld [vmem:[%s6619_s13 + $0xc08] sm:$0xff]  ;;  %v1119_v29 = vld [vmem:[%s6619_s13 + $0xc10] sm:$0xff]  ;;  %v1076_v30 = vld [vmem:[%s6619_s13 + $0xab8] sm:$0xff] }
 0x200   : > { %v1627_v31 = vadd.f32 %v1626_v20, %v1074_v15  ;;  %v1018_v32 = vld [vmem:[%s6619_s13 + $0x8e8] sm:$0xff]  ;;  %v1129_v33 = vld [vmem:[%s6619_s13 + $0xc60] sm:$0xff]  ;;  %v1677_v34 = vadd.f32 %v1118_v28, %v1117_v27  ;;  %v1019_v36 = vld [vmem:[%s6619_s13 + $0x8f0] sm:$0xff] }
 0x201   : > { %1504 = vadd.xlane.f32.xlu1 %v1503_v23  ;;  %v1440_v35 = vadd.f32 %v1439_v24, %v908_v13  ;;  %v1563_v37 = vadd.f32 %v1562_v25, %v1017_v21  ;;  %v1688_v38 = vadd.f32 %v1687_v26, %v1128_v22  ;;  %v1120_v39 = vld [vmem:[%s6619_s13 + $0xc18] sm:$0xff]  ;;  %v853_v40 = vld [vmem:[%s6619_s13 + $0x3c0] sm:$0xff]  ;;  %v1130_v42 = vld [vmem:[%s6619_s13 + $0xc68] sm:$0xff] }
 0x202   : > { %v1628_v41 = vadd.f32 %v1627_v31, %v1075_v19  ;;  %v1678_v43 = vadd.f32 %v1677_v34, %v1119_v29  ;;  %v854_v44 = vld [vmem:[%s6619_s13 + $0x3c8] sm:$0xff]  ;;  %v855_v45 = vld [vmem:[%s6619_s13 + $0x3d0] sm:$0xff]  ;;  %v1020_v46 = vld [vmem:[%s6619_s13 + $0x8f8] sm:$0xff] }
 0x203   : > { %1441 = vadd.xlane.f32.xlu0 %v1440_v35  ;;  %v1564_v47 = vadd.f32 %v1563_v37, %v1018_v32  ;;  %v1131_v48 = vld [vmem:[%s6619_s13 + $0xc70] sm:$0xff]  ;;  %v1689_v49 = vadd.f32 %v1688_v38, %v1129_v33  ;;  %v1121_v50 = vld [vmem:[%s6619_s13 + $0xc20] sm:$0xff]  ;;  %v1380_v51 = vadd.f32 %v854_v44, %v853_v40  ;;  %v856_v54 = vld [vmem:[%s6619_s13 + $0x3d8] sm:$0xff] }
 0x204   : > { %v1629_v52 = vadd.f32 %v1628_v41, %v1076_v30  ;;  %v1679_v53 = vadd.f32 %v1678_v43, %v1120_v39  ;;  %v789_v55 = vld [vmem:[%s6619_s13 + $0x1c0] sm:$0xff]  ;;  %v790_v56 = vld [vmem:[%s6619_s13 + $0x1c8] sm:$0xff]  ;;  %v1132_v58 = vld [vmem:[%s6619_s13 + $0xc78] sm:$0xff] }
 0x205   : > { %v1565_v57 = vadd.f32 %v1564_v47, %v1019_v36  ;;  %v1690_v59 = vadd.f32 %v1689_v49, %v1130_v42  ;;  %v1122_v60 = vld [vmem:[%s6619_s13 + $0xc28] sm:$0xff]  ;;  %v1381_v61 = vadd.f32 %v1380_v51, %v855_v45  ;;  %v791_v62 = vld [vmem:[%s6619_s13 + $0x1d0] sm:$0xff]  ;;  %v1308_v63 = vadd.f32 %v790_v56, %v789_v55  ;;  %v857_v2 = vld [vmem:[%s6619_s13 + $0x3e0] sm:$0xff] }
 0x206   : > { %1630 = vadd.xlane.f32.xlu1 %v1629_v52  ;;  %v1123_v0 = vld [vmem:[%s6619_s13 + $0xc30] sm:$0xff]  ;;  %v1680_v1 = vadd.f32 %v1679_v53, %v1121_v50  ;;  %v792_v3 = vld [vmem:[%s6619_s13 + $0x1d8] sm:$0xff]  ;;  %v965_v8 = vld [vmem:[%s6619_s13 + $0x740] sm:$0xff] }
 0x207   : > { %v1566_v4 = vadd.f32 %v1565_v57, %v1020_v46  ;;  %v1691_v5 = vadd.f32 %v1690_v59, %v1131_v48  ;;  %v1382_v6 = vadd.f32 %v1381_v61, %v856_v54  ;;  %v1309_v7 = vadd.f32 %v1308_v63, %v791_v62  ;;  %v966_v9 = vld [vmem:[%s6619_s13 + $0x748] sm:$0xff]  ;;  %v967_v10 = vld [vmem:[%s6619_s13 + $0x750] sm:$0xff]  ;;  %v1124_v11 = vld [vmem:[%s6619_s13 + $0xc38] sm:$0xff] }
 0x208   : > { %v1681_v12 = vadd.f32 %v1680_v1, %v1122_v60  ;;  %v858_v13 = vld [vmem:[%s6619_s13 + $0x3e8] sm:$0xff]  ;;  %v793_v14 = vld [vmem:[%s6619_s13 + $0x1e0] sm:$0xff]  ;;  %v1506_v15 = vadd.f32 %v966_v9, %v965_v8  ;;  %v859_v17 = vld [vmem:[%s6619_s13 + $0x3f0] sm:$0xff] }
 0x209   : > { %1567 = vadd.xlane.f32.xlu0 %v1566_v4  ;;  %v1692_v16 = vadd.f32 %v1691_v5, %v1132_v58  ;;  %v1383_v18 = vadd.f32 %v1382_v6, %v857_v2  ;;  %v1310_v19 = vadd.f32 %v1309_v7, %v792_v3  ;;  %v968_v20 = vld [vmem:[%s6619_s13 + $0x758] sm:$0xff]  ;;  %v909_v21 = vld [vmem:[%s6619_s13 + $0x580] sm:$0xff]  ;;  %v794_v23 = vld [vmem:[%s6619_s13 + $0x1e8] sm:$0xff] }
 0x20a   : > { %v1682_v22 = vadd.f32 %v1681_v12, %v1123_v0  ;;  %v1507_v24 = vadd.f32 %v1506_v15, %v967_v10  ;;  %v910_v25 = vld [vmem:[%s6619_s13 + $0x588] sm:$0xff]  ;;  %v911_v26 = vld [vmem:[%s6619_s13 + $0x590] sm:$0xff]  ;;  %v860_v27 = vld [vmem:[%s6619_s13 + $0x3f8] sm:$0xff] }
 0x20b   : > { %1693 = vadd.xlane.f32.xlu1 %v1692_v16  ;;  %v1384_v28 = vadd.f32 %v1383_v18, %v858_v13  ;;  %v795_v29 = vld [vmem:[%s6619_s13 + $0x1f0] sm:$0xff]  ;;  %v1311_v30 = vadd.f32 %v1310_v19, %v793_v14  ;;  %v969_v31 = vld [vmem:[%s6619_s13 + $0x760] sm:$0xff]  ;;  %v1443_v32 = vadd.f32 %v910_v25, %v909_v21  ;;  %v912_v35 = vld [vmem:[%s6619_s13 + $0x598] sm:$0xff] }
 0x20c   : > { %v1683_v33 = vadd.f32 %v1682_v22, %v1124_v11  ;;  %v1508_v34 = vadd.f32 %v1507_v24, %v968_v20  ;;  %v1077_v36 = vld [vmem:[%s6619_s13 + $0xac0] sm:$0xff]  ;;  %v1078_v37 = vld [vmem:[%s6619_s13 + $0xac8] sm:$0xff]  ;;  %v796_v39 = vld [vmem:[%s6619_s13 + $0x1f8] sm:$0xff] }
 0x20d   : > { %v1385_v38 = vadd.f32 %v1384_v28, %v859_v17  ;;  %v1312_v40 = vadd.f32 %v1311_v30, %v794_v23  ;;  %v970_v41 = vld [vmem:[%s6619_s13 + $0x768] sm:$0xff]  ;;  %v1444_v42 = vadd.f32 %v1443_v32, %v911_v26  ;;  %v1079_v43 = vld [vmem:[%s6619_s13 + $0xad0] sm:$0xff]  ;;  %v1632_v44 = vadd.f32 %v1078_v37, %v1077_v36  ;;  %v913_v47 = vld [vmem:[%s6619_s13 + $0x5a0] sm:$0xff] }
 0x20e   : > { %1684 = vadd.xlane.f32.xlu0 %v1683_v33  ;;  %v971_v45 = vld [vmem:[%s6619_s13 + $0x770] sm:$0xff]  ;;  %v1509_v46 = vadd.f32 %v1508_v34, %v969_v31  ;;  %v1080_v48 = vld [vmem:[%s6619_s13 + $0xad8] sm:$0xff]  ;;  %v1021_v53 = vld [vmem:[%s6619_s13 + $0x900] sm:$0xff] }
 0x20f   : > { %v1386_v49 = vadd.f32 %v1385_v38, %v860_v27  ;;  %v1313_v50 = vadd.f32 %v1312_v40, %v795_v29  ;;  %v1445_v51 = vadd.f32 %v1444_v42, %v912_v35  ;;  %v1633_v52 = vadd.f32 %v1632_v44, %v1079_v43  ;;  %v1022_v54 = vld [vmem:[%s6619_s13 + $0x908] sm:$0xff]  ;;  %v1023_v55 = vld [vmem:[%s6619_s13 + $0x910] sm:$0xff]  ;;  %v972_v56 = vld [vmem:[%s6619_s13 + $0x778] sm:$0xff] }
 0x210   : > { %v1510_v57 = vadd.f32 %v1509_v46, %v970_v41  ;;  %v914_v58 = vld [vmem:[%s6619_s13 + $0x5a8] sm:$0xff]  ;;  %v1081_v59 = vld [vmem:[%s6619_s13 + $0xae0] sm:$0xff]  ;;  %v1569_v60 = vadd.f32 %v1022_v54, %v1021_v53  ;;  %v915_v62 = vld [vmem:[%s6619_s13 + $0x5b0] sm:$0xff] }
 0x211   : > { %1387 = vadd.xlane.f32.xlu1 %v1386_v49  ;;  %v1314_v61 = vadd.f32 %v1313_v50, %v796_v39  ;;  %v1446_v63 = vadd.f32 %v1445_v51, %v913_v47  ;;  %v1634_v0 = vadd.f32 %v1633_v52, %v1080_v48  ;;  %v1024_v1 = vld [vmem:[%s6619_s13 + $0x918] sm:$0xff]  ;;  %v1181_v2 = vld [vmem:[%s6619_s13 + $0xe00] sm:$0xff]  ;;  %v1082_v4 = vld [vmem:[%s6619_s13 + $0xae8] sm:$0xff] }
 0x212   : > { %v1511_v3 = vadd.f32 %v1510_v57, %v971_v45  ;;  %v1570_v5 = vadd.f32 %v1569_v60, %v1023_v55  ;;  %v1182_v6 = vld [vmem:[%s6619_s13 + $0xe08] sm:$0xff]  ;;  %v1183_v7 = vld [vmem:[%s6619_s13 + $0xe10] sm:$0xff]  ;;  %v916_v8 = vld [vmem:[%s6619_s13 + $0x5b8] sm:$0xff] }
 0x213   : > { %1315 = vadd.xlane.f32.xlu0 %v1314_v61  ;;  %v1447_v9 = vadd.f32 %v1446_v63, %v914_v58  ;;  %v1083_v10 = vld [vmem:[%s6619_s13 + $0xaf0] sm:$0xff]  ;;  %v1635_v11 = vadd.f32 %v1634_v0, %v1081_v59  ;;  %v1025_v12 = vld [vmem:[%s6619_s13 + $0x920] sm:$0xff]  ;;  %v1749_v13 = vadd.f32 %v1182_v6, %v1181_v2  ;;  %v1184_v16 = vld [vmem:[%s6619_s13 + $0xe18] sm:$0xff] }
 0x214   : > { %v1512_v14 = vadd.f32 %v1511_v3, %v972_v56  ;;  %v1571_v15 = vadd.f32 %v1570_v5, %v1024_v1  ;;  %v1133_v17 = vld [vmem:[%s6619_s13 + $0xc80] sm:$0xff]  ;;  %v1134_v18 = vld [vmem:[%s6619_s13 + $0xc88] sm:$0xff]  ;;  %v1084_v20 = vld [vmem:[%s6619_s13 + $0xaf8] sm:$0xff] }
 0x215   : > { %v1448_v19 = vadd.f32 %v1447_v9, %v915_v62  ;;  %v1636_v21 = vadd.f32 %v1635_v11, %v1082_v4  ;;  %v1026_v22 = vld [vmem:[%s6619_s13 + $0x928] sm:$0xff]  ;;  %v1750_v23 = vadd.f32 %v1749_v13, %v1183_v7  ;;  %v1135_v24 = vld [vmem:[%s6619_s13 + $0xc90] sm:$0xff]  ;;  %v1695_v25 = vadd.f32 %v1134_v18, %v1133_v17  ;;  %v1185_v28 = vld [vmem:[%s6619_s13 + $0xe20] sm:$0xff] }
 0x216   : > { %1513 = vadd.xlane.f32.xlu1 %v1512_v14  ;;  %v1027_v26 = vld [vmem:[%s6619_s13 + $0x930] sm:$0xff]  ;;  %v1572_v27 = vadd.f32 %v1571_v15, %v1025_v12  ;;  %v1136_v29 = vld [vmem:[%s6619_s13 + $0xc98] sm:$0xff]  ;;  %v917_v34 = vld [vmem:[%s6619_s13 + $0x5c0] sm:$0xff] }
 0x217   : > { %v1449_v30 = vadd.f32 %v1448_v19, %v916_v8  ;;  %v1637_v31 = vadd.f32 %v1636_v21, %v1083_v10  ;;  %v1751_v32 = vadd.f32 %v1750_v23, %v1184_v16  ;;  %v1696_v33 = vadd.f32 %v1695_v25, %v1135_v24  ;;  %v918_v35 = vld [vmem:[%s6619_s13 + $0x5c8] sm:$0xff]  ;;  %v919_v36 = vld [vmem:[%s6619_s13 + $0x5d0] sm:$0xff]  ;;  %v1028_v37 = vld [vmem:[%s6619_s13 + $0x938] sm:$0xff] }
 0x218   : > { %v1573_v38 = vadd.f32 %v1572_v27, %v1026_v22  ;;  %v1186_v39 = vld [vmem:[%s6619_s13 + $0xe28] sm:$0xff]  ;;  %v1137_v40 = vld [vmem:[%s6619_s13 + $0xca0] sm:$0xff]  ;;  %v1452_v41 = vadd.f32 %v918_v35, %v917_v34  ;;  %v1187_v43 = vld [vmem:[%s6619_s13 + $0xe30] sm:$0xff] }
 0x219   : > { %1450 = vadd.xlane.f32.xlu0 %v1449_v30  ;;  %v1638_v42 = vadd.f32 %v1637_v31, %v1084_v20  ;;  %v1752_v44 = vadd.f32 %v1751_v32, %v1185_v28  ;;  %v1697_v45 = vadd.f32 %v1696_v33, %v1136_v29  ;;  %v920_v46 = vld [vmem:[%s6619_s13 + $0x5d8] sm:$0xff]  ;;  %v1189_v47 = vld [vmem:[%s6619_s13 + $0xe40] sm:$0xff]  ;;  %v1138_v49 = vld [vmem:[%s6619_s13 + $0xca8] sm:$0xff] }
 0x21a   : > { %v1574_v48 = vadd.f32 %v1573_v38, %v1027_v26  ;;  %v1453_v50 = vadd.f32 %v1452_v41, %v919_v36  ;;  %v1190_v51 = vld [vmem:[%s6619_s13 + $0xe48] sm:$0xff]  ;;  %v1191_v52 = vld [vmem:[%s6619_s13 + $0xe50] sm:$0xff]  ;;  %v1188_v53 = vld [vmem:[%s6619_s13 + $0xe38] sm:$0xff] }
 0x21b   : > { %1639 = vadd.xlane.f32.xlu1 %v1638_v42  ;;  %v1753_v54 = vadd.f32 %v1752_v44, %v1186_v39  ;;  %v1139_v55 = vld [vmem:[%s6619_s13 + $0xcb0] sm:$0xff]  ;;  %v1698_v56 = vadd.f32 %v1697_v45, %v1137_v40  ;;  %v921_v57 = vld [vmem:[%s6619_s13 + $0x5e0] sm:$0xff]  ;;  %v1758_v58 = vadd.f32 %v1190_v51, %v1189_v47  ;;  %v1192_v61 = vld [vmem:[%s6619_s13 + $0xe58] sm:$0xff] }
 0x21c   : > { %v1575_v59 = vadd.f32 %v1574_v48, %v1028_v37  ;;  %v1454_v60 = vadd.f32 %v1453_v50, %v920_v46  ;;  %v1029_v62 = vld [vmem:[%s6619_s13 + $0x940] sm:$0xff]  ;;  %v1030_v63 = vld [vmem:[%s6619_s13 + $0x948] sm:$0xff]  ;;  %v1140_v1 = vld [vmem:[%s6619_s13 + $0xcb8] sm:$0xff] }
 0x21d   : > { %v1754_v0 = vadd.f32 %v1753_v54, %v1187_v43  ;;  %v1699_v2 = vadd.f32 %v1698_v56, %v1138_v49  ;;  %v922_v3 = vld [vmem:[%s6619_s13 + $0x5e8] sm:$0xff]  ;;  %v1759_v4 = vadd.f32 %v1758_v58, %v1191_v52  ;;  %v1031_v5 = vld [vmem:[%s6619_s13 + $0x950] sm:$0xff]  ;;  %v1578_v6 = vadd.f32 %v1030_v63, %v1029_v62  ;;  %v1193_v9 = vld [vmem:[%s6619_s13 + $0xe60] sm:$0xff] }
 0x21e   : > { %1576 = vadd.xlane.f32.xlu0 %v1575_v59  ;;  %v923_v7 = vld [vmem:[%s6619_s13 + $0x5f0] sm:$0xff]  ;;  %v1455_v8 = vadd.f32 %v1454_v60, %v921_v57  ;;  %v1032_v10 = vld [vmem:[%s6619_s13 + $0x958] sm:$0xff]  ;;  %v973_v15 = vld [vmem:[%s6619_s13 + $0x780] sm:$0xff] }
 0x21f   : > { %v1755_v11 = vadd.f32 %v1754_v0, %v1188_v53  ;;  %v1700_v12 = vadd.f32 %v1699_v2, %v1139_v55  ;;  %v1760_v13 = vadd.f32 %v1759_v4, %v1192_v61  ;;  %v1579_v14 = vadd.f32 %v1578_v6, %v1031_v5  ;;  %v974_v16 = vld [vmem:[%s6619_s13 + $0x788] sm:$0xff]  ;;  %v975_v17 = vld [vmem:[%s6619_s13 + $0x790] sm:$0xff]  ;;  %v924_v18 = vld [vmem:[%s6619_s13 + $0x5f8] sm:$0xff] }
 0x220   : > { %v1456_v19 = vadd.f32 %v1455_v8, %v922_v3  ;;  %v1194_v20 = vld [vmem:[%s6619_s13 + $0xe68] sm:$0xff]  ;;  %v1033_v21 = vld [vmem:[%s6619_s13 + $0x960] sm:$0xff]  ;;  %v1515_v22 = vadd.f32 %v974_v16, %v973_v15  ;;  %v1195_v24 = vld [vmem:[%s6619_s13 + $0xe70] sm:$0xff] }
 0x221   : > { %1756 = vadd.xlane.f32.xlu1 %v1755_v11  ;;  %v1701_v23 = vadd.f32 %v1700_v12, %v1140_v1  ;;  %v1761_v25 = vadd.f32 %v1760_v13, %v1193_v9  ;;  %v1580_v26 = vadd.f32 %v1579_v14, %v1032_v10  ;;  %v976_v27 = vld [vmem:[%s6619_s13 + $0x798] sm:$0xff]  ;;  %v1141_v28 = vld [vmem:[%s6619_s13 + $0xcc0] sm:$0xff]  ;;  %v1034_v30 = vld [vmem:[%s6619_s13 + $0x968] sm:$0xff] }
 0x222   : > { %v1457_v29 = vadd.f32 %v1456_v19, %v923_v7  ;;  %v1516_v31 = vadd.f32 %v1515_v22, %v975_v17  ;;  %v1142_v32 = vld [vmem:[%s6619_s13 + $0xcc8] sm:$0xff]  ;;  %v1143_v33 = vld [vmem:[%s6619_s13 + $0xcd0] sm:$0xff]  ;;  %v1196_v34 = vld [vmem:[%s6619_s13 + $0xe78] sm:$0xff] }
 0x223   : > { %1702 = vadd.xlane.f32.xlu0 %v1701_v23  ;;  %v1762_v35 = vadd.f32 %v1761_v25, %v1194_v20  ;;  %v1035_v36 = vld [vmem:[%s6619_s13 + $0x970] sm:$0xff]  ;;  %v1581_v37 = vadd.f32 %v1580_v26, %v1033_v21  ;;  %v977_v38 = vld [vmem:[%s6619_s13 + $0x7a0] sm:$0xff]  ;;  %v1704_v39 = vadd.f32 %v1142_v32, %v1141_v28  ;;  %v1144_v42 = vld [vmem:[%s6619_s13 + $0xcd8] sm:$0xff] }
 0x224   : > { %v1458_v40 = vadd.f32 %v1457_v29, %v924_v18  ;;  %v1517_v41 = vadd.f32 %v1516_v31, %v976_v27  ;;  %v1085_v43 = vld [vmem:[%s6619_s13 + $0xb00] sm:$0xff]  ;;  %v1086_v44 = vld [vmem:[%s6619_s13 + $0xb08] sm:$0xff]  ;;  %v1036_v46 = vld [vmem:[%s6619_s13 + $0x978] sm:$0xff] }
 0x225   : > { %v1763_v45 = vadd.f32 %v1762_v35, %v1195_v24  ;;  %v1582_v47 = vadd.f32 %v1581_v37, %v1034_v30  ;;  %v978_v48 = vld [vmem:[%s6619_s13 + $0x7a8] sm:$0xff]  ;;  %v1705_v49 = vadd.f32 %v1704_v39, %v1143_v33  ;;  %v1087_v50 = vld [vmem:[%s6619_s13 + $0xb10] sm:$0xff]  ;;  %v1641_v51 = vadd.f32 %v1086_v44, %v1085_v43  ;;  %v1145_v54 = vld [vmem:[%s6619_s13 + $0xce0] sm:$0xff] }
 0x226   : > { %1459 = vadd.xlane.f32.xlu1 %v1458_v40  ;;  %v979_v52 = vld [vmem:[%s6619_s13 + $0x7b0] sm:$0xff]  ;;  %v1518_v53 = vadd.f32 %v1517_v41, %v977_v38  ;;  %v1088_v55 = vld [vmem:[%s6619_s13 + $0xb18] sm:$0xff]  ;;  %v981_v60 = vld [vmem:[%s6619_s13 + $0x7c0] sm:$0xff] }
 0x227   : > { %v1764_v56 = vadd.f32 %v1763_v45, %v1196_v34  ;;  %v1583_v57 = vadd.f32 %v1582_v47, %v1035_v36  ;;  %v1706_v58 = vadd.f32 %v1705_v49, %v1144_v42  ;;  %v1642_v59 = vadd.f32 %v1641_v51, %v1087_v50  ;;  %v982_v61 = vld [vmem:[%s6619_s13 + $0x7c8] sm:$0xff]  ;;  %v983_v62 = vld [vmem:[%s6619_s13 + $0x7d0] sm:$0xff]  ;;  %v980_v63 = vld [vmem:[%s6619_s13 + $0x7b8] sm:$0xff] }
 0x228   : > { %v1519_v0 = vadd.f32 %v1518_v53, %v978_v48  ;;  %v1146_v1 = vld [vmem:[%s6619_s13 + $0xce8] sm:$0xff]  ;;  %v1089_v2 = vld [vmem:[%s6619_s13 + $0xb20] sm:$0xff]  ;;  %v1524_v3 = vadd.f32 %v982_v61, %v981_v60  ;;  %v1147_v5 = vld [vmem:[%s6619_s13 + $0xcf0] sm:$0xff] }
 0x229   : > { %1765 = vadd.xlane.f32.xlu0 %v1764_v56  ;;  %v1584_v4 = vadd.f32 %v1583_v57, %v1036_v46  ;;  %v1707_v6 = vadd.f32 %v1706_v58, %v1145_v54  ;;  %v1643_v7 = vadd.f32 %v1642_v59, %v1088_v55  ;;  %v984_v8 = vld [vmem:[%s6619_s13 + $0x7d8] sm:$0xff]  ;;  %v1197_v9 = vld [vmem:[%s6619_s13 + $0xe80] sm:$0xff]  ;;  %v1090_v11 = vld [vmem:[%s6619_s13 + $0xb28] sm:$0xff] }
 0x22a   : > { %v1520_v10 = vadd.f32 %v1519_v0, %v979_v52  ;;  %v1525_v12 = vadd.f32 %v1524_v3, %v983_v62  ;;  %v1198_v13 = vld [vmem:[%s6619_s13 + $0xe88] sm:$0xff]  ;;  %v1199_v14 = vld [vmem:[%s6619_s13 + $0xe90] sm:$0xff]  ;;  %v1148_v15 = vld [vmem:[%s6619_s13 + $0xcf8] sm:$0xff] }
 0x22b   : > { %1585 = vadd.xlane.f32.xlu1 %v1584_v4  ;;  %v1708_v16 = vadd.f32 %v1707_v6, %v1146_v1  ;;  %v1091_v17 = vld [vmem:[%s6619_s13 + $0xb30] sm:$0xff]  ;;  %v1644_v18 = vadd.f32 %v1643_v7, %v1089_v2  ;;  %v985_v19 = vld [vmem:[%s6619_s13 + $0x7e0] sm:$0xff]  ;;  %v1767_v20 = vadd.f32 %v1198_v13, %v1197_v9  ;;  %v1200_v23 = vld [vmem:[%s6619_s13 + $0xe98] sm:$0xff] }
 0x22c   : > { %v1521_v21 = vadd.f32 %v1520_v10, %v980_v63  ;;  %v1526_v22 = vadd.f32 %v1525_v12, %v984_v8  ;;  %v1093_v24 = vld [vmem:[%s6619_s13 + $0xb40] sm:$0xff]  ;;  %v1094_v25 = vld [vmem:[%s6619_s13 + $0xb48] sm:$0xff]  ;;  %v1092_v27 = vld [vmem:[%s6619_s13 + $0xb38] sm:$0xff] }
 0x22d   : > { %v1709_v26 = vadd.f32 %v1708_v16, %v1147_v5  ;;  %v1645_v28 = vadd.f32 %v1644_v18, %v1090_v11  ;;  %v986_v29 = vld [vmem:[%s6619_s13 + $0x7e8] sm:$0xff]  ;;  %v1768_v30 = vadd.f32 %v1767_v20, %v1199_v14  ;;  %v1095_v31 = vld [vmem:[%s6619_s13 + $0xb50] sm:$0xff]  ;;  %v1650_v32 = vadd.f32 %v1094_v25, %v1093_v24  ;;  %v1201_v35 = vld [vmem:[%s6619_s13 + $0xea0] sm:$0xff] }
 0x22e   : > { %1522 = vadd.xlane.f32.xlu0 %v1521_v21  ;;  %v987_v33 = vld [vmem:[%s6619_s13 + $0x7f0] sm:$0xff]  ;;  %v1527_v34 = vadd.f32 %v1526_v22, %v985_v19  ;;  %v1096_v36 = vld [vmem:[%s6619_s13 + $0xb58] sm:$0xff]  ;;  %v1037_v41 = vld [vmem:[%s6619_s13 + $0x980] sm:$0xff] }
 0x22f   : > { %v1710_v37 = vadd.f32 %v1709_v26, %v1148_v15  ;;  %v1646_v38 = vadd.f32 %v1645_v28, %v1091_v17  ;;  %v1769_v39 = vadd.f32 %v1768_v30, %v1200_v23  ;;  %v1651_v40 = vadd.f32 %v1650_v32, %v1095_v31  ;;  %v1038_v42 = vld [vmem:[%s6619_s13 + $0x988] sm:$0xff]  ;;  %v1039_v43 = vld [vmem:[%s6619_s13 + $0x990] sm:$0xff]  ;;  %v988_v44 = vld [vmem:[%s6619_s13 + $0x7f8] sm:$0xff] }
 0x230   : > { %v1528_v45 = vadd.f32 %v1527_v34, %v986_v29  ;;  %v1202_v46 = vld [vmem:[%s6619_s13 + $0xea8] sm:$0xff]  ;;  %v1097_v47 = vld [vmem:[%s6619_s13 + $0xb60] sm:$0xff]  ;;  %v1587_v48 = vadd.f32 %v1038_v42, %v1037_v41  ;;  %v1203_v50 = vld [vmem:[%s6619_s13 + $0xeb0] sm:$0xff] }
 0x231   : > { %1711 = vadd.xlane.f32.xlu1 %v1710_v37  ;;  %v1647_v49 = vadd.f32 %v1646_v38, %v1092_v27  ;;  %v1770_v51 = vadd.f32 %v1769_v39, %v1201_v35  ;;  %v1652_v52 = vadd.f32 %v1651_v40, %v1096_v36  ;;  %v1040_v53 = vld [vmem:[%s6619_s13 + $0x998] sm:$0xff]  ;;  %v1205_v54 = vld [vmem:[%s6619_s13 + $0xec0] sm:$0xff]  ;;  %v1098_v56 = vld [vmem:[%s6619_s13 + $0xb68] sm:$0xff] }
 0x232   : > { %v1529_v55 = vadd.f32 %v1528_v45, %v987_v33  ;;  %v1588_v57 = vadd.f32 %v1587_v48, %v1039_v43  ;;  %v1206_v58 = vld [vmem:[%s6619_s13 + $0xec8] sm:$0xff]  ;;  %v1207_v59 = vld [vmem:[%s6619_s13 + $0xed0] sm:$0xff]  ;;  %v1204_v60 = vld [vmem:[%s6619_s13 + $0xeb8] sm:$0xff] }
 0x233   : > { %1648 = vadd.xlane.f32.xlu0 %v1647_v49  ;;  %v1771_v61 = vadd.f32 %v1770_v51, %v1202_v46  ;;  %v1099_v62 = vld [vmem:[%s6619_s13 + $0xb70] sm:$0xff]  ;;  %v1653_v63 = vadd.f32 %v1652_v52, %v1097_v47  ;;  %v1041_v0 = vld [vmem:[%s6619_s13 + $0x9a0] sm:$0xff]  ;;  %v1776_v1 = vadd.f32 %v1206_v58, %v1205_v54  ;;  %v1208_v4 = vld [vmem:[%s6619_s13 + $0xed8] sm:$0xff] }
 0x234   : > { %v1530_v2 = vadd.f32 %v1529_v55, %v988_v44  ;;  %v1589_v3 = vadd.f32 %v1588_v57, %v1040_v53  ;;  %v1149_v5 = vld [vmem:[%s6619_s13 + $0xd00] sm:$0xff]  ;;  %v1150_v6 = vld [vmem:[%s6619_s13 + $0xd08] sm:$0xff]  ;;  %v1100_v8 = vld [vmem:[%s6619_s13 + $0xb78] sm:$0xff] }
 0x235   : > { %v1772_v7 = vadd.f32 %v1771_v61, %v1203_v50  ;;  %v1654_v9 = vadd.f32 %v1653_v63, %v1098_v56  ;;  %v1042_v10 = vld [vmem:[%s6619_s13 + $0x9a8] sm:$0xff]  ;;  %v1777_v11 = vadd.f32 %v1776_v1, %v1207_v59  ;;  %v1151_v12 = vld [vmem:[%s6619_s13 + $0xd10] sm:$0xff]  ;;  %v1713_v13 = vadd.f32 %v1150_v6, %v1149_v5  ;;  %v1209_v16 = vld [vmem:[%s6619_s13 + $0xee0] sm:$0xff] }
 0x236   : > { %1531 = vadd.xlane.f32.xlu1 %v1530_v2  ;;  %v1043_v14 = vld [vmem:[%s6619_s13 + $0x9b0] sm:$0xff]  ;;  %v1590_v15 = vadd.f32 %v1589_v3, %v1041_v0  ;;  %v1152_v17 = vld [vmem:[%s6619_s13 + $0xd18] sm:$0xff]  ;;  %v1101_v22 = vld [vmem:[%s6619_s13 + $0xb80] sm:$0xff] }
 0x237   : > { %v1773_v18 = vadd.f32 %v1772_v7, %v1204_v60  ;;  %v1655_v19 = vadd.f32 %v1654_v9, %v1099_v62  ;;  %v1778_v20 = vadd.f32 %v1777_v11, %v1208_v4  ;;  %v1714_v21 = vadd.f32 %v1713_v13, %v1151_v12  ;;  %v1102_v23 = vld [vmem:[%s6619_s13 + $0xb88] sm:$0xff]  ;;  %v1103_v24 = vld [vmem:[%s6619_s13 + $0xb90] sm:$0xff]  ;;  %v1044_v25 = vld [vmem:[%s6619_s13 + $0x9b8] sm:$0xff] }
 0x238   : > { %v1591_v26 = vadd.f32 %v1590_v15, %v1042_v10  ;;  %v1210_v27 = vld [vmem:[%s6619_s13 + $0xee8] sm:$0xff]  ;;  %v1153_v28 = vld [vmem:[%s6619_s13 + $0xd20] sm:$0xff]  ;;  %v1659_v29 = vadd.f32 %v1102_v23, %v1101_v22  ;;  %v1211_v31 = vld [vmem:[%s6619_s13 + $0xef0] sm:$0xff] }
 0x239   : > { %1774 = vadd.xlane.f32.xlu0 %v1773_v18  ;;  %v1656_v30 = vadd.f32 %v1655_v19, %v1100_v8  ;;  %v1779_v32 = vadd.f32 %v1778_v20, %v1209_v16  ;;  %v1715_v33 = vadd.f32 %v1714_v21, %v1152_v17  ;;  %v1104_v34 = vld [vmem:[%s6619_s13 + $0xb98] sm:$0xff]  ;;  %v1045_v35 = vld [vmem:[%s6619_s13 + $0x9c0] sm:$0xff]  ;;  %v1154_v37 = vld [vmem:[%s6619_s13 + $0xd28] sm:$0xff] }
 0x23a   : > { %v1592_v36 = vadd.f32 %v1591_v26, %v1043_v14  ;;  %v1660_v38 = vadd.f32 %v1659_v29, %v1103_v24  ;;  %v1046_v39 = vld [vmem:[%s6619_s13 + $0x9c8] sm:$0xff]  ;;  %v1047_v40 = vld [vmem:[%s6619_s13 + $0x9d0] sm:$0xff]  ;;  %v1212_v41 = vld [vmem:[%s6619_s13 + $0xef8] sm:$0xff] }
 0x23b   : > { %1657 = vadd.xlane.f32.xlu1 %v1656_v30  ;;  %v1780_v42 = vadd.f32 %v1779_v32, %v1210_v27  ;;  %v1155_v43 = vld [vmem:[%s6619_s13 + $0xd30] sm:$0xff]  ;;  %v1716_v44 = vadd.f32 %v1715_v33, %v1153_v28  ;;  %v1105_v45 = vld [vmem:[%s6619_s13 + $0xba0] sm:$0xff]  ;;  %v1596_v46 = vadd.f32 %v1046_v39, %v1045_v35  ;;  %v1048_v49 = vld [vmem:[%s6619_s13 + $0x9d8] sm:$0xff] }
 0x23c   : > { %v1593_v47 = vadd.f32 %v1592_v36, %v1044_v25  ;;  %v1661_v48 = vadd.f32 %v1660_v38, %v1104_v34  ;;  %v1213_v50 = vld [vmem:[%s6619_s13 + $0xf00] sm:$0xff]  ;;  %v1214_v51 = vld [vmem:[%s6619_s13 + $0xf08] sm:$0xff]  ;;  %v1156_v53 = vld [vmem:[%s6619_s13 + $0xd38] sm:$0xff] }
 0x23d   : > { %v1781_v52 = vadd.f32 %v1780_v42, %v1211_v31  ;;  %v1717_v54 = vadd.f32 %v1716_v44, %v1154_v37  ;;  %v1106_v55 = vld [vmem:[%s6619_s13 + $0xba8] sm:$0xff]  ;;  %v1597_v56 = vadd.f32 %v1596_v46, %v1047_v40  ;;  %v1215_v57 = vld [vmem:[%s6619_s13 + $0xf10] sm:$0xff]  ;;  %v1785_v58 = vadd.f32 %v1214_v51, %v1213_v50  ;;  %v1049_v61 = vld [vmem:[%s6619_s13 + $0x9e0] sm:$0xff] }
 0x23e   : > { %1594 = vadd.xlane.f32.xlu0 %v1593_v47  ;;  %v1107_v59 = vld [vmem:[%s6619_s13 + $0xbb0] sm:$0xff]  ;;  %v1662_v60 = vadd.f32 %v1661_v48, %v1105_v45  ;;  %v1216_v62 = vld [vmem:[%s6619_s13 + $0xf18] sm:$0xff]  ;;  %v1157_v3 = vld [vmem:[%s6619_s13 + $0xd40] sm:$0xff] }
 0x23f   : > { %v1782_v63 = vadd.f32 %v1781_v52, %v1212_v41  ;;  %v1718_v0 = vadd.f32 %v1717_v54, %v1155_v43  ;;  %v1598_v1 = vadd.f32 %v1597_v56, %v1048_v49  ;;  %v1786_v2 = vadd.f32 %v1785_v58, %v1215_v57  ;;  %v1158_v4 = vld [vmem:[%s6619_s13 + $0xd48] sm:$0xff]  ;;  %v1159_v5 = vld [vmem:[%s6619_s13 + $0xd50] sm:$0xff]  ;;  %v1108_v6 = vld [vmem:[%s6619_s13 + $0xbb8] sm:$0xff] }
 0x240   : > { %v1663_v7 = vadd.f32 %v1662_v60, %v1106_v55  ;;  %v1050_v8 = vld [vmem:[%s6619_s13 + $0x9e8] sm:$0xff]  ;;  %v1217_v9 = vld [vmem:[%s6619_s13 + $0xf20] sm:$0xff]  ;;  %v1722_v10 = vadd.f32 %v1158_v4, %v1157_v3  ;;  %v1051_v12 = vld [vmem:[%s6619_s13 + $0x9f0] sm:$0xff] }
 0x241   : > { %1783 = vadd.xlane.f32.xlu1 %v1782_v63  ;;  %v1719_v11 = vadd.f32 %v1718_v0, %v1156_v53  ;;  %v1599_v13 = vadd.f32 %v1598_v1, %v1049_v61  ;;  %v1787_v14 = vadd.f32 %v1786_v2, %v1216_v62  ;;  %v1160_v15 = vld [vmem:[%s6619_s13 + $0xd58] sm:$0xff]  ;;  %v1165_v16 = vld [vmem:[%s6619_s13 + $0xd80] sm:$0xff]  ;;  %v1218_v18 = vld [vmem:[%s6619_s13 + $0xf28] sm:$0xff] }
 0x242   : > { %v1664_v17 = vadd.f32 %v1663_v7, %v1107_v59  ;;  %v1723_v19 = vadd.f32 %v1722_v10, %v1159_v5  ;;  %v1166_v20 = vld [vmem:[%s6619_s13 + $0xd88] sm:$0xff]  ;;  %v1167_v21 = vld [vmem:[%s6619_s13 + $0xd90] sm:$0xff]  ;;  %v1052_v22 = vld [vmem:[%s6619_s13 + $0x9f8] sm:$0xff] }
 0x243   : > { %1720 = vadd.xlane.f32.xlu0 %v1719_v11  ;;  %v1600_v23 = vadd.f32 %v1599_v13, %v1050_v8  ;;  %v1219_v24 = vld [vmem:[%s6619_s13 + $0xf30] sm:$0xff]  ;;  %v1788_v25 = vadd.f32 %v1787_v14, %v1217_v9  ;;  %v1161_v26 = vld [vmem:[%s6619_s13 + $0xd60] sm:$0xff]  ;;  %v1731_v27 = vadd.f32 %v1166_v20, %v1165_v16  ;;  %v1168_v31 = vld [vmem:[%s6619_s13 + $0xd98] sm:$0xff] }
 0x244   : > { %v1665_v29 = vadd.f32 %v1664_v17, %v1108_v6  ;;  %v1724_v30 = vadd.f32 %v1723_v19, %v1160_v15  ;;  %v1109_v32 = vld [vmem:[%s6619_s13 + $0xbc0] sm:$0xff]  ;;  %v1110_v33 = vld [vmem:[%s6619_s13 + $0xbc8] sm:$0xff]  ;;  %v1220_v35 = vld [vmem:[%s6619_s13 + $0xf38] sm:$0xff] }
 0x245   : > { %v7123_v28 = vpop.xlane.xlu1 %1324  ;;  %v1601_v34 = vadd.f32 %v1600_v23, %v1051_v12  ;;  %v1789_v36 = vadd.f32 %v1788_v25, %v1218_v18  ;;  %v1162_v37 = vld [vmem:[%s6619_s13 + $0xd68] sm:$0xff]  ;;  %v1732_v38 = vadd.f32 %v1731_v27, %v1167_v21  ;;  %v1111_v39 = vld [vmem:[%s6619_s13 + $0xbd0] sm:$0xff]  ;;  %v1668_v40 = vadd.f32 %v1110_v33, %v1109_v32  ;;  %v1169_v43 = vld [vmem:[%s6619_s13 + $0xda0] sm:$0xff] }
 0x246   : > { %1666 = vadd.xlane.f32.xlu1 %v1665_v29  ;;  %v1163_v41 = vld [vmem:[%s6619_s13 + $0xd70] sm:$0xff]  ;;  %v1725_v42 = vadd.f32 %v1724_v30, %v1161_v26  ;;  %v1112_v44 = vld [vmem:[%s6619_s13 + $0xbd8] sm:$0xff]  ;;  %v1173_v50 = vld [vmem:[%s6619_s13 + $0xdc0] sm:$0xff] }
 0x247   : > { %v7134_v45 = vpop.xlane.xlu0 %1252  ;;  %v1602_v46 = vadd.f32 %v1601_v34, %v1052_v22  ;;  %v1790_v47 = vadd.f32 %v1789_v36, %v1219_v24  ;;  %v1733_v48 = vadd.f32 %v1732_v38, %v1168_v31  ;;  %v1669_v49 = vadd.f32 %v1668_v40, %v1111_v39  ;;  %v1174_v51 = vld [vmem:[%s6619_s13 + $0xdc8] sm:$0xff]  ;;  %v1175_v52 = vld [vmem:[%s6619_s13 + $0xdd0] sm:$0xff]  ;;  %v1164_v53 = vld [vmem:[%s6619_s13 + $0xd78] sm:$0xff] }
 0x248   : > { %v1726_v54 = vadd.f32 %v1725_v42, %v1162_v37  ;;  %v1170_v55 = vld [vmem:[%s6619_s13 + $0xda8] sm:$0xff]  ;;  %v1113_v56 = vld [vmem:[%s6619_s13 + $0xbe0] sm:$0xff]  ;;  %v1740_v57 = vadd.f32 %v1174_v51, %v1173_v50  ;;  %v1171_v60 = vld [vmem:[%s6619_s13 + $0xdb0] sm:$0xff] }
 0x249   : > { %v7142_v58 = vpop.xlane.xlu1 %1333  ;;  %1603 = vadd.xlane.f32.xlu0 %v1602_v46  ;;  %v1791_v59 = vadd.f32 %v1790_v47, %v1220_v35  ;;  %v1734_v61 = vadd.f32 %v1733_v48, %v1169_v43  ;;  %v1670_v62 = vadd.f32 %v1669_v49, %v1112_v44  ;;  %v1176_v63 = vld [vmem:[%s6619_s13 + $0xdd8] sm:$0xff]  ;;  %v1221_v0 = vld [vmem:[%s6619_s13 + $0xf40] sm:$0xff]  ;;  %v1114_v2 = vld [vmem:[%s6619_s13 + $0xbe8] sm:$0xff] }
 0x24a   : > { %v1727_v1 = vadd.f32 %v1726_v54, %v1163_v41  ;;  %v1741_v3 = vadd.f32 %v1740_v57, %v1175_v52  ;;  %v1222_v4 = vld [vmem:[%s6619_s13 + $0xf48] sm:$0xff]  ;;  %v1223_v5 = vld [vmem:[%s6619_s13 + $0xf50] sm:$0xff]  ;;  %v1172_v6 = vld [vmem:[%s6619_s13 + $0xdb8] sm:$0xff] }
 0x24b   : > { %1792 = vadd.xlane.f32.xlu1 %v1791_v59  ;;  %v1735_v7 = vadd.f32 %v1734_v61, %v1170_v55  ;;  %v1115_v8 = vld [vmem:[%s6619_s13 + $0xbf0] sm:$0xff]  ;;  %v1671_v9 = vadd.f32 %v1670_v62, %v1113_v56  ;;  %v1177_v10 = vld [vmem:[%s6619_s13 + $0xde0] sm:$0xff]  ;;  %v1794_v11 = vadd.f32 %v1222_v4, %v1221_v0  ;;  %v7153_v12 = vpop.xlane.xlu0 %1261  ;;  %v1224_v15 = vld [vmem:[%s6619_s13 + $0xf58] sm:$0xff] }
 0x24c   : > { %v1728_v13 = vadd.f32 %v1727_v1, %v1164_v53  ;;  %v1742_v14 = vadd.f32 %v1741_v3, %v1176_v63  ;;  %v1237_v16 = vld [vmem:[%s6619_s13 + $0xfc0] sm:$0xff]  ;;  %v1238_v17 = vld [vmem:[%s6619_s13 + $0xfc8] sm:$0xff]  ;;  %v1116_v19 = vld [vmem:[%s6619_s13 + $0xbf8] sm:$0xff] }
 0x24d   : > { %v1736_v18 = vadd.f32 %v1735_v7, %v1171_v60  ;;  %v1672_v20 = vadd.f32 %v1671_v9, %v1114_v2  ;;  %v1178_v21 = vld [vmem:[%s6619_s13 + $0xde8] sm:$0xff]  ;;  %v1795_v22 = vadd.f32 %v1794_v11, %v1223_v5  ;;  %v1239_v23 = vld [vmem:[%s6619_s13 + $0xfd0] sm:$0xff]  ;;  %v1812_v24 = vadd.f32 %v1238_v17, %v1237_v16  ;;  %v1225_v27 = vld [vmem:[%s6619_s13 + $0xf60] sm:$0xff] }
 0x24e   : > { %1729 = vadd.xlane.f32.xlu0 %v1728_v13  ;;  %v1179_v25 = vld [vmem:[%s6619_s13 + $0xdf0] sm:$0xff]  ;;  %v1743_v26 = vadd.f32 %v1742_v14, %v1177_v10  ;;  %v1240_v29 = vld [vmem:[%s6619_s13 + $0xfd8] sm:$0xff]  ;;  %v7164_v30 = vpop.xlane.xlu1 %1342  ;;  %v1229_v35 = vld [vmem:[%s6619_s13 + $0xf80] sm:$0xff] }
 0x24f   : > { %v1737_v31 = vadd.f32 %v1736_v18, %v1172_v6  ;;  %v1673_v32 = vadd.f32 %v1672_v20, %v1115_v8  ;;  %v1796_v33 = vadd.f32 %v1795_v22, %v1224_v15  ;;  %v1813_v34 = vadd.f32 %v1812_v24, %v1239_v23  ;;  %v1230_v36 = vld [vmem:[%s6619_s13 + $0xf88] sm:$0xff]  ;;  %v1231_v37 = vld [vmem:[%s6619_s13 + $0xf90] sm:$0xff]  ;;  %v1241_v40 = vld [vmem:[%s6619_s13 + $0xfe0] sm:$0xff] }
 0x250   : > { %v1744_v38 = vadd.f32 %v1743_v26, %v1178_v21  ;;  %v1226_v39 = vld [vmem:[%s6619_s13 + $0xf68] sm:$0xff]  ;;  %v1803_v41 = vadd.f32 %v1230_v36, %v1229_v35  ;;  %v7171_v42 = vpop.xlane.xlu0 %1270  ;;  %v1180_v44 = vld [vmem:[%s6619_s13 + $0xdf8] sm:$0xff]  ;;  %v1227_v50 = vld [vmem:[%s6619_s13 + $0xf70] sm:$0xff] }
 0x251   : > { %1738 = vadd.xlane.f32.xlu1 %v1737_v31  ;;  %v1674_v43 = vadd.f32 %v1673_v32, %v1116_v19  ;;  %v1797_v46 = vadd.f32 %v1796_v33, %v1225_v27  ;;  %v1814_v47 = vadd.f32 %v1813_v34, %v1240_v29  ;;  %v1232_v48 = vld [vmem:[%s6619_s13 + $0xf98] sm:$0xff]  ;;  %v1242_v51 = vld [vmem:[%s6619_s13 + $0xfe8] sm:$0xff]  ;;  %v1233_v55 = vld [vmem:[%s6619_s13 + $0xfa0] sm:$0xff]  ;;  %v8886_v27 = vmov 0.0|0.0  }
 0x252   : > { %v1745_v49 = vadd.f32 %v1744_v38, %v1179_v25  ;;  %v1804_v52 = vadd.f32 %v1803_v41, %v1231_v37  ;;  %v1228_v59 = vld [vmem:[%s6619_s13 + $0xf78] sm:$0xff]  ;;  %v1243_v60 = vld [vmem:[%s6619_s13 + $0xff0] sm:$0xff]  ;;  %v1234_v0 = vld [vmem:[%s6619_s13 + $0xfa8] sm:$0xff]  ;;  %5372 = vmatprep.subr.bf16.mxu0 %v8886_v27  ;;  %5384 = vmatprep.subr.bf16.mxu1 %v8886_v27 }
 0x253   : > { %1675 = vadd.xlane.f32.xlu0 %v1674_v43  ;;  %v1798_v53 = vadd.f32 %v1797_v46, %v1226_v39  ;;  %v1815_v54 = vadd.f32 %v1814_v47, %v1241_v40  ;;  %v7178_v56 = vpop.xlane.xlu1 %1405  ;;  %v1244_v1 = vld [vmem:[%s6619_s13 + $0xff8] sm:$0xff]  ;;  %v1235_v6 = vld [vmem:[%s6619_s13 + $0xfb0] sm:$0xff]  ;;  %v2316_v16 = vld [vmem:[%s6626_s14] sm:$0xff] }
 0x254   : > { %v1746_v57 = vadd.f32 %v1745_v49, %v1180_v44  ;;  %v1805_v61 = vadd.f32 %v1804_v52, %v1232_v48  ;;  %v2318_v8 = vld [vmem:[%s6626_s14 + $0x10] sm:$0xff]  ;;  %v2319_v9 = vld [vmem:[%s6626_s14 + $0x18] sm:$0xff]  ;;  %v2317_v17 = vld [vmem:[%s6626_s14 + $0x8] sm:$0xff] }
 0x255   : > { %v1799_v62 = vadd.f32 %v1798_v53, %v1227_v50  ;;  %v1816_v63 = vadd.f32 %v1815_v54, %v1242_v51  ;;  %v1236_v13 = vld [vmem:[%s6619_s13 + $0xfb8] sm:$0xff]  ;;  %v2575_v15 = vadd.f32 %v2319_v9, %v2318_v8  ;;  %v2350_v20 = vld [vmem:[%s6626_s14 + $0x110] sm:$0xff]  ;;  %v2572_v22 = vadd.f32 %v2317_v17, %v2316_v16  ;;  %v2348_v25 = vld [vmem:[%s6626_s14 + $0x100] sm:$0xff] }
 0x256   : > { %1747 = vadd.xlane.f32.xlu1 %v1746_v57  ;;  %v1806_v2 = vadd.f32 %v1805_v61, %v1233_v55  ;;  %v7184_v3 = vpop.xlane.xlu0 %1396  ;;  %v2351_v21 = vld [vmem:[%s6626_s14 + $0x118] sm:$0xff]  ;;  %v2349_v26 = vld [vmem:[%s6626_s14 + $0x108] sm:$0xff]  ;;  %v2352_v29 = vld [vmem:[%s6626_s14 + $0x120] sm:$0xff] }
 0x257   : > { %v1800_v4 = vadd.f32 %v1799_v62, %v1228_v59  ;;  %v1817_v5 = vadd.f32 %v1816_v63, %v1243_v60  ;;  %v2623_v24 = vadd.f32 %v2351_v21, %v2350_v20  ;;  %v2353_v31 = vld [vmem:[%s6626_s14 + $0x128] sm:$0xff]  ;;  %v2620_v33 = vadd.f32 %v2349_v26, %v2348_v25  ;;  %v2320_v35 = vld [vmem:[%s6626_s14 + $0x20] sm:$0xff]  ;;  %v2382_v38 = vld [vmem:[%s6626_s14 + $0x210] sm:$0xff] }
 0x258   : > { %v1807_v7 = vadd.f32 %v1806_v2, %v1234_v0  ;;  %v7189_v10 = vpop.xlane.xlu1 %1351  ;;  %v2626_v34 = vadd.f32 %v2353_v31, %v2352_v29  ;;  %v2321_v36 = vld [vmem:[%s6626_s14 + $0x28] sm:$0xff]  ;;  %v2383_v39 = vld [vmem:[%s6626_s14 + $0x218] sm:$0xff]  ;;  %v2380_v44 = vld [vmem:[%s6626_s14 + $0x200] sm:$0xff] }
 0x259   : > { %1801 = vadd.xlane.f32.xlu0 %v1800_v4  ;;  %v1818_v11 = vadd.f32 %v1817_v5, %v1244_v1  ;;  %v2578_v40 = vadd.f32 %v2321_v36, %v2320_v35  ;;  %v2671_v43 = vadd.f32 %v2383_v39, %v2382_v38  ;;  %v2381_v46 = vld [vmem:[%s6626_s14 + $0x208] sm:$0xff]  ;;  %v2354_v47 = vld [vmem:[%s6626_s14 + $0x130] sm:$0xff]  ;;  %v2355_v48 = vld [vmem:[%s6626_s14 + $0x138] sm:$0xff]  ;;  %v6119_v4 = vmov 0.0  }
 0x25a   : > { %v1808_v14 = vadd.f32 %v1807_v7, %v1235_v6  ;;  %v2668_v50 = vadd.f32 %v2381_v46, %v2380_v44  ;;  %v2629_v51 = vadd.f32 %v2355_v48, %v2354_v47  ;;  %v2322_v52 = vld [vmem:[%s6626_s14 + $0x30] sm:$0xff]  ;;  %v2323_v53 = vld [vmem:[%s6626_s14 + $0x38] sm:$0xff]  ;;  %v2412_v55 = vld [vmem:[%s6626_s14 + $0x300] sm:$0xff]  ;;  %5334 = vmatprep.mubr.msk.f32.mxu0 %vm6118_vm0, %v6119_v4  ;;  %5369 = vmatprep.mubr.msk.f32.mxu1 %vm6118_vm0, %v6119_v4  ;;  %vm3151_vm0 = vcmask 589312  }
 0x25b   : > { %1819 = vadd.xlane.f32.xlu1 %v1818_v11  ;;  %v7194_v18 = vpop.xlane.xlu0 %1279  ;;  %v2413_v57 = vld [vmem:[%s6626_s14 + $0x308] sm:$0xff]  ;;  %v2581_v59 = vadd.f32 %v2323_v53, %v2322_v52  ;;  %v2384_v62 = vld [vmem:[%s6626_s14 + $0x220] sm:$0xff]  ;;  %v2414_v7 = vld [vmem:[%s6626_s14 + $0x310] sm:$0xff] }
 0x25c   : > { %v1809_v19 = vadd.f32 %v1808_v14, %v1236_v13  ;;  %v2716_v61 = vadd.f32 %v2413_v57, %v2412_v55  ;;  %v2385_v63 = vld [vmem:[%s6626_s14 + $0x228] sm:$0xff]  ;;  %v2324_v0 = vld [vmem:[%s6626_s14 + $0x40] sm:$0xff]  ;;  %v2415_v8 = vld [vmem:[%s6626_s14 + $0x318] sm:$0xff] }
 0x25d   : > { %v2325_v1 = vld [vmem:[%s6626_s14 + $0x48] sm:$0xff]  ;;  %v2674_v5 = vadd.f32 %v2385_v63, %v2384_v62  ;;  %v2386_v11 = vld [vmem:[%s6626_s14 + $0x230] sm:$0xff]  ;;  %v2387_v13 = vld [vmem:[%s6626_s14 + $0x238] sm:$0xff]  ;;  %v2719_v14 = vadd.f32 %v2415_v8, %v2414_v7 }
 0x25e   : > { %1810 = vadd.xlane.f32.xlu0 %v1809_v19  ;;  %v7198_v23 = vpop.xlane.xlu1 %1468  ;;  %v2584_v6 = vadd.f32 %v2325_v1, %v2324_v0  ;;  %v2677_v16 = vadd.f32 %v2387_v13, %v2386_v11  ;;  %v2356_v17 = vld [vmem:[%s6626_s14 + $0x140] sm:$0xff]  ;;  %v2357_v19 = vld [vmem:[%s6626_s14 + $0x148] sm:$0xff]  ;;  %v2326_v31 = vld [vmem:[%s6626_s14 + $0x50] sm:$0xff] }
 0x25f   : > { %2576 = vadd.xlane.f32.xlu1 %v2575_v15  ;;  %v2444_v20 = vld [vmem:[%s6626_s14 + $0x400] sm:$0xff]  ;;  %v2445_v21 = vld [vmem:[%s6626_s14 + $0x408] sm:$0xff]  ;;  %v1824_v44 = vld [vmem:[#allocation10 + $0x18] sm:$0xff] }
 0x260   : > { %v7205_v32 = vpop.xlane.xlu0 %1414  ;;  %v2764_v25 = vadd.f32 %v2445_v21, %v2444_v20  ;;  %v2416_v26 = vld [vmem:[%s6626_s14 + $0x320] sm:$0xff]  ;;  %v2417_v29 = vld [vmem:[%s6626_s14 + $0x328] sm:$0xff]  ;;  %v2446_v47 = vld [vmem:[%s6626_s14 + $0x410] sm:$0xff] }
 0x261   : > { %v1821_v35 = vld [vmem:[#allocation10] sm:$0xff]  ;;  %v1822_v36 = vld [vmem:[#allocation10 + $0x8] sm:$0xff]  ;;  %v2722_v39 = vadd.f32 %v2417_v29, %v2416_v26  ;;  %v2447_v48 = vld [vmem:[%s6626_s14 + $0x418] sm:$0xff] }
 0x262   : > { %2573 = vadd.xlane.f32.xlu0 %v2572_v22  ;;  %v5373_v38 = vpack.c.bf16 %v1822_v36, %v1821_v35  ;;  %v2389_v52 = vld [vmem:[%s6626_s14 + $0x248] sm:$0xff]  ;;  %v1825_v55 = vld [vmem:[#allocation10 + $0x20] sm:$0xff]  ;;  %v2358_v62 = vld [vmem:[%s6626_s14 + $0x150] sm:$0xff] }
 0x263   : > { %2624 = vadd.xlane.f32.xlu1 %v2623_v24  ;;  %v7210_v37 = vpop.xlane.xlu1 %1288  ;;  %v2632_v24 = vadd.f32 %v2357_v19, %v2356_v17  ;;  %v1826_v57 = vld [vmem:[#allocation10 + $0x28] sm:$0xff]  ;;  %v2359_v63 = vld [vmem:[%s6626_s14 + $0x158] sm:$0xff]  ;;  %v2448_v0 = vld [vmem:[%s6626_s14 + $0x420] sm:$0xff] }
 0x264   : > { %5374 = vmatpush3.bf16.msra.mxu0 %v5373_v38  ;;  %v5379_v4 = vpack.c.bf16 %v1826_v57, %v1825_v55  ;;  %v1828_v7 = vld [vmem:[#allocation10 + $0x38] sm:$0xff]  ;;  %v2635_v8 = vadd.f32 %v2359_v63, %v2358_v62  ;;  %v2478_v19 = vld [vmem:[%s6626_s14 + $0x510] sm:$0xff]  ;;  %v2476_v29 = vld [vmem:[%s6626_s14 + $0x500] sm:$0xff] }
 0x265   : > { %5375 = vmatprep.subr.bf16.mxu0 %v8886_v27  ;;  %v2479_v20 = vld [vmem:[%s6626_s14 + $0x518] sm:$0xff]  ;;  %v2360_v35 = vld [vmem:[%s6626_s14 + $0x160] sm:$0xff]  ;;  %v2361_v36 = vld [vmem:[%s6626_s14 + $0x168] sm:$0xff] }
 0x266   : > { %2621 = vadd.xlane.f32.xlu0 %v2620_v33  ;;  %v7214_v41 = vpop.xlane.xlu0 %1477  ;;  %v2815_v26 = vadd.f32 %v2479_v20, %v2478_v19 }
 0x267   : > { %2627 = vadd.xlane.f32.xlu1 %v2626_v34  ;;  %v2327_v34 = vld [vmem:[%s6626_s14 + $0x58] sm:$0xff] }
 0x268   : > { %v7220_v49 = vpop.xlane.xlu1 %1423  ;;  %v2587_v46 = vadd.f32 %v2327_v34, %v2326_v31  ;;  %v2477_v31 = vld [vmem:[%s6626_s14 + $0x508] sm:$0xff] }
 0x26a   : > { %2579 = vadd.xlane.f32.xlu0 %v2578_v40 }
 0x26b   : > { %2672 = vadd.xlane.f32.xlu1 %v2671_v43  ;;  %v7224_v54 = vpop.xlane.xlu0 %1360  ;;  %v1823_v43 = vld [vmem:[#allocation10 + $0x10] sm:$0xff] }
 0x26e   : > { %2669 = vadd.xlane.f32.xlu0 %v2668_v50  ;;  %v7228_v60 = vpop.xlane.xlu1 %1540  ;;  %v2388_v50 = vld [vmem:[%s6626_s14 + $0x240] sm:$0xff] }
 0x26f   : > { %2630 = vadd.xlane.f32.xlu1 %v2629_v51  ;;  %v5376_v51 = vpack.c.bf16 %v1824_v44, %v1823_v43 }
 0x270   : > { %v7234_v2 = vpop.xlane.xlu0 %1486 }
 0x271   : > { %5377 = vmatpush3.bf16.msra.mxu0 %v5376_v51  ;;  %v2420_v51 = vld [vmem:[%s6626_s14 + $0x340] sm:$0xff] }
 0x272   : > { %2582 = vadd.xlane.f32.xlu0 %v2581_v59  ;;  %v2767_v59 = vadd.f32 %v2447_v48, %v2446_v47  ;;  %5378 = vmatprep.subr.bf16.mxu0 %v8886_v27  ;;  %v2328_v47 = vld [vmem:[%s6626_s14 + $0x60] sm:$0xff]  ;;  %v2329_v48 = vld [vmem:[%s6626_s14 + $0x68] sm:$0xff] }
 0x273   : > { %2717 = vadd.xlane.f32.xlu1 %v2716_v61  ;;  %v7238_v9 = vpop.xlane.xlu1 %1297  ;;  %v2680_v61 = vadd.f32 %v2389_v52, %v2388_v50  ;;  %v2421_v52 = vld [vmem:[%s6626_s14 + $0x348] sm:$0xff] }
 0x275   : > { %5380 = vmatpush3.bf16.msra.mxu0 %v5379_v4  ;;  %v2390_v4 = vld [vmem:[%s6626_s14 + $0x250] sm:$0xff] }
 0x276   : > { %2675 = vadd.xlane.f32.xlu0 %v2674_v5  ;;  %v7242_v15 = vpop.xlane.xlu0 %1549  ;;  %v2449_v5 = vld [vmem:[%s6626_s14 + $0x428] sm:$0xff]  ;;  %5381 = vmatprep.subr.bf16.mxu0 %v8886_v27  ;;  %v2459_v27 = vld [vmem:[%s6626_s14 + $0x478] sm:$0xff] }
 0x277   : > { %2585 = vadd.xlane.f32.xlu1 %v2584_v6  ;;  %v1827_v6 = vld [vmem:[#allocation10 + $0x30] sm:$0xff]  ;;  %v2770_v13 = vadd.f32 %v2449_v5, %v2448_v0  ;;  %v2728_v0 = vadd.f32 %v2421_v52, %v2420_v51  ;;  %v2391_v5 = vld [vmem:[%s6626_s14 + $0x258] sm:$0xff] }
 0x278   : > { %v7248_v22 = vpop.xlane.xlu1 %1432  ;;  %v5382_v17 = vpack.c.bf16 %v1828_v7, %v1827_v6 }
 0x27a   : > { %2720 = vadd.xlane.f32.xlu0 %v2719_v14  ;;  %v2418_v14 = vld [vmem:[%s6626_s14 + $0x330] sm:$0xff]  ;;  %5383 = vmatpush3.bf16.msra.mxu0 %v5382_v17 }
 0x27b   : > { %2678 = vadd.xlane.f32.xlu1 %v2677_v16  ;;  %v7253_v33 = vpop.xlane.xlu0 %1369  ;;  %v2419_v16 = vld [vmem:[%s6626_s14 + $0x338] sm:$0xff] }
 0x27e   : > { %2633 = vadd.xlane.f32.xlu0 %v2632_v24  ;;  %v7256_v40 = vpop.xlane.xlu1 %1558  ;;  %v1900_v24 = vlaneseq }
 0x27f   : > { %2765 = vadd.xlane.f32.xlu1 %v2764_v25  ;;  %v2725_v25 = vadd.f32 %v2419_v16, %v2418_v14  ;;  %v2481_v14 = vld [vmem:[%s6626_s14 + $0x528] sm:$0xff] }
 0x280   : > { %v7262_v53 = vpop.xlane.xlu0 %1495  ;;  %v7287_v38 = vand.u32 127, %v1900_v24  ;;  %v7299_v57 = vshrl.u32 %v1900_v24, 7  ;;  %v2683_v24 = vadd.f32 %v2391_v5, %v2390_v4  ;;  %v2508_v4 = vld [vmem:[%s6626_s14 + $0x600] sm:$0xff]  ;;  %v2509_v5 = vld [vmem:[%s6626_s14 + $0x608] sm:$0xff] }
 0x282   : > { %2723 = vadd.xlane.f32.xlu0 %v2722_v39  ;;  %8965 = vst [vmem:[#allocation33_spill] sm:$0xff] %v7287_v38  ;;  %v2812_v39 = vadd.f32 %v2477_v31, %v2476_v29  ;;  %v1906_v44 = vadd.s32 4294967288, %v7287_v38  ;;  %v1913_v50 = vadd.s32 4294967280, %v7287_v38  ;;  %8966 = vst [vmem:[#allocation34_spill] sm:$0xff] %v7299_v57  ;;  %v1927_v63 = vadd.s32 4294967264, %v7287_v38 }
 0x283   : > { %2588 = vadd.xlane.f32.xlu1 %v2587_v46  ;;  %v7268_v1 = vpop.xlane.xlu1 %1621  ;;  %v2638_v46 = vadd.f32 %v2361_v36, %v2360_v35  ;;  %v1941_v16 = vadd.s32 4294967248, %v7287_v38  ;;  %v7319_v17 = vsub.s32 %v7287_v38, %v7299_v57  ;;  %v1948_v20 = vadd.s32 4294967240, %v7287_v38  ;;  %v2450_v35 = vld [vmem:[%s6626_s14 + $0x430] sm:$0xff]  ;;  %v2451_v36 = vld [vmem:[%s6626_s14 + $0x438] sm:$0xff] }
 0x284   : > { %v7303_v62 = vsub.s32 %v1906_v44, %v7299_v57  ;;  %v7311_v7 = vsub.s32 %v1913_v50, %v7299_v57  ;;  %v7330_v29 = vsub.s32 %v1927_v63, %v7299_v57 }
 0x285   : > { %v1958_v50 = vrot.slane %v7123_v28, %v7319_v17  ;;  %v7353_v52 = vsub.s32 %v1948_v20, %v7299_v57  ;;  %v2773_v28 = vadd.f32 %v2451_v36, %v2450_v35 }
 0x286   : > { %2768 = vadd.xlane.f32.xlu0 %v2767_v59  ;;  %v7272_v11 = vpop.xlane.xlu0 %1612  ;;  %v1920_v59 = vadd.s32 4294967272, %v7287_v38  ;;  %v1910_v51 = vrot.slane %v7153_v12, %v7303_v62  ;;  %v1977_v63 = vrot.slane %v7224_v54, %v7330_v29  ;;  %v1931_v54 = vrot.slane %v7210_v37, %v7330_v29 }
 0x287   : > { %2681 = vadd.xlane.f32.xlu1 %v2680_v61  ;;  %v2590_v61 = vadd.f32 %v2329_v48, %v2328_v47  ;;  %v2511_v47 = vld [vmem:[%s6626_s14 + $0x618] sm:$0xff]  ;;  %v7342_v48 = vsub.s32 %v1941_v16, %v7299_v57 }
 0x288   : > { %v7278_v21 = vpop.xlane.xlu1 %1378  ;;  %v7322_v19 = vsub.s32 %v1920_v59, %v7299_v57  ;;  %v1905_v59 = vrot.slane %v7134_v45, %v7319_v17 }
 0x28a   : > { %2636 = vadd.xlane.f32.xlu0 %v2635_v8  ;;  %v1934_v8 = vadd.s32 4294967256, %v7287_v38  ;;  %v2488_v38 = vld [vmem:[%s6626_s14 + $0x560] sm:$0xff] }
 0x28b   : > { %2771 = vadd.xlane.f32.xlu1 %v2770_v13  ;;  %v7283_v34 = vpop.xlane.xlu0 %1306  ;;  %v2480_v13 = vld [vmem:[%s6626_s14 + $0x520] sm:$0xff] }
 0x28c   : > { %v2818_v31 = vadd.f32 %v2481_v14, %v2480_v13  ;;  %v7337_v44 = vsub.s32 %v1934_v8, %v7299_v57  ;;  %v1987_v13 = vrot.slane %v7278_v21, %v7342_v48  ;;  %v2362_v14 = vld [vmem:[%s6626_s14 + $0x170] sm:$0xff]  ;;  %v2860_v21 = vadd.f32 %v2509_v5, %v2508_v4  ;;  %v2393_v4 = vld [vmem:[%s6626_s14 + $0x268] sm:$0xff]  ;;  %v2519_v57 = vld [vmem:[%s6626_s14 + $0x658] sm:$0xff] }
 0x28e   : > { %2726 = vadd.xlane.f32.xlu0 %v2725_v25  ;;  %v7289_v43 = vpop.xlane.xlu1 %1504  ;;  %v1938_v20 = vrot.slane %v7238_v9, %v7337_v44  ;;  %v2330_v9 = vld [vmem:[%s6626_s14 + $0x70] sm:$0xff] }
 0x28f   : > { %2816 = vadd.xlane.f32.xlu1 %v2815_v26  ;;  %v1962_v26 = vrot.slane %v7142_v58, %v7303_v62 }
 0x290   : > { %v7297_v55 = vpop.xlane.xlu0 %1441 }
 0x291   : > { %v1963_v12 = vsel %vm1911_vm1, %v1962_v26, %v1958_v50  ;;  %v1945_v26 = vrot.slane %v7283_v34, %v7342_v48  ;;  %v2423_v34 = vld [vmem:[%s6626_s14 + $0x358] sm:$0xff] }
 0x292   : > { %2813 = vadd.xlane.f32.xlu0 %v2812_v39  ;;  %v1967_v39 = vrot.slane %v7164_v30, %v7311_v7  ;;  %v1972_v30 = vrot.slane %v7189_v10, %v7322_v19  ;;  %v1924_v10 = vrot.slane %v7194_v18, %v7322_v19  ;;  %v2363_v18 = vld [vmem:[%s6626_s14 + $0x178] sm:$0xff] }
 0x293   : > { %2639 = vadd.xlane.f32.xlu1 %v2638_v46  ;;  %v7308_v6 = vpop.xlane.xlu1 %1630  ;;  %v2510_v46 = vld [vmem:[%s6626_s14 + $0x610] sm:$0xff] }
 0x294   : > { %v2863_v45 = vadd.f32 %v2511_v47, %v2510_v46  ;;  %v1968_v8 = vsel %vm1918_vm2, %v1967_v39, %v1963_v12  ;;  %v2641_v39 = vadd.f32 %v2363_v18, %v2362_v14  ;;  %v2331_v46 = vld [vmem:[%s6626_s14 + $0x78] sm:$0xff] }
 0x295   : > { %v1973_v16 = vsel %vm1925_vm3, %v1972_v30, %v1968_v8  ;;  %v2422_v30 = vld [vmem:[%s6626_s14 + $0x350] sm:$0xff] }
 0x296   : > { %2591 = vadd.xlane.f32.xlu0 %v2590_v61  ;;  %v7325_v25 = vpop.xlane.xlu0 %1567  ;;  %v1917_v61 = vrot.slane %v7171_v42, %v7311_v7  ;;  %v1978_v37 = vsel %vm1932_vm4, %v1977_v63, %v1973_v16 }
 0x297   : > { %2729 = vadd.xlane.f32.xlu1 %v2728_v0  ;;  %v1982_v0 = vrot.slane %v7253_v33, %v7337_v44  ;;  %v1912_v33 = vsel %vm1911_vm1, %v1910_v51, %v1905_v59 }
 0x298   : > { %v7344_v58 = vpop.xlane.xlu1 %1693 }
 0x299   : > { %v1983_v36 = vsel %vm1939_vm5, %v1982_v0, %v1978_v37  ;;  %v2731_v0 = vadd.f32 %v2423_v34, %v2422_v30  ;;  %v2540_v37 = vld [vmem:[%s6626_s14 + $0x700] sm:$0xff]  ;;  %v2542_v34 = vld [vmem:[%s6626_s14 + $0x710] sm:$0xff] }
 0x29a   : > { %2684 = vadd.xlane.f32.xlu0 %v2683_v24  ;;  %v1919_v24 = vsel %vm1918_vm2, %v1917_v61, %v1912_v33  ;;  %v1988_v51 = vsel %vm1946_vm6, %v1987_v13, %v1983_v36  ;;  %v2483_v13 = vld [vmem:[%s6626_s14 + $0x538] sm:$0xff]  ;;  %v2512_v36 = vld [vmem:[%s6626_s14 + $0x620] sm:$0xff] }
 0x29b   : > { %2819 = vadd.xlane.f32.xlu1 %v2818_v31  ;;  %v7368_v42 = vpop.xlane.xlu0 %1684  ;;  %v1926_v35 = vsel %vm1925_vm3, %v1924_v10, %v1919_v24  ;;  %v2593_v10 = vadd.f32 %v2331_v46, %v2330_v9  ;;  %v2453_v24 = vld [vmem:[%s6626_s14 + $0x448] sm:$0xff]  ;;  %v2332_v46 = vld [vmem:[%s6626_s14 + $0x80] sm:$0xff] }
 0x29c   : > { %v1933_v50 = vsel %vm1932_vm4, %v1931_v54, %v1926_v35  ;;  %v2482_v54 = vld [vmem:[%s6626_s14 + $0x530] sm:$0xff] }
 0x29d   : > { %v1940_v61 = vsel %vm1939_vm5, %v1938_v20, %v1933_v50  ;;  %v2821_v16 = vadd.f32 %v2483_v13, %v2482_v54  ;;  %v2452_v20 = vld [vmem:[%s6626_s14 + $0x440] sm:$0xff]  ;;  %v2455_v54 = vld [vmem:[%s6626_s14 + $0x458] sm:$0xff] }
 0x29e   : > { %2774 = vadd.xlane.f32.xlu0 %v2773_v28  ;;  %v1388_v31 = vpop.xlane.xlu1 %1387  ;;  %v1947_v12 = vsel %vm1946_vm6, %v1945_v26, %v1940_v61  ;;  %v2394_v61 = vld [vmem:[%s6626_s14 + $0x270] sm:$0xff] }
 0x29f   : > { %2864 = vadd.xlane.f32.xlu1 %v2863_v45  ;;  %v1992_v47 = vrot.slane %v1388_v31, %v7353_v52  ;;  %v2392_v45 = vld [vmem:[%s6626_s14 + $0x260] sm:$0xff]  ;;  %v2776_v31 = vadd.f32 %v2453_v24, %v2452_v20  ;;  %v2425_v24 = vld [vmem:[%s6626_s14 + $0x368] sm:$0xff] }
 0x2a0   : > { %v1316_v59 = vpop.xlane.xlu0 %1315  ;;  %v2686_v18 = vadd.f32 %v2393_v4, %v2392_v45  ;;  %v2365_v45 = vld [vmem:[%s6626_s14 + $0x188] sm:$0xff]  ;;  %v2424_v20 = vld [vmem:[%s6626_s14 + $0x360] sm:$0xff] }
 0x2a1   : > { %v1993_v63 = vsel %vm1953_vm7, %v1992_v47, %v1988_v51  ;;  %v1952_v28 = vrot.slane %v1316_v59, %v7353_v52  ;;  %v2333_v47 = vld [vmem:[%s6626_s14 + $0x88] sm:$0xff]  ;;  %v2543_v59 = vld [vmem:[%s6626_s14 + $0x718] sm:$0xff] }
 0x2a2   : > { %2861 = vadd.xlane.f32.xlu0 %v2860_v21  ;;  %v2541_v21 = vld [vmem:[%s6626_s14 + $0x708] sm:$0xff]  ;;  %v2596_v30 = vadd.f32 %v2333_v47, %v2332_v46 }
 0x2a3   : > { %2642 = vadd.xlane.f32.xlu1 %v2641_v39  ;;  %v1954_v5 = vsel %vm1953_vm7, %v1952_v28, %v1947_v12  ;;  %v7401_v8 = vpop.xlane.xlu1 %1513  ;;  %v2908_v35 = vadd.f32 %v2541_v21, %v2540_v37  ;;  %v2513_v39 = vld [vmem:[%s6626_s14 + $0x628] sm:$0xff]  ;;  %v2911_v12 = vadd.f32 %v2543_v59, %v2542_v34  ;;  %v2514_v37 = vld [vmem:[%s6626_s14 + $0x630] sm:$0xff]  ;;  %v2515_v21 = vld [vmem:[%s6626_s14 + $0x638] sm:$0xff] }
 0x2a4   : > { %v7406_v14 = vsel %vm2228_vm8, %v1993_v63, %v1954_v5  ;;  %v2866_v50 = vadd.f32 %v2513_v39, %v2512_v36  ;;  %v2395_v63 = vld [vmem:[%s6626_s14 + $0x278] sm:$0xff]  ;;  %v2454_v5 = vld [vmem:[%s6626_s14 + $0x450] sm:$0xff]  ;;  %v2869_v36 = vadd.f32 %v2515_v21, %v2514_v37  ;;  %v2484_v39 = vld [vmem:[%s6626_s14 + $0x540] sm:$0xff] }
 0x2a5   : > { %v2485_v46 = vld [vmem:[%s6626_s14 + $0x548] sm:$0xff] }
 0x2a6   : > { %2594 = vadd.xlane.f32.xlu0 %v2593_v10  ;;  %v7408_v33 = vpop.xlane.xlu0 %1450  ;;  %v2689_v10 = vadd.f32 %v2395_v63, %v2394_v61  ;;  %v2824_v34 = vadd.f32 %v2485_v46, %v2484_v39  ;;  %v2544_v63 = vld [vmem:[%s6626_s14 + $0x720] sm:$0xff]  ;;  %v2457_v37 = vld [vmem:[%s6626_s14 + $0x468] sm:$0xff]  ;;  %v2426_v39 = vld [vmem:[%s6626_s14 + $0x370] sm:$0xff] }
 0x2a7   : > { %2732 = vadd.xlane.f32.xlu1 %v2731_v0  ;;  %v2364_v0 = vld [vmem:[%s6626_s14 + $0x180] sm:$0xff]  ;;  %v2427_v46 = vld [vmem:[%s6626_s14 + $0x378] sm:$0xff] }
 0x2a8   : > { %v7414_v26 = vpop.xlane.xlu1 %1639  ;;  %v2644_v13 = vadd.f32 %v2365_v45, %v2364_v0  ;;  %v2397_v0 = vld [vmem:[%s6626_s14 + $0x288] sm:$0xff] }
 0x2aa   : > { %2687 = vadd.xlane.f32.xlu0 %v2686_v18 }
 0x2ab   : > { %2822 = vadd.xlane.f32.xlu1 %v2821_v16  ;;  %v7418_v9 = vpop.xlane.xlu0 %1576  ;;  %v2779_v16 = vadd.f32 %v2455_v54, %v2454_v5 }
 0x2ae   : > { %2777 = vadd.xlane.f32.xlu0 %v2776_v31  ;;  %v7422_v51 = vpop.xlane.xlu1 %1756 }
 0x2af   : > { %2909 = vadd.xlane.f32.xlu1 %v2908_v35  ;;  %v2734_v35 = vadd.f32 %v2425_v24, %v2424_v20  ;;  %v2456_v24 = vld [vmem:[%s6626_s14 + $0x460] sm:$0xff] }
 0x2b0   : > { %v7428_v28 = vpop.xlane.xlu0 %1702 }
 0x2b2   : > { %2867 = vadd.xlane.f32.xlu0 %v2866_v50  ;;  %v2334_v50 = vld [vmem:[%s6626_s14 + $0x90] sm:$0xff] }
 0x2b3   : > { %2597 = vadd.xlane.f32.xlu1 %v2596_v30  ;;  %v7432_v4 = vpop.xlane.xlu1 %1459  ;;  %v2335_v30 = vld [vmem:[%s6626_s14 + $0x98] sm:$0xff] }
 0x2b4   : > { %v2599_v61 = vadd.f32 %v2335_v30, %v2334_v50  ;;  %v2516_v50 = vld [vmem:[%s6626_s14 + $0x640] sm:$0xff]  ;;  %v2517_v30 = vld [vmem:[%s6626_s14 + $0x648] sm:$0xff] }
 0x2b6   : > { %2912 = vadd.xlane.f32.xlu0 %v2911_v12  ;;  %v7436_v18 = vpop.xlane.xlu0 %1765  ;;  %v2545_v12 = vld [vmem:[%s6626_s14 + $0x728] sm:$0xff] }
 0x2b7   : > { %2690 = vadd.xlane.f32.xlu1 %v2689_v10  ;;  %v2396_v10 = vld [vmem:[%s6626_s14 + $0x280] sm:$0xff]  ;;  %v2914_v5 = vadd.f32 %v2545_v12, %v2544_v63  ;;  %v2872_v63 = vadd.f32 %v2517_v30, %v2516_v50  ;;  %v2486_v12 = vld [vmem:[%s6626_s14 + $0x550] sm:$0xff]  ;;  %v2001_v50 = vrot.slane %v7178_v56, %v7303_v62  ;;  %v1997_v30 = vrot.slane %v7184_v3, %v7319_v17  ;;  %v2369_v3 = vld [vmem:[%s6626_s14 + $0x1a8] sm:$0xff] }
 0x2b8   : > { %v7442_v31 = vpop.xlane.xlu1 %1585  ;;  %v2692_v54 = vadd.f32 %v2397_v0, %v2396_v10  ;;  %v2487_v10 = vld [vmem:[%s6626_s14 + $0x558] sm:$0xff] }
 0x2ba   : > { %2645 = vadd.xlane.f32.xlu0 %v2644_v13  ;;  %v2366_v13 = vld [vmem:[%s6626_s14 + $0x190] sm:$0xff] }
 0x2bb   : > { %2780 = vadd.xlane.f32.xlu1 %v2779_v16  ;;  %v7446_v47 = vpop.xlane.xlu0 %1522  ;;  %v2367_v16 = vld [vmem:[%s6626_s14 + $0x198] sm:$0xff] }
 0x2bc   : > { %v2647_v21 = vadd.f32 %v2367_v16, %v2366_v13  ;;  %v2827_v13 = vadd.f32 %v2487_v10, %v2486_v12  ;;  %v2368_v12 = vld [vmem:[%s6626_s14 + $0x1a0] sm:$0xff]  ;;  %v2040_v10 = vrot.slane %v7214_v41, %v7303_v62  ;;  %v2016_v41 = vrot.slane %v7248_v22, %v7330_v29 }
 0x2bd   : > { %v2075_v22 = vrot.slane %v7228_v60, %v7319_v17  ;;  %v2050_v60 = vrot.slane %v7262_v53, %v7322_v19  ;;  %v2460_v53 = vld [vmem:[%s6626_s14 + $0x480] sm:$0xff] }
 0x2be   : > { %2735 = vadd.xlane.f32.xlu0 %v2734_v35  ;;  %v7450_v59 = vpop.xlane.xlu1 %1711 }
 0x2bf   : > { %2870 = vadd.xlane.f32.xlu1 %v2869_v36  ;;  %v2782_v36 = vadd.f32 %v2457_v37, %v2456_v24  ;;  %v2546_v37 = vld [vmem:[%s6626_s14 + $0x730] sm:$0xff] }
 0x2c0   : > { %v7456_v45 = vpop.xlane.xlu0 %1648 }
 0x2c1   : > { %8967 = vst [vmem:[#allocation35_spill] sm:$0xff] %v7456_v45  ;;  %v2431_v45 = vld [vmem:[%s6626_s14 + $0x398] sm:$0xff] }
 0x2c2   : > { %2825 = vadd.xlane.f32.xlu0 %v2824_v34 }
 0x2c3   : > { %2600 = vadd.xlane.f32.xlu1 %v2599_v61  ;;  %v7460_v20 = vpop.xlane.xlu1 %1531  ;;  %v2737_v61 = vadd.f32 %v2427_v46, %v2426_v39  ;;  %v2398_v39 = vld [vmem:[%s6626_s14 + $0x290] sm:$0xff]  ;;  %v2399_v46 = vld [vmem:[%s6626_s14 + $0x298] sm:$0xff] }
 0x2c4   : > { %8968 = vst [vmem:[#allocation36_spill] sm:$0xff] %v7460_v20  ;;  %v2695_v56 = vadd.f32 %v2399_v46, %v2398_v39  ;;  %v2002_v39 = vsel %vm1911_vm1, %v2001_v50, %v1997_v30  ;;  %v2036_v46 = vrot.slane %v7198_v23, %v7319_v17  ;;  %v2338_v30 = vld [vmem:[%s6626_s14 + $0xb0] sm:$0xff]  ;;  %v2339_v23 = vld [vmem:[%s6626_s14 + $0xb8] sm:$0xff] }
 0x2c5   : > { %v2430_v20 = vld [vmem:[%s6626_s14 + $0x390] sm:$0xff] }
 0x2c6   : > { %2915 = vadd.xlane.f32.xlu0 %v2914_v5  ;;  %v7464_v35 = vpop.xlane.xlu0 %1774  ;;  %v2336_v5 = vld [vmem:[%s6626_s14 + $0xa0] sm:$0xff] }
 0x2c7   : > { %8969 = vst [vmem:[#allocation37_spill] sm:$0xff] %v7464_v35  ;;  %2693 = vadd.xlane.f32.xlu1 %v2692_v54  ;;  %v2337_v54 = vld [vmem:[%s6626_s14 + $0xa8] sm:$0xff]  ;;  %v2548_v35 = vld [vmem:[%s6626_s14 + $0x740] sm:$0xff] }
 0x2c8   : > { %v7470_v34 = vpop.xlane.xlu1 %1657  ;;  %v2602_v24 = vadd.f32 %v2337_v54, %v2336_v5  ;;  %v2011_v5 = vrot.slane %v7220_v49, %v7322_v19  ;;  %v2428_v49 = vld [vmem:[%s6626_s14 + $0x380] sm:$0xff] }
 0x2c9   : > { %8970 = vst [vmem:[#allocation38_spill] sm:$0xff] %v7470_v34  ;;  %v2461_v34 = vld [vmem:[%s6626_s14 + $0x488] sm:$0xff] }
 0x2ca   : > { %2648 = vadd.xlane.f32.xlu0 %v2647_v21  ;;  %v2547_v21 = vld [vmem:[%s6626_s14 + $0x738] sm:$0xff] }
 0x2cb   : > { %2783 = vadd.xlane.f32.xlu1 %v2782_v36  ;;  %v7474_v0 = vpop.xlane.xlu0 %1594 }
 0x2cc   : > { %8971 = vst [vmem:[#allocation39_spill] sm:$0xff] %v7474_v0 }
 0x2ce   : > { %2738 = vadd.xlane.f32.xlu0 %v2737_v61  ;;  %v7478_v16 = vpop.xlane.xlu1 %1783  ;;  %v2006_v61 = vrot.slane %v7205_v32, %v7311_v7  ;;  %v2458_v32 = vld [vmem:[%s6626_s14 + $0x470] sm:$0xff] }
 0x2cf   : > { %8972 = vst [vmem:[#allocation40_spill] sm:$0xff] %v7478_v16  ;;  %2873 = vadd.xlane.f32.xlu1 %v2872_v63  ;;  %v2917_v63 = vadd.f32 %v2547_v21, %v2546_v37  ;;  %v2079_v37 = vrot.slane %v7242_v15, %v7303_v62  ;;  %v2518_v21 = vld [vmem:[%s6626_s14 + $0x650] sm:$0xff]  ;;  %v2084_v16 = vrot.slane %v7256_v40, %v7311_v7  ;;  %v2549_v40 = vld [vmem:[%s6626_s14 + $0x748] sm:$0xff] }
 0x2d0   : > { %v7482_v36 = vpop.xlane.xlu0 %1720  ;;  %v2007_v15 = vsel %vm1918_vm2, %v2006_v61, %v2002_v39  ;;  %v2785_v39 = vadd.f32 %v2459_v27, %v2458_v32  ;;  %v2021_v27 = vrot.slane %v7297_v55, %v7337_v44  ;;  %v2875_v32 = vadd.f32 %v2519_v57, %v2518_v21  ;;  %v2520_v21 = vld [vmem:[%s6626_s14 + $0x660] sm:$0xff] }
 0x2d1   : > { %8973 = vst [vmem:[#allocation41_spill] sm:$0xff] %v7482_v36  ;;  %v2041_v36 = vsel %vm1911_vm1, %v2040_v10, %v2036_v46  ;;  %v2012_v61 = vsel %vm1925_vm3, %v2011_v5, %v2007_v15  ;;  %v2370_v5 = vld [vmem:[%s6626_s14 + $0x1b0] sm:$0xff]  ;;  %v2371_v46 = vld [vmem:[%s6626_s14 + $0x1b8] sm:$0xff]  ;;  %v2118_v55 = vrot.slane %v7268_v1, %v7303_v62  ;;  %v2521_v1 = vld [vmem:[%s6626_s14 + $0x668] sm:$0xff] }
 0x2d2   : > { %2828 = vadd.xlane.f32.xlu0 %v2827_v13  ;;  %v2045_v13 = vrot.slane %v7234_v2, %v7311_v7  ;;  %v2489_v2 = vld [vmem:[%s6626_s14 + $0x568] sm:$0xff]  ;;  %v2017_v0 = vsel %vm1932_vm4, %v2016_v41, %v2012_v61 }
 0x2d3   : > { %2603 = vadd.xlane.f32.xlu1 %v2602_v24  ;;  %v7498_v54 = vpop.xlane.xlu1 %1666  ;;  %v2429_v24 = vld [vmem:[%s6626_s14 + $0x388] sm:$0xff]  ;;  %v2830_v15 = vadd.f32 %v2489_v2, %v2488_v38  ;;  %v2026_v38 = vrot.slane %v7408_v33, %v7342_v48  ;;  %v2055_v33 = vrot.slane %v7289_v43, %v7330_v29  ;;  %v2022_v2 = vsel %vm1939_vm5, %v2021_v27, %v2017_v0 }
 0x2d4   : > { %8974 = vst [vmem:[#allocation42_spill] sm:$0xff] %v7498_v54  ;;  %v2650_v54 = vadd.f32 %v2369_v3, %v2368_v12  ;;  %v2401_v12 = vld [vmem:[%s6626_s14 + $0x2a8] sm:$0xff]  ;;  %v2046_v3 = vsel %vm1918_vm2, %v2045_v13, %v2041_v36  ;;  %v2605_v13 = vadd.f32 %v2339_v23, %v2338_v30  ;;  %v2128_v43 = vrot.slane %v7414_v26, %v7322_v19 }
 0x2d5   : > { %v7593_v0 = vadd.f32 %v2521_v1, %v2520_v21  ;;  %v2196_v26 = vrot.slane %v7436_v18, %v7303_v62  ;;  %v2099_v30 = vrot.slane %v7442_v31, %v7337_v44  ;;  %v2192_v31 = vrot.slane %v7422_v51, %v7319_v17  ;;  %v8976_v51 = vld [vmem:[#allocation35_spill] sm:$0xff] }
 0x2d6   : > { %2918 = vadd.xlane.f32.xlu0 %v2917_v63  ;;  %v7522_v50 = vpop.xlane.xlu0 %1603  ;;  %v2400_v63 = vld [vmem:[%s6626_s14 + $0x2a0] sm:$0xff]  ;;  %v2133_v27 = vrot.slane %v8976_v51, %v7330_v29 }
 0x2d7   : > { %8975 = vst [vmem:[#allocation43_spill] sm:$0xff] %v7522_v50  ;;  %2696 = vadd.xlane.f32.xlu1 %v2695_v56  ;;  %v2080_v50 = vsel %vm1911_vm1, %v2079_v37, %v2075_v22  ;;  %v2740_v56 = vadd.f32 %v2429_v24, %v2428_v49  ;;  %v7548_v37 = vadd.f32 %v2549_v40, %v2548_v35 }
 0x2d8   : > { %v7537_v10 = vpop.xlane.xlu1 %1792  ;;  %v2085_v36 = vsel %vm1918_vm2, %v2084_v16, %v2080_v50  ;;  %v7550_v41 = vadd.f32 %v2401_v12, %v2400_v63  ;;  %v2051_v22 = vsel %vm1925_vm3, %v2050_v60, %v2046_v3  ;;  %v7559_v49 = vadd.f32 %v2371_v46, %v2370_v5 }
 0x2d9   : > { %v2114_v16 = vrot.slane %v7272_v11, %v7319_v17  ;;  %v2031_v35 = vrot.slane %v7432_v4, %v7353_v52  ;;  %v7567_v24 = vadd.f32 %v2431_v45, %v2430_v20  ;;  %v2123_v50 = vrot.slane %v7308_v6, %v7311_v7 }
 0x2da   : > { %2651 = vadd.xlane.f32.xlu0 %v2650_v54  ;;  %v7565_v54 = vadd.f32 %v2461_v34, %v2460_v53  ;;  %v2089_v11 = vrot.slane %v7325_v25, %v7322_v19  ;;  %v2157_v4 = vrot.slane %v7344_v58, %v7303_v62  ;;  %v2153_v45 = vrot.slane %v7368_v42, %v7319_v17 }
 0x2db   : > { %2786 = vadd.xlane.f32.xlu1 %v2785_v39  ;;  %v7557_v57 = vpop.xlane.xlu0 %1729  ;;  %v2060_v20 = vrot.slane %v7401_v8, %v7337_v44  ;;  %v2027_v6 = vsel %vm1946_vm6, %v2026_v38, %v2022_v2  ;;  %v2094_v25 = vrot.slane %v7418_v9, %v7330_v29  ;;  %v2162_v58 = vrot.slane %v7428_v28, %v7311_v7  ;;  %v8981_v38 = vld [vmem:[#allocation37_spill] sm:$0xff] }
 0x2dc   : > { %v2119_v42 = vsel %vm1911_vm1, %v2118_v55, %v2114_v16  ;;  %v2032_v8 = vsel %vm1953_vm7, %v2031_v35, %v2027_v6  ;;  %v2056_v61 = vsel %vm1932_vm4, %v2055_v33, %v2051_v22  ;;  %v2090_v28 = vsel %vm1925_vm3, %v2089_v11, %v2085_v36  ;;  %v8980_v22 = vld [vmem:[#allocation41_spill] sm:$0xff]  ;;  %v8982_v35 = vld [vmem:[#allocation42_spill] sm:$0xff] }
 0x2dd   : > { %v2124_v9 = vsel %vm1918_vm2, %v2123_v50, %v2119_v42  ;;  %v2065_v60 = vrot.slane %v7446_v47, %v7342_v48  ;;  %v2158_v39 = vsel %vm1911_vm1, %v2157_v4, %v2153_v45  ;;  %v2061_v40 = vsel %vm1939_vm5, %v2060_v20, %v2056_v61  ;;  %v8984_v4 = vld [vmem:[#allocation40_spill] sm:$0xff] }
 0x2de   : > { %2741 = vadd.xlane.f32.xlu0 %v2740_v56  ;;  %v7586_v34 = vpop.xlane.xlu1 %1738  ;;  %v2129_v18 = vsel %vm1925_vm3, %v2128_v43, %v2124_v9  ;;  %v2095_v63 = vsel %vm1932_vm4, %v2094_v25, %v2090_v28  ;;  %v2163_v12 = vsel %vm1918_vm2, %v2162_v58, %v2158_v39  ;;  %v2231_v3 = vsel %vm2230_vm9, %v2032_v8, %v7406_v14  ;;  %v8977_v56 = vld [vmem:[#allocation36_spill] sm:$0xff]  ;;  %v8978_v14 = vld [vmem:[#allocation38_spill] sm:$0xff]  ;;  %v8983_v1 = vld [vmem:[#allocation43_spill] sm:$0xff] }
 0x2df   : > { %2876 = vadd.xlane.f32.xlu1 %v2875_v32  ;;  %v2167_v47 = vrot.slane %v7450_v59, %v7322_v19  ;;  %v2197_v46 = vsel %vm1911_vm1, %v2196_v26, %v2192_v31  ;;  %v2100_v53 = vsel %vm1939_vm5, %v2099_v30, %v2095_v63  ;;  %v2070_v32 = vrot.slane %v8977_v56, %v7353_v52  ;;  %v8979_v59 = vld [vmem:[#allocation39_spill] sm:$0xff] }
 0x2e0   : > { %v1676_v23 = vpop.xlane.xlu0 %1675  ;;  %v2138_v36 = vrot.slane %v8978_v14, %v7337_v44  ;;  %v2172_v55 = vrot.slane %v8980_v22, %v7330_v29  ;;  %v2201_v16 = vrot.slane %v8981_v38, %v7311_v7  ;;  %v2143_v21 = vrot.slane %v8982_v35, %v7342_v48  ;;  %v2402_v38 = vld [vmem:[%s6626_s14 + $0x2b0] sm:$0xff] }
 0x2e1   : > { %v2109_v33 = vrot.slane %v8983_v1, %v7353_v52  ;;  %v2177_v2 = vrot.slane %v7557_v57, %v7337_v44  ;;  %v2168_v11 = vsel %vm1925_vm3, %v2167_v47, %v2163_v12  ;;  %v2206_v45 = vrot.slane %v8984_v4, %v7322_v19 }
 0x2e2   : > { %2831 = vadd.xlane.f32.xlu0 %v2830_v15  ;;  %v2066_v15 = vsel %vm1946_vm6, %v2065_v60, %v2061_v40  ;;  %v2182_v20 = vrot.slane %v7586_v34, %v7342_v48  ;;  %v2148_v43 = vrot.slane %v1676_v23, %v7353_v52  ;;  %v2134_v6 = vsel %vm1932_vm4, %v2133_v27, %v2129_v18  ;;  %v2490_v40 = vld [vmem:[%s6626_s14 + $0x570] sm:$0xff]  ;;  %v2491_v18 = vld [vmem:[%s6626_s14 + $0x578] sm:$0xff] }
 0x2e3   : > { %2606 = vadd.xlane.f32.xlu1 %v2605_v13  ;;  %v1748_v5 = vpop.xlane.xlu1 %1747  ;;  %v2104_v13 = vrot.slane %v8979_v59, %v7342_v48  ;;  %v2071_v25 = vsel %vm1953_vm7, %v2070_v32, %v2066_v15  ;;  %v2139_v42 = vsel %vm1939_vm5, %v2138_v36, %v2134_v6  ;;  %v2173_v8 = vsel %vm1932_vm4, %v2172_v55, %v2168_v11  ;;  %v2550_v59 = vld [vmem:[%s6626_s14 + $0x750] sm:$0xff] }
 0x2e4   : > { %v2187_v57 = vrot.slane %v1748_v5, %v7353_v52  ;;  %v2202_v26 = vsel %vm1918_vm2, %v2201_v16, %v2197_v46  ;;  %v2144_v30 = vsel %vm1946_vm6, %v2143_v21, %v2139_v42  ;;  %v2233_v31 = vsel %vm2232_vm10, %v2071_v25, %v2231_v3  ;;  %v2340_v5 = vld [vmem:[%s6626_s14 + $0xc0] sm:$0xff]  ;;  %v2341_v46 = vld [vmem:[%s6626_s14 + $0xc8] sm:$0xff]  ;;  %v2403_v16 = vld [vmem:[%s6626_s14 + $0x2b8] sm:$0xff] }
 0x2e5   : > { %v2105_v34 = vsel %vm1946_vm6, %v2104_v13, %v2100_v53  ;;  %v2207_v61 = vsel %vm1925_vm3, %v2206_v45, %v2202_v26  ;;  %v2149_v28 = vsel %vm1953_vm7, %v2148_v43, %v2144_v30  ;;  %v2833_v56 = vadd.f32 %v2491_v18, %v2490_v40  ;;  %v2551_v13 = vld [vmem:[%s6626_s14 + $0x758] sm:$0xff]  ;;  %v2462_v45 = vld [vmem:[%s6626_s14 + $0x490] sm:$0xff]  ;;  %v2432_v42 = vld [vmem:[%s6626_s14 + $0x3a0] sm:$0xff] }
 0x2e6   : > { %2921 = vadd.xlane.f32.xlu0 %v7548_v37  ;;  %v1802_v50 = vpop.xlane.xlu0 %1801  ;;  %v2211_v37 = vrot.slane %v7537_v10, %v7330_v29  ;;  %v2110_v23 = vsel %vm1953_vm7, %v2109_v33, %v2105_v34  ;;  %v2178_v10 = vsel %vm1939_vm5, %v2177_v2, %v2173_v8  ;;  %v2608_v36 = vadd.f32 %v2341_v46, %v2340_v5  ;;  %v2372_v2 = vld [vmem:[%s6626_s14 + $0x1c0] sm:$0xff]  ;;  %v2433_v34 = vld [vmem:[%s6626_s14 + $0x3a8] sm:$0xff]  ;;  %v2522_v26 = vld [vmem:[%s6626_s14 + $0x670] sm:$0xff] }
 0x2e7   : > { %2699 = vadd.xlane.f32.xlu1 %v7550_v41  ;;  %v2216_v41 = vrot.slane %v1802_v50, %v7337_v44  ;;  %v2183_v9 = vsel %vm1946_vm6, %v2182_v20, %v2178_v10  ;;  %v2235_v53 = vsel %vm2234_vm11, %v2110_v23, %v2233_v31  ;;  %v2923_v21 = vadd.f32 %v2551_v13, %v2550_v59  ;;  %v2373_v50 = vld [vmem:[%s6626_s14 + $0x1c8] sm:$0xff]  ;;  %v2463_v20 = vld [vmem:[%s6626_s14 + $0x498] sm:$0xff]  ;;  %v2342_v31 = vld [vmem:[%s6626_s14 + $0xd0] sm:$0xff] }
 0x2e8   : > { %v1820_v58 = vpop.xlane.xlu1 %1819  ;;  %v2212_v63 = vsel %vm1932_vm4, %v2211_v37, %v2207_v61  ;;  %v2188_v12 = vsel %vm1953_vm7, %v2187_v57, %v2183_v9  ;;  %v2237_v27 = vsel %vm2236_vm12, %v2149_v28, %v2235_v53  ;;  %v2701_v33 = vadd.f32 %v2403_v16, %v2402_v38  ;;  %v2523_v30 = vld [vmem:[%s6626_s14 + $0x678] sm:$0xff]  ;;  %v2374_v13 = vld [vmem:[%s6626_s14 + $0x1d0] sm:$0xff]  ;;  %v2464_v38 = vld [vmem:[%s6626_s14 + $0x4a0] sm:$0xff] }
 0x2e9   : > { %v2226_v60 = vrot.slane %v1820_v58, %v7353_v52  ;;  %v2217_v51 = vsel %vm1939_vm5, %v2216_v41, %v2212_v63  ;;  %v2239_v14 = vsel %vm2238_vm13, %v2188_v12, %v2237_v27  ;;  %v2656_v25 = vadd.f32 %v2373_v50, %v2372_v2  ;;  %v2343_v63 = vld [vmem:[%s6626_s14 + $0xd8] sm:$0xff]  ;;  %v2465_v16 = vld [vmem:[%s6626_s14 + $0x4a8] sm:$0xff]  ;;  %v2434_v50 = vld [vmem:[%s6626_s14 + $0x3b0] sm:$0xff] }
 0x2ea   : > { %2654 = vadd.xlane.f32.xlu0 %v7559_v49  ;;  %v2791_v58 = vadd.f32 %v2463_v20, %v2462_v45  ;;  %v2746_v61 = vadd.f32 %v2433_v34, %v2432_v42  ;;  %v2881_v28 = vadd.f32 %v2523_v30, %v2522_v26  ;;  %v2611_v53 = vadd.f32 %v2343_v63, %v2342_v31  ;;  %v2406_v63 = vld [vmem:[%s6626_s14 + $0x2d0] sm:$0xff] }
 0x2eb   : > { %v1811_v39 = vpop.xlane.xlu0 %1810  ;;  %2789 = vadd.xlane.f32.xlu1 %v7565_v54  ;;  %v2794_v2 = vadd.f32 %v2465_v16, %v2464_v38  ;;  %v2436_v38 = vld [vmem:[%s6626_s14 + $0x3c0] sm:$0xff]  ;;  %v2437_v16 = vld [vmem:[%s6626_s14 + $0x3c8] sm:$0xff] }
 0x2ec   : > { %v2221_v49 = vrot.slane %v1811_v39, %v7342_v48  ;;  %v2577_v47 = vpop.xlane.xlu1 %2576  ;;  %v2493_v39 = vld [vmem:[%s6626_s14 + $0x588] sm:$0xff] }
 0x2ed   : > { %v3114_v3 = vrot.slane %v2577_v47, %v7303_v62 }
 0x2ee   : > { %v2222_v54 = vsel %vm1946_vm6, %v2221_v49, %v2217_v51  ;;  %2744 = vadd.xlane.f32.xlu0 %v7567_v24  ;;  %v2552_v51 = vld [vmem:[%s6626_s14 + $0x760] sm:$0xff] }
 0x2ef   : > { %v2574_v32 = vpop.xlane.xlu0 %2573  ;;  %v2227_v15 = vsel %vm1953_vm7, %v2226_v60, %v2222_v54  ;;  %2879 = vadd.xlane.f32.xlu1 %v7593_v0  ;;  %v2492_v60 = vld [vmem:[%s6626_s14 + $0x580] sm:$0xff]  ;;  %v2553_v54 = vld [vmem:[%s6626_s14 + $0x768] sm:$0xff] }
 0x2f0   : > { %v3110_v22 = vrot.slane %v2574_v32, %v7319_v17  ;;  %v2241_v24 = vsel %vm2240_vm14, %v2227_v15, %v2239_v14  ;;  %v2625_v55 = vpop.xlane.xlu1 %2624  ;;  %v2836_v47 = vadd.f32 %v2493_v39, %v2492_v60  ;;  %v2405_v32 = vld [vmem:[%s6626_s14 + $0x2c8] sm:$0xff]  ;;  %v2926_v14 = vadd.f32 %v2553_v54, %v2552_v51  ;;  %v2554_v39 = vld [vmem:[%s6626_s14 + $0x770] sm:$0xff]  ;;  %v2376_v54 = vld [vmem:[%s6626_s14 + $0x1e0] sm:$0xff] }
 0x2f1   : > { %5335 = vmatmul.mubr.msk.f32.vlgmr.msra.gmra.mrb[0].mxu0 %vm2242_vm15, %v2241_v24  ;;  %v3209_v0 = vrot.slane %v2625_v55, %v7303_v62 }
 0x2f2   : > { %v3115_v35 = vsel %vm1911_vm1, %v3114_v3, %v3110_v22  ;;  %2834 = vadd.xlane.f32.xlu0 %v2833_v56  ;;  %v2404_v56 = vld [vmem:[%s6626_s14 + $0x2c0] sm:$0xff]  ;;  %v2375_v22 = vld [vmem:[%s6626_s14 + $0x1d8] sm:$0xff] }
 0x2f3   : > { %v2622_v1 = vpop.xlane.xlu0 %2621  ;;  %2609 = vadd.xlane.f32.xlu1 %v2608_v36  ;;  %v2704_v59 = vadd.f32 %v2405_v32, %v2404_v56 }
 0x2f4   : > { %v3205_v11 = vrot.slane %v2622_v1, %v7319_v17  ;;  %v2628_v4 = vpop.xlane.xlu1 %2627 }
 0x2f5   : > { %v3214_v43 = vrot.slane %v2628_v4, %v7311_v7 }
 0x2f6   : > { %v3210_v6 = vsel %vm1911_vm1, %v3209_v0, %v3205_v11  ;;  %2924 = vadd.xlane.f32.xlu0 %v2923_v21  ;;  %v2659_v21 = vadd.f32 %v2375_v22, %v2374_v13  ;;  %v2435_v11 = vld [vmem:[%s6626_s14 + $0x3b8] sm:$0xff] }
 0x2f7   : > { %v3215_v37 = vsel %vm1918_vm2, %v3214_v43, %v3210_v6  ;;  %v2580_v57 = vpop.xlane.xlu0 %2579  ;;  %2702 = vadd.xlane.f32.xlu1 %v2701_v33  ;;  %v2524_v43 = vld [vmem:[%s6626_s14 + $0x680] sm:$0xff]  ;;  %v2525_v6 = vld [vmem:[%s6626_s14 + $0x688] sm:$0xff] }
 0x2f8   : > { %v3119_v8 = vrot.slane %v2580_v57, %v7311_v7  ;;  %v2673_v41 = vpop.xlane.xlu1 %2672  ;;  %v2749_v57 = vadd.f32 %v2435_v11, %v2434_v50  ;;  %v2884_v34 = vadd.f32 %v2525_v6, %v2524_v43  ;;  %v2752_v50 = vadd.f32 %v2437_v16, %v2436_v38  ;;  %v2497_v43 = vld [vmem:[%s6626_s14 + $0x5a8] sm:$0xff] }
 0x2f9   : > { %v3288_v10 = vrot.slane %v2673_v41, %v7303_v62  ;;  %v2495_v41 = vld [vmem:[%s6626_s14 + $0x598] sm:$0xff] }
 0x2fa   : > { %v3120_v23 = vsel %vm1918_vm2, %v3119_v8, %v3115_v35  ;;  %2657 = vadd.xlane.f32.xlu0 %v2656_v25  ;;  %v2494_v8 = vld [vmem:[%s6626_s14 + $0x590] sm:$0xff] }
 0x2fb   : > { %v2670_v9 = vpop.xlane.xlu0 %2669  ;;  %2792 = vadd.xlane.f32.xlu1 %v2791_v58 }
 0x2fc   : > { %v3284_v40 = vrot.slane %v2670_v9, %v7319_v17  ;;  %v2631_v18 = vpop.xlane.xlu1 %2630  ;;  %v2839_v9 = vadd.f32 %v2495_v41, %v2494_v8 }
 0x2fd   : > { %v3219_v12 = vrot.slane %v2631_v18, %v7322_v19 }
 0x2fe   : > { %v3289_v49 = vsel %vm1911_vm1, %v3288_v10, %v3284_v40  ;;  %2747 = vadd.xlane.f32.xlu0 %v2746_v61  ;;  %v2345_v10 = vld [vmem:[%s6626_s14 + $0xe8] sm:$0xff]  ;;  %v2555_v40 = vld [vmem:[%s6626_s14 + $0x778] sm:$0xff] }
 0x2ff   : > { %v3220_v5 = vsel %vm1925_vm3, %v3219_v12, %v3215_v37  ;;  %v2583_v46 = vpop.xlane.xlu0 %2582  ;;  %2882 = vadd.xlane.f32.xlu1 %v2881_v28  ;;  %v2407_v12 = vld [vmem:[%s6626_s14 + $0x2d8] sm:$0xff] }
 0x300   : > { %v3124_v3 = vrot.slane %v2583_v46, %v7322_v19  ;;  %v2718_v27 = vpop.xlane.xlu1 %2717  ;;  %v2707_v51 = vadd.f32 %v2407_v12, %v2406_v63  ;;  %v2378_v63 = vld [vmem:[%s6626_s14 + $0x1f0] sm:$0xff]  ;;  %v2379_v12 = vld [vmem:[%s6626_s14 + $0x1f8] sm:$0xff] }
 0x301   : > { %v3363_v4 = vrot.slane %v2718_v27, %v7319_v17 }
 0x302   : > { %v3125_v15 = vsel %vm1925_vm3, %v3124_v3, %v3120_v23  ;;  %2837 = vadd.xlane.f32.xlu0 %v2836_v47  ;;  %v2344_v23 = vld [vmem:[%s6626_s14 + $0xe0] sm:$0xff]  ;;  %v2377_v3 = vld [vmem:[%s6626_s14 + $0x1e8] sm:$0xff] }
 0x303   : > { %v2676_v36 = vpop.xlane.xlu0 %2675  ;;  %2612 = vadd.xlane.f32.xlu1 %v2611_v53  ;;  %v2614_v60 = vadd.f32 %v2345_v10, %v2344_v23  ;;  %v2662_v13 = vadd.f32 %v2377_v3, %v2376_v54  ;;  %v2665_v3 = vadd.f32 %v2379_v12, %v2378_v63 }
 0x304   : > { %v3293_v24 = vrot.slane %v2676_v36, %v7311_v7  ;;  %v2586_v55 = vpop.xlane.xlu1 %2585 }
 0x305   : > { %v3129_v35 = vrot.slane %v2586_v55, %v7330_v29 }
 0x306   : > { %v3294_v0 = vsel %vm1918_vm2, %v3293_v24, %v3289_v49  ;;  %2927 = vadd.xlane.f32.xlu0 %v2926_v14  ;;  %v2467_v14 = vld [vmem:[%s6626_s14 + $0x4b8] sm:$0xff] }
 0x307   : > { %v3130_v1 = vsel %vm1932_vm4, %v3129_v35, %v3125_v15  ;;  %v2721_v33 = vpop.xlane.xlu0 %2720  ;;  %2705 = vadd.xlane.f32.xlu1 %v2704_v59  ;;  %v2466_v15 = vld [vmem:[%s6626_s14 + $0x4b0] sm:$0xff] }
 0x308   : > { %v3367_v45 = vrot.slane %v2721_v33, %v7303_v62  ;;  %v2679_v20 = vpop.xlane.xlu1 %2678  ;;  %v2797_v55 = vadd.f32 %v2467_v14, %v2466_v15  ;;  %v2438_v15 = vld [vmem:[%s6626_s14 + $0x3d0] sm:$0xff]  ;;  %v2439_v14 = vld [vmem:[%s6626_s14 + $0x3d8] sm:$0xff] }
 0x309   : > { %v3298_v25 = vrot.slane %v2679_v20, %v7322_v19  ;;  %v2496_v20 = vld [vmem:[%s6626_s14 + $0x5a0] sm:$0xff]  ;;  %v2755_v38 = vadd.f32 %v2439_v14, %v2438_v15 }
 0x30a   : > { %v3368_v37 = vsel %vm1911_vm1, %v3367_v45, %v3363_v4  ;;  %2660 = vadd.xlane.f32.xlu0 %v2659_v21  ;;  %v2526_v21 = vld [vmem:[%s6626_s14 + $0x690] sm:$0xff] }
 0x30b   : > { %v3299_v58 = vsel %vm1925_vm3, %v3298_v25, %v3294_v0  ;;  %v2634_v42 = vpop.xlane.xlu0 %2633  ;;  %2795 = vadd.xlane.f32.xlu1 %v2794_v2 }
 0x30c   : > { %v3224_v26 = vrot.slane %v2634_v42, %v7330_v29  ;;  %v2766_v30 = vpop.xlane.xlu1 %2765 }
 0x30d   : > { %v3442_v27 = vrot.slane %v2766_v30, %v7319_v17  ;;  %v2557_v30 = vld [vmem:[%s6626_s14 + $0x788] sm:$0xff] }
 0x30e   : > { %v3225_v61 = vsel %vm1932_vm4, %v3224_v26, %v3220_v5  ;;  %2750 = vadd.xlane.f32.xlu0 %v2749_v57  ;;  %v2929_v5 = vadd.f32 %v2555_v40, %v2554_v39  ;;  %v2347_v57 = vld [vmem:[%s6626_s14 + $0xf8] sm:$0xff]  ;;  %v2556_v26 = vld [vmem:[%s6626_s14 + $0x780] sm:$0xff] }
 0x30f   : > { %v2724_v28 = vpop.xlane.xlu0 %2723  ;;  %2885 = vadd.xlane.f32.xlu1 %v2884_v34  ;;  %v2842_v34 = vadd.f32 %v2497_v43, %v2496_v20  ;;  %v2932_v39 = vadd.f32 %v2557_v30, %v2556_v26  ;;  %v2558_v43 = vld [vmem:[%s6626_s14 + $0x790] sm:$0xff] }
 0x310   : > { %v3372_v18 = vrot.slane %v2724_v28, %v7311_v7  ;;  %v2589_v31 = vpop.xlane.xlu1 %2588 }
 0x311   : > { %v3134_v49 = vrot.slane %v2589_v31, %v7337_v44 }
 0x312   : > { %v3373_v47 = vsel %vm1918_vm2, %v3372_v18, %v3368_v37  ;;  %2840 = vadd.xlane.f32.xlu0 %v2839_v9  ;;  %v2346_v37 = vld [vmem:[%s6626_s14 + $0xf0] sm:$0xff]  ;;  %v2409_v9 = vld [vmem:[%s6626_s14 + $0x2e8] sm:$0xff] }
 0x313   : > { %v7751_v46 = vsel %vm1939_vm5, %v3134_v49, %v3130_v1  ;;  %v2769_v53 = vpop.xlane.xlu0 %2768  ;;  %2615 = vadd.xlane.f32.xlu1 %v2614_v60  ;;  %v2527_v1 = vld [vmem:[%s6626_s14 + $0x698] sm:$0xff]  ;;  %v2617_v41 = vadd.f32 %v2347_v57, %v2346_v37  ;;  %v2470_v57 = vld [vmem:[%s6626_s14 + $0x4d0] sm:$0xff] }
 0x314   : > { %v3446_v56 = vrot.slane %v2769_v53, %v7303_v62  ;;  %v2682_v32 = vpop.xlane.xlu1 %2681  ;;  %v2887_v45 = vadd.f32 %v2527_v1, %v2526_v21  ;;  %v2469_v53 = vld [vmem:[%s6626_s14 + $0x4c8] sm:$0xff]  ;;  %v2498_v21 = vld [vmem:[%s6626_s14 + $0x5b0] sm:$0xff]  ;;  %v2499_v1 = vld [vmem:[%s6626_s14 + $0x5b8] sm:$0xff] }
 0x315   : > { %v3303_v36 = vrot.slane %v2682_v32, %v7330_v29 }
 0x316   : > { %v3447_v59 = vsel %vm1911_vm1, %v3446_v56, %v3442_v27  ;;  %2930 = vadd.xlane.f32.xlu0 %v2929_v5  ;;  %v2468_v5 = vld [vmem:[%s6626_s14 + $0x4c0] sm:$0xff] }
 0x317   : > { %v7762_v22 = vsel %vm1932_vm4, %v3303_v36, %v3299_v58  ;;  %v2637_v24 = vpop.xlane.xlu0 %2636  ;;  %2708 = vadd.xlane.f32.xlu1 %v2707_v51  ;;  %v2800_v32 = vadd.f32 %v2469_v53, %v2468_v5 }
 0x318   : > { %v3229_v35 = vrot.slane %v2637_v24, %v7337_v44  ;;  %v2772_v0 = vpop.xlane.xlu1 %2771  ;;  %v2529_v24 = vld [vmem:[%s6626_s14 + $0x6a8] sm:$0xff] }
 0x319   : > { %v3451_v33 = vrot.slane %v2772_v0, %v7311_v7 }
 0x31a   : > { %v3230_v2 = vsel %vm1939_vm5, %v3229_v35, %v3225_v61  ;;  %2663 = vadd.xlane.f32.xlu0 %v2662_v13  ;;  %v2408_v61 = vld [vmem:[%s6626_s14 + $0x2e0] sm:$0xff] }
 0x31b   : > { %v7772_v11 = vsel %vm1918_vm2, %v3451_v33, %v3447_v59  ;;  %v2727_v4 = vpop.xlane.xlu0 %2726  ;;  %2798 = vadd.xlane.f32.xlu1 %v2797_v55  ;;  %v2710_v31 = vadd.f32 %v2409_v9, %v2408_v61  ;;  %v2528_v13 = vld [vmem:[%s6626_s14 + $0x6a0] sm:$0xff] }
 0x31c   : > { %v3377_v6 = vrot.slane %v2727_v4, %v7322_v19  ;;  %v2817_v25 = vpop.xlane.xlu1 %2816  ;;  %v2890_v0 = vadd.f32 %v2529_v24, %v2528_v13  ;;  %v2845_v4 = vadd.f32 %v2499_v1, %v2498_v21  ;;  %v2560_v24 = vld [vmem:[%s6626_s14 + $0x7a0] sm:$0xff]  ;;  %v2503_v21 = vld [vmem:[%s6626_s14 + $0x5d8] sm:$0xff] }
 0x31d   : > { %v3525_v42 = vrot.slane %v2817_v25, %v7303_v62  ;;  %v8986_v1 = vld [vmem:[#allocation34_spill] sm:$0xff] }
 0x31e   : > { %v3378_v58 = vsel %vm1925_vm3, %v3377_v6, %v3373_v47  ;;  %2753 = vadd.xlane.f32.xlu0 %v2752_v50  ;;  %v2411_v50 = vld [vmem:[%s6626_s14 + $0x2f8] sm:$0xff] }
 0x31f   : > { %v2814_v8 = vpop.xlane.xlu0 %2813  ;;  %2888 = vadd.xlane.f32.xlu1 %v2887_v45  ;;  %v2559_v6 = vld [vmem:[%s6626_s14 + $0x798] sm:$0xff] }
 0x320   : > { %v3521_v23 = vrot.slane %v2814_v8, %v7319_v17  ;;  %v2640_v10 = vpop.xlane.xlu1 %2639  ;;  %v2935_v8 = vadd.f32 %v2559_v6, %v2558_v43  ;;  %v2563_v6 = vld [vmem:[%s6626_s14 + $0x7b8] sm:$0xff] }
 0x321   : > { %v3234_v28 = vrot.slane %v2640_v10, %v7342_v48  ;;  %v2441_v10 = vld [vmem:[%s6626_s14 + $0x3e8] sm:$0xff] }
 0x322   : > { %v3526_v60 = vsel %vm1911_vm1, %v3525_v42, %v3521_v23  ;;  %2843 = vadd.xlane.f32.xlu0 %v2842_v34  ;;  %v2440_v23 = vld [vmem:[%s6626_s14 + $0x3e0] sm:$0xff] }
 0x323   : > { %v3235_v40 = vsel %vm1946_vm6, %v3234_v28, %v3230_v2  ;;  %v2592_v18 = vpop.xlane.xlu0 %2591  ;;  %2618 = vadd.xlane.f32.xlu1 %v2617_v41  ;;  %v2410_v2 = vld [vmem:[%s6626_s14 + $0x2f0] sm:$0xff] }
 0x324   : > { %v3139_v49 = vrot.slane %v2592_v18, %v7342_v48  ;;  %v2730_v47 = vpop.xlane.xlu1 %2729  ;;  %v2713_v20 = vadd.f32 %v2411_v50, %v2410_v2  ;;  %v2530_v28 = vld [vmem:[%s6626_s14 + $0x6b0] sm:$0xff] }
 0x325   : > { %v3382_v51 = vrot.slane %v2730_v47, %v7330_v29  ;;  %v2501_v47 = vld [vmem:[%s6626_s14 + $0x5c8] sm:$0xff] }
 0x326   : > { %v3140_v54 = vsel %vm1946_vm6, %v3139_v49, %v7751_v46  ;;  %2933 = vadd.xlane.f32.xlu0 %v2932_v39  ;;  %v2500_v49 = vld [vmem:[%s6626_s14 + $0x5c0] sm:$0xff] }
 0x327   : > { %v3383_v27 = vsel %vm1932_vm4, %v3382_v51, %v3378_v58  ;;  %v2685_v56 = vpop.xlane.xlu0 %2684  ;;  %2711 = vadd.xlane.f32.xlu1 %v2710_v31  ;;  %v2471_v58 = vld [vmem:[%s6626_s14 + $0x4d8] sm:$0xff]  ;;  %v2442_v51 = vld [vmem:[%s6626_s14 + $0x3f0] sm:$0xff]  ;;  %v2848_v14 = vadd.f32 %v2501_v47, %v2500_v49  ;;  %v2564_v47 = vld [vmem:[%s6626_s14 + $0x7c0] sm:$0xff] }
 0x328   : > { %v3308_v36 = vrot.slane %v2685_v56, %v7337_v44  ;;  %v2820_v59 = vpop.xlane.xlu1 %2819  ;;  %v2803_v30 = vadd.f32 %v2471_v58, %v2470_v57  ;;  %v8985_v56 = vld [vmem:[#allocation33_spill] sm:$0xff] }
 0x329   : > { %v3530_v46 = vrot.slane %v2820_v59, %v7311_v7 }
 0x32a   : > { %v3309_v55 = vsel %vm1939_vm5, %v3308_v36, %v7762_v22  ;;  %2666 = vadd.xlane.f32.xlu0 %v2665_v3  ;;  %v2443_v3 = vld [vmem:[%s6626_s14 + $0x3f8] sm:$0xff] }
 0x32b   : > { %v3531_v16 = vsel %vm1918_vm2, %v3530_v46, %v3526_v60  ;;  %v7807_v35 = vpop.xlane.xlu0 %2774  ;;  %2801 = vadd.xlane.f32.xlu1 %v2800_v32  ;;  %v2531_v60 = vld [vmem:[%s6626_s14 + $0x6b8] sm:$0xff]  ;;  %v3146_v32 = vadd.s32 4294967232, %v8985_v56  ;;  %v2761_v13 = vadd.f32 %v2443_v3, %v2442_v51  ;;  %v2561_v46 = vld [vmem:[%s6626_s14 + $0x7a8] sm:$0xff]  ;;  %v2534_v51 = vld [vmem:[%s6626_s14 + $0x6d0] sm:$0xff] }
 0x32c   : > { %v2865_v33 = vpop.xlane.xlu1 %2864  ;;  %v2893_v12 = vadd.f32 %v2531_v60, %v2530_v28  ;;  %v2938_v2 = vadd.f32 %v2561_v46, %v2560_v24  ;;  %v2535_v3 = vld [vmem:[%s6626_s14 + $0x6d8] sm:$0xff] }
 0x32d   : > { %v3604_v22 = vrot.slane %v2865_v33, %v7303_v62 }
 0x32e   : > { %2756 = vadd.xlane.f32.xlu0 %v2755_v38 }
 0x32f   : > { %v2862_v45 = vpop.xlane.xlu0 %2861  ;;  %2891 = vadd.xlane.f32.xlu1 %v2890_v0  ;;  %v2502_v0 = vld [vmem:[%s6626_s14 + $0x5d0] sm:$0xff] }
 0x330   : > { %v3600_v25 = vrot.slane %v2862_v45, %v7319_v17  ;;  %v2643_v37 = vpop.xlane.xlu1 %2642  ;;  %v2473_v45 = vld [vmem:[%s6626_s14 + $0x4e8] sm:$0xff] }
 0x331   : > { %v3239_v42 = vrot.slane %v2643_v37, %v7353_v52 }
 0x332   : > { %v3605_v34 = vsel %vm1911_vm1, %v3604_v22, %v3600_v25  ;;  %2846 = vadd.xlane.f32.xlu0 %v2845_v4  ;;  %v2851_v22 = vadd.f32 %v2503_v21, %v2502_v0  ;;  %v2472_v4 = vld [vmem:[%s6626_s14 + $0x4e0] sm:$0xff]  ;;  %v2539_v0 = vld [vmem:[%s6626_s14 + $0x6f8] sm:$0xff] }
 0x333   : > { %v7822_v41 = vsel %vm1953_vm7, %v3239_v42, %v3235_v40  ;;  %v2595_v26 = vpop.xlane.xlu0 %2594  ;;  %2714 = vadd.xlane.f32.xlu1 %v2713_v20  ;;  %v2758_v40 = vadd.f32 %v2441_v10, %v2440_v23  ;;  %v2806_v57 = vadd.f32 %v2473_v45, %v2472_v4 }
 0x334   : > { %v3144_v61 = vrot.slane %v2595_v26, %v7353_v52  ;;  %v2733_v9 = vpop.xlane.xlu1 %2732  ;;  %v2532_v26 = vld [vmem:[%s6626_s14 + $0x6c0] sm:$0xff] }
 0x335   : > { %v3387_v39 = vrot.slane %v2733_v9, %v7337_v44  ;;  %v2505_v9 = vld [vmem:[%s6626_s14 + $0x5e8] sm:$0xff] }
 0x336   : > { %v3145_v18 = vsel %vm1953_vm7, %v3144_v61, %v3140_v54  ;;  %2936 = vadd.xlane.f32.xlu0 %v2935_v8  ;;  %v3456_v54 = vrot.slane %v7807_v35, %v7322_v19 }
 0x337   : > { %v7832_v31 = vsel %vm1939_vm5, %v3387_v39, %v3383_v27  ;;  %v2688_v63 = vpop.xlane.xlu0 %2687  ;;  %2804 = vadd.xlane.f32.xlu1 %v2803_v30  ;;  %v2533_v30 = vld [vmem:[%s6626_s14 + $0x6c8] sm:$0xff] }
 0x338   : > { %v3313_v5 = vrot.slane %v2688_v63, %v7342_v48  ;;  %v2823_v53 = vpop.xlane.xlu1 %2822  ;;  %v2896_v39 = vadd.f32 %v2533_v30, %v2532_v26  ;;  %v2475_v63 = vld [vmem:[%s6626_s14 + $0x4f8] sm:$0xff] }
 0x339   : > { %v3535_v27 = vrot.slane %v2823_v53, %v7322_v19 }
 0x33a   : > { %v3314_v15 = vsel %vm1946_vm6, %v3313_v5, %v3309_v55  ;;  %2759 = vadd.xlane.f32.xlu0 %v2758_v40  ;;  %v3457_v55 = vsel %vm1925_vm3, %v3456_v54, %v7772_v11  ;;  %v2562_v11 = vld [vmem:[%s6626_s14 + $0x7b0] sm:$0xff]  ;;  %v2565_v5 = vld [vmem:[%s6626_s14 + $0x7c8] sm:$0xff]  ;;  %v3153_v54 = vadd.s32 4294967224, %v8985_v56 }
 0x33b   : > { %v7845_v36 = vsel %vm1925_vm3, %v3535_v27, %v3531_v16  ;;  %v2778_v59 = vpop.xlane.xlu0 %2777  ;;  %2894 = vadd.xlane.f32.xlu1 %v2893_v12  ;;  %v7855_v16 = vsub.s32 %v3146_v32, %v8986_v1  ;;  %v2941_v8 = vadd.f32 %v2563_v6, %v2562_v11  ;;  %v2474_v40 = vld [vmem:[%s6626_s14 + $0x4f0] sm:$0xff]  ;;  %v2944_v46 = vadd.f32 %v2565_v5, %v2564_v47 }
 0x33c   : > { %v3461_v38 = vrot.slane %v2778_v59, %v7330_v29  ;;  %v2910_v35 = vpop.xlane.xlu1 %2909  ;;  %v2809_v32 = vadd.f32 %v2475_v63, %v2474_v40  ;;  %v2506_v59 = vld [vmem:[%s6626_s14 + $0x5f0] sm:$0xff]  ;;  %v7912_v45 = vsub.s32 %v3153_v54, %v8986_v1  ;;  %v2899_v6 = vadd.f32 %v2535_v3, %v2534_v51  ;;  %v2571_v40 = vld [vmem:[%s6626_s14 + $0x7f8] sm:$0xff]  ;;  %v3851_v63 = vld [vmem:[%s6632_s1 + $0x88] sm:$0xff] }
 0x33d   : > { %v3679_v23 = vrot.slane %v2910_v35, %v7319_v17  ;;  %v2538_v35 = vld [vmem:[%s6626_s14 + $0x6f0] sm:$0xff]  ;;  %v4189_v54 = vld [vmem:[#allocation16 + $0x98] sm:$0xff] }
 0x33e   : > { %v3462_v33 = vsel %vm1932_vm4, %v3461_v38, %v3457_v55  ;;  %2849 = vadd.xlane.f32.xlu0 %v2848_v14  ;;  %v2537_v14 = vld [vmem:[%s6626_s14 + $0x6e8] sm:$0xff]  ;;  %v2507_v38 = vld [vmem:[%s6626_s14 + $0x5f8] sm:$0xff]  ;;  %v2566_v55 = vld [vmem:[%s6626_s14 + $0x7d0] sm:$0xff] }
 0x33f   : > { %v2868_v50 = vpop.xlane.xlu0 %2867  ;;  %2762 = vadd.xlane.f32.xlu1 %v2761_v13  ;;  %v4188_v3 = vld [vmem:[#allocation16 + $0x90] sm:$0xff] }
 0x340   : > { %v3609_v20 = vrot.slane %v2868_v50, %v7311_v7  ;;  %v2598_v43 = vpop.xlane.xlu1 %2597  ;;  %v2568_v50 = vld [vmem:[%s6626_s14 + $0x7e0] sm:$0xff] }
 0x341   : > { %v3150_v25 = vrot.slane %v2598_v43, %v7855_v16  ;;  %v3835_v43 = vld [vmem:[%s6632_s1 + $0x8] sm:$0xff] }
 0x342   : > { %v7865_v37 = vsel %vm1918_vm2, %v3609_v20, %v3605_v34  ;;  %2939 = vadd.xlane.f32.xlu0 %v2938_v2  ;;  %v2504_v34 = vld [vmem:[%s6626_s14 + $0x5e0] sm:$0xff]  ;;  %v2567_v2 = vld [vmem:[%s6626_s14 + $0x7d8] sm:$0xff]  ;;  %v4187_v20 = vld [vmem:[#allocation16 + $0x88] sm:$0xff] }
 0x343   : > { %v7868_v58 = vsel %vm3151_vm0, %v3150_v25, %v3145_v18  ;;  %v2913_v42 = vpop.xlane.xlu0 %2912  ;;  %2852 = vadd.xlane.f32.xlu1 %v2851_v22  ;;  %v2569_v22 = vld [vmem:[%s6626_s14 + $0x7e8] sm:$0xff] }
 0x344   : > { %v3683_v10 = vrot.slane %v2913_v42, %v7303_v62  ;;  %v2691_v61 = vpop.xlane.xlu1 %2690  ;;  %v2854_v62 = vadd.f32 %v2505_v9, %v2504_v34  ;;  %v2957_v42 = vld [vmem:[#allocation13 + $0x8] sm:$0xff]  ;;  %v3837_v34 = vld [vmem:[%s6632_s1 + $0x18] sm:$0xff]  ;;  %v7934_v51 = vadd.f32 %v2569_v22, %v2568_v50 }
 0x345   : > { %v3318_v28 = vrot.slane %v2691_v61, %v7353_v52  ;;  %v4171_v61 = vld [vmem:[#allocation16 + $0x8] sm:$0xff]  ;;  %v3975_v47 = vadd.f32 %v3837_v34, %v3835_v43  ;;  %v3857_v50 = vld [vmem:[%s6632_s1 + $0xb8] sm:$0xff] }
 0x346   : > { %v7878_v60 = vsel %vm1911_vm1, %v3683_v10, %v3679_v23  ;;  %2807 = vadd.xlane.f32.xlu0 %v2806_v57  ;;  %vm3158_vm1 = vcmask 654912   ;;  %v2956_v57 = vld [vmem:[#allocation13] sm:$0xff]  ;;  %v2857_v23 = vadd.f32 %v2507_v38, %v2506_v59  ;;  %v5412_v59 = vpack.c.bf16 %v4189_v54, %v4188_v3  ;;  %v4172_v38 = vld [vmem:[#allocation16 + $0x10] sm:$0xff] }
 0x347   : > { %v7881_v18 = vsel %vm1953_vm7, %v3318_v28, %v3314_v15  ;;  %v2646_v17 = vpop.xlane.xlu0 %2645  ;;  %2942 = vadd.xlane.f32.xlu1 %v2941_v8  ;;  %v2536_v15 = vld [vmem:[%s6626_s14 + $0x6e0] sm:$0xff]  ;;  %v5385_v10 = vpack.c.bf16 %v2957_v42, %v2956_v57  ;;  %v3839_v9 = vld [vmem:[%s6632_s1 + $0x28] sm:$0xff] }
 0x348   : > { %v3244_v12 = vrot.slane %v2646_v17, %v7855_v16  ;;  %v2781_v49 = vpop.xlane.xlu1 %2780  ;;  %v4170_v8 = vld [vmem:[#allocation16] sm:$0xff]  ;;  %v2905_v17 = vadd.f32 %v2539_v0, %v2538_v35  ;;  %v3976_v35 = vadd.f32 %v3975_v47, %v3839_v9 }
 0x349   : > { %v3466_v53 = vrot.slane %v2781_v49, %v7337_v44  ;;  %v3855_v49 = vld [vmem:[%s6632_s1 + $0xa8] sm:$0xff]  ;;  %5386 = vmatpush3.bf16.msra.mxu1 %v5385_v10  ;;  %v3845_v10 = vld [vmem:[%s6632_s1 + $0x58] sm:$0xff] }
 0x34a   : > { %v7894_v27 = vsel %vm3151_vm0, %v3244_v12, %v7822_v41  ;;  %2897 = vadd.xlane.f32.xlu0 %v2896_v39  ;;  %v3853_v12 = vld [vmem:[%s6632_s1 + $0x98] sm:$0xff] }
 0x34b   : > { %v7900_v13 = vsel %vm1939_vm5, %v3466_v53, %v3462_v33  ;;  %v2736_v24 = vpop.xlane.xlu0 %2735  ;;  %2855 = vadd.xlane.f32.xlu1 %v2854_v62  ;;  %v4186_v33 = vld [vmem:[#allocation16 + $0x80] sm:$0xff]  ;;  %v2570_v62 = vld [vmem:[%s6626_s14 + $0x7f0] sm:$0xff]  ;;  %v7932_v53 = vadd.f32 %v2567_v2, %v2566_v55  ;;  %v4173_v55 = vld [vmem:[#allocation16 + $0x18] sm:$0xff] }
 0x34c   : > { %v3392_v41 = vrot.slane %v2736_v24, %v7342_v48  ;;  %v2871_v21 = vpop.xlane.xlu1 %2870  ;;  %v5408_v25 = vpack.c.bf16 %v4187_v20, %v4186_v33  ;;  %v2958_v24 = vld [vmem:[#allocation13 + $0x10] sm:$0xff]  ;;  %v3843_v2 = vld [vmem:[%s6632_s1 + $0x48] sm:$0xff]  ;;  %v3160_v20 = vadd.s32 4294967216, %v8985_v56  ;;  %v5414_v43 = vpack.c.bf16 %v4173_v55, %v4172_v38 }
 0x34d   : > { %v3614_v4 = vrot.slane %v2871_v21, %v7322_v19  ;;  %v8987_v21 = vmov 0.0|0.0   ;;  %v4192_v38 = vld [vmem:[#allocation16 + $0xb0] sm:$0xff] }
 0x34e   : > { %v7917_v11 = vsel %vm1946_vm6, %v3392_v41, %v7832_v31  ;;  %2810 = vadd.xlane.f32.xlu0 %v2809_v32  ;;  %v2902_v31 = vadd.f32 %v2537_v14, %v2536_v15  ;;  %5409 = vmatprep.subr.bf16.mxu0 %v5408_v25  ;;  %v3841_v32 = vld [vmem:[%s6632_s1 + $0x38] sm:$0xff]  ;;  %v4001_v15 = vadd.f32 %v3853_v12, %v3851_v63  ;;  %v4175_v12 = vld [vmem:[#allocation16 + $0x28] sm:$0xff] }
 0x34f   : > { %v7921_v26 = vsel %vm1925_vm3, %v3614_v4, %v7865_v37  ;;  %v2826_v30 = vpop.xlane.xlu0 %2825  ;;  %2945 = vadd.xlane.f32.xlu1 %v2944_v46  ;;  %v5410_v37 = vpack.c.bf16 %v4171_v61, %v4170_v8  ;;  %v2959_v46 = vld [vmem:[#allocation13 + $0x18] sm:$0xff]  ;;  %5387 = vmatprep.subr.bf16.mxu1 %v8987_v21  ;;  %v3977_v57 = vadd.f32 %v3976_v35, %v3841_v32  ;;  %v3863_v32 = vld [vmem:[%s6632_s1 + $0xe8] sm:$0xff] }
 0x350   : > { %v3540_v28 = vrot.slane %v2826_v30, %v7330_v29  ;;  %v2601_v39 = vpop.xlane.xlu1 %2600  ;;  %v4002_v22 = vadd.f32 %v4001_v15, %v3855_v49  ;;  %v3869_v25 = vld [vmem:[%s6632_s1 + $0x118] sm:$0xff]  ;;  %v2953_v8 = vadd.f32 %v2571_v40, %v2570_v62  ;;  %v4190_v30 = vld [vmem:[#allocation16 + $0xa0] sm:$0xff]  ;;  %v7968_v54 = vsub.s32 %v3160_v20, %v8986_v1 }
 0x351   : > { %v3157_v5 = vrot.slane %v2601_v39, %v7912_v45  ;;  %5411 = vmatpush3.bf16.msra.mxu0 %v5410_v37  ;;  %v2961_v39 = vld [vmem:[#allocation13 + $0x28] sm:$0xff]  ;;  %v3978_v62 = vadd.f32 %v3977_v57, %v3843_v2  ;;  %v3861_v49 = vld [vmem:[%s6632_s1 + $0xd8] sm:$0xff] }
 0x352   : > { %v7939_v14 = vsel %vm1932_vm4, %v3540_v28, %v7845_v36  ;;  %2900 = vadd.xlane.f32.xlu0 %v2899_v6  ;;  %v5388_v36 = vpack.c.bf16 %v2959_v46, %v2958_v24  ;;  %5413 = vmatprep.subr.bf16.mxu0 %v5412_v59  ;;  %v3867_v6 = vld [vmem:[%s6632_s1 + $0x108] sm:$0xff]  ;;  %v4003_v61 = vadd.f32 %v4002_v22, %v3857_v50  ;;  %v3873_v59 = vld [vmem:[%s6632_s1 + $0x138] sm:$0xff]  ;;  %v3167_v46 = vadd.s32 4294967208, %v8985_v56 }
 0x353   : > { %v7943_v0 = vsel %vm3158_vm1, %v3157_v5, %v7868_v58  ;;  %v2916_v41 = vpop.xlane.xlu0 %2915  ;;  %2903 = vadd.xlane.f32.xlu1 %v2902_v31  ;;  %v3859_v58 = vld [vmem:[%s6632_s1 + $0xc8] sm:$0xff]  ;;  %v4027_v34 = vadd.f32 %v3869_v25, %v3867_v6  ;;  %v4193_v35 = vld [vmem:[#allocation16 + $0xb8] sm:$0xff]  ;;  %v2962_v22 = vld [vmem:[#allocation13 + $0x30] sm:$0xff] }
 0x354   : > { %v3688_v4 = vrot.slane %v2916_v41, %v7311_v7  ;;  %v2694_v33 = vpop.xlane.xlu1 %2693  ;;  %5389 = vmatpush3.bf16.msra.mxu1 %v5388_v36  ;;  %v4191_v31 = vld [vmem:[#allocation16 + $0xa8] sm:$0xff]  ;;  %v2960_v28 = vld [vmem:[#allocation13 + $0x20] sm:$0xff]  ;;  %v4004_v47 = vadd.f32 %v4003_v61, %v3859_v58  ;;  %v3849_v41 = vld [vmem:[%s6632_s1 + $0x78] sm:$0xff]  ;;  %v5420_v50 = vpack.c.bf16 %v4193_v35, %v4192_v38 }
 0x355   : > { %v3323_v42 = vrot.slane %v2694_v33, %v7855_v16  ;;  %5415 = vmatpush3.bf16.msra.mxu0 %v5414_v43  ;;  %v5416_v9 = vpack.c.bf16 %v4191_v31, %v4190_v30  ;;  %v4174_v37 = vld [vmem:[#allocation16 + $0x20] sm:$0xff]  ;;  %5390 = vmatprep.subr.bf16.mxu1 %v8987_v21  ;;  %v4176_v33 = vld [vmem:[#allocation16 + $0x30] sm:$0xff]  ;;  %v4177_v6 = vld [vmem:[#allocation16 + $0x38] sm:$0xff] }
 0x356   : > { %v7957_v7 = vsel %vm1918_vm2, %v3688_v4, %v7878_v60  ;;  %2858 = vadd.xlane.f32.xlu0 %v2857_v23  ;;  %v5391_v60 = vpack.c.bf16 %v2961_v39, %v2960_v28  ;;  %v3847_v23 = vld [vmem:[%s6632_s1 + $0x68] sm:$0xff]  ;;  %v4005_v36 = vadd.f32 %v4004_v47, %v3861_v49  ;;  %vm3165_vm2 = vcmask 720512   ;;  %v2963_v4 = vld [vmem:[#allocation13 + $0x38] sm:$0xff] }
 0x357   : > { %v7961_v40 = vsel %vm3151_vm0, %v3323_v42, %v7881_v18  ;;  %v2649_v63 = vpop.xlane.xlu0 %2648  ;;  %2906 = vadd.xlane.f32.xlu1 %v2905_v17  ;;  %5417 = vmatprep.subr.bf16.mxu0 %v5416_v9  ;;  %v5418_v18 = vpack.c.bf16 %v4175_v12, %v4174_v37  ;;  %v3871_v15 = vld [vmem:[%s6632_s1 + $0x128] sm:$0xff]  ;;  %v3979_v17 = vadd.f32 %v3978_v62, %v3845_v10  ;;  %v3865_v25 = vld [vmem:[%s6632_s1 + $0xf8] sm:$0xff]  ;;  %v3181_v28 = vadd.s32 4294967192, %v8985_v56 }
 0x358   : > { %v3249_v5 = vrot.slane %v2649_v63, %v7912_v45  ;;  %v2784_v3 = vpop.xlane.xlu1 %2783  ;;  %5392 = vmatpush3.bf16.msra.mxu1 %v5391_v60  ;;  %v4028_v55 = vadd.f32 %v4027_v34, %v3871_v15  ;;  %v3875_v57 = vld [vmem:[%s6632_s1 + $0x148] sm:$0xff]  ;;  %v4006_v42 = vadd.f32 %v4005_v36, %v3863_v32  ;;  %v5422_v10 = vpack.c.bf16 %v4177_v6, %v4176_v33  ;;  %v3877_v61 = vld [vmem:[%s6632_s1 + $0x158] sm:$0xff] }
 0x359   : > { %v3471_v24 = vrot.slane %v2784_v3, %v7342_v48  ;;  %5419 = vmatpush3.bf16.msra.mxu0 %v5418_v18  ;;  %v3980_v20 = vadd.f32 %v3979_v17, %v3847_v23  ;;  %5393 = vmatprep.subr.bf16.mxu1 %v8987_v21  ;;  %v7993_v9 = vsub.s32 %v3167_v46, %v8986_v1  ;;  %v4194_v39 = vld [vmem:[#allocation16 + $0xc0] sm:$0xff]  ;;  %v4195_v37 = vld [vmem:[#allocation16 + $0xc8] sm:$0xff]  ;;  %v3885_v17 = vld [vmem:[%s6632_s1 + $0x198] sm:$0xff] }
 0x35a   : > { %v7978_v2 = vsel %vm3158_vm1, %v3249_v5, %v7894_v27  ;;  %2948 = vadd.xlane.f32.xlu0 %v7932_v53  ;;  %v3174_v27 = vadd.s32 4294967200, %v8985_v56  ;;  %v5394_v53 = vpack.c.bf16 %v2963_v4, %v2962_v22  ;;  %5421 = vmatprep.subr.bf16.mxu0 %v5420_v50  ;;  %v4029_v34 = vadd.f32 %v4028_v55, %v3873_v59  ;;  %v3883_v62 = vld [vmem:[%s6632_s1 + $0x188] sm:$0xff]  ;;  %v4196_v4 = vld [vmem:[#allocation16 + $0xd0] sm:$0xff]  ;;  %v4197_v33 = vld [vmem:[#allocation16 + $0xd8] sm:$0xff] }
 0x35b   : > { %v7983_v43 = vsel %vm1946_vm6, %v3471_v24, %v7900_v13  ;;  %v2739_v58 = vpop.xlane.xlu0 %2738  ;;  %2954 = vadd.xlane.f32.xlu1 %v2953_v8  ;;  %v3981_v13 = vadd.f32 %v3980_v20, %v3849_v41  ;;  %v4007_v63 = vadd.f32 %v4006_v42, %v3865_v25  ;;  %v5424_v12 = vpack.c.bf16 %v4195_v37, %v4194_v39  ;;  %v2964_v23 = vld [vmem:[#allocation13 + $0x40] sm:$0xff]  ;;  %v2965_v49 = vld [vmem:[#allocation13 + $0x48] sm:$0xff]  ;;  %v3881_v41 = vld [vmem:[%s6632_s1 + $0x178] sm:$0xff] }
 0x35c   : > { %v3397_v30 = vrot.slane %v2739_v58, %v7353_v52  ;;  %v2874_v31 = vpop.xlane.xlu1 %2873  ;;  %5395 = vmatpush3.bf16.msra.mxu1 %v5394_v53  ;;  %v4178_v47 = vld [vmem:[#allocation16 + $0x40] sm:$0xff]  ;;  %v4030_v3 = vadd.f32 %v4029_v34, %v3875_v57  ;;  %v4179_v15 = vld [vmem:[#allocation16 + $0x48] sm:$0xff]  ;;  %v8017_v22 = vsub.s32 %v3181_v28, %v8986_v1  ;;  %v3889_v20 = vld [vmem:[%s6632_s1 + $0x1b8] sm:$0xff]  ;;  %v5428_v6 = vpack.c.bf16 %v4197_v33, %v4196_v4 }
 0x35d   : > { %v3619_v8 = vrot.slane %v2874_v31, %v7330_v29  ;;  %5423 = vmatpush3.bf16.msra.mxu0 %v5422_v10  ;;  %v3982_v5 = vrot.slane %v3981_v13, 4  ;;  %5396 = vmatprep.subr.bf16.mxu1 %v8987_v21  ;;  %v3879_v59 = vld [vmem:[%s6632_s1 + $0x168] sm:$0xff]  ;;  %v4008_v24 = vrot.slane %v4007_v63, 4  ;;  %v5426_v35 = vpack.c.bf16 %v4179_v15, %v4178_v47  ;;  %v2966_v25 = vld [vmem:[#allocation13 + $0x50] sm:$0xff]  ;;  %v2967_v57 = vld [vmem:[#allocation13 + $0x58] sm:$0xff] }
 0x35e   : > { %v7999_v60 = vsel %vm1953_vm7, %v3397_v30, %v7917_v11  ;;  %2951 = vadd.xlane.f32.xlu0 %v7934_v51  ;;  %v8007_v11 = vsub.s32 %v3174_v27, %v8986_v1  ;;  %v5397_v51 = vpack.c.bf16 %v2965_v49, %v2964_v23  ;;  %5425 = vmatprep.subr.bf16.mxu0 %v5424_v12  ;;  %v4180_v42 = vld [vmem:[#allocation16 + $0x50] sm:$0xff]  ;;  %v3899_v34 = vld [vmem:[%s6632_s1 + $0x208] sm:$0xff] }
 0x35f   : > { %v8004_v18 = vsel %vm1932_vm4, %v3619_v8, %v7921_v26  ;;  %v2829_v32 = vpop.xlane.xlu0 %2828  ;;  %v3887_v26 = vld [vmem:[%s6632_s1 + $0x1a8] sm:$0xff]  ;;  %v3983_v36 = vadd.f32 %v3982_v5, %v3981_v13  ;;  %v4031_v55 = vadd.f32 %v4030_v3, %v3877_v61  ;;  %v4009_v58 = vadd.f32 %v4008_v24, %v4007_v63  ;;  %v3893_v12 = vld [vmem:[%s6632_s1 + $0x1d8] sm:$0xff] }
 0x360   : > { %v3545_v46 = vrot.slane %v2829_v32, %v7337_v44  ;;  %v2604_v38 = vpop.xlane.xlu1 %2603  ;;  %5398 = vmatpush3.bf16.msra.mxu1 %v5397_v51  ;;  %v4053_v27 = vadd.f32 %v3885_v17, %v3883_v62  ;;  %v5400_v13 = vpack.c.bf16 %v2967_v57, %v2966_v25  ;;  %v3891_v63 = vld [vmem:[%s6632_s1 + $0x1c8] sm:$0xff]  ;;  %v3901_v23 = vld [vmem:[%s6632_s1 + $0x218] sm:$0xff] }
 0x361   : > { %v3164_v50 = vrot.slane %v2604_v38, %v7968_v54  ;;  %5427 = vmatpush3.bf16.msra.mxu0 %v5426_v35  ;;  %5399 = vmatprep.subr.bf16.mxu1 %v8987_v21  ;;  %v3984_v30 = vrot.slane %v3983_v36, 2  ;;  %v4032_v31 = vadd.f32 %v4031_v55, %v3879_v59  ;;  %v4010_v8 = vrot.slane %v4009_v58, 2  ;;  %v4198_v5 = vld [vmem:[#allocation16 + $0xe0] sm:$0xff]  ;;  %v4199_v3 = vld [vmem:[#allocation16 + $0xe8] sm:$0xff]  ;;  %v3905_v4 = vld [vmem:[%s6632_s1 + $0x238] sm:$0xff] }
 0x362   : > { %v8022_v53 = vsel %vm1939_vm5, %v3545_v46, %v7939_v14  ;;  %v4181_v14 = vld [vmem:[#allocation16 + $0x58] sm:$0xff]  ;;  %v4054_v28 = vadd.f32 %v4053_v27, %v3887_v26  ;;  %5429 = vmatprep.subr.bf16.mxu0 %v5428_v6  ;;  %v3903_v32 = vld [vmem:[%s6632_s1 + $0x228] sm:$0xff]  ;;  %v4079_v59 = vadd.f32 %v3901_v23, %v3899_v34  ;;  %v5432_v17 = vpack.c.bf16 %v4199_v3, %v4198_v5 }
 0x363   : > { %v8027_v10 = vsel %vm3165_vm2, %v3164_v50, %v7943_v0  ;;  %v2919_v61 = vpop.xlane.xlu0 %2918  ;;  %v5430_v62 = vpack.c.bf16 %v4181_v14, %v4180_v42  ;;  %v3985_v49 = vadd.f32 %v3984_v30, %v3983_v36  ;;  %v4033_v47 = vadd.f32 %v4032_v31, %v3881_v41  ;;  %v2968_v24 = vld [vmem:[#allocation13 + $0x60] sm:$0xff]  ;;  %v2969_v46 = vld [vmem:[#allocation13 + $0x68] sm:$0xff]  ;;  %v3897_v25 = vld [vmem:[%s6632_s1 + $0x1f8] sm:$0xff] }
 0x364   : > { %v3693_v39 = vrot.slane %v2919_v61, %v7322_v19  ;;  %v2697_v37 = vpop.xlane.xlu1 %2696  ;;  %5401 = vmatpush3.bf16.msra.mxu1 %v5400_v13  ;;  %v4011_v51 = vadd.f32 %v4010_v8, %v4009_v58  ;;  %v4055_v15 = vadd.f32 %v4054_v28, %v3889_v20  ;;  %v4182_v38 = vld [vmem:[#allocation16 + $0x60] sm:$0xff]  ;;  %v4183_v55 = vld [vmem:[#allocation16 + $0x68] sm:$0xff]  ;;  %v4200_v13 = vld [vmem:[#allocation16 + $0xf0] sm:$0xff] }
 0x365   : > { %v3328_v0 = vrot.slane %v2697_v37, %v7912_v45  ;;  %5431 = vmatpush3.bf16.msra.mxu0 %v5430_v62  ;;  %5402 = vmatprep.subr.bf16.mxu1 %v8987_v21  ;;  %v3986_v35 = vrot.slane %v3985_v49, 1  ;;  %v4034_v41 = vrot.slane %v4033_v47, 4  ;;  %v3895_v50 = vld [vmem:[%s6632_s1 + $0x1e8] sm:$0xff]  ;;  %v5434_v6 = vpack.c.bf16 %v4183_v55, %v4182_v38  ;;  %v4201_v14 = vld [vmem:[#allocation16 + $0xf8] sm:$0xff] }
 0x366   : > { %v8038_v19 = vsel %vm1925_vm3, %v3693_v39, %v7957_v7  ;;  %v5403_v7 = vpack.c.bf16 %v2969_v46, %v2968_v24  ;;  %v4012_v33 = vrot.slane %v4011_v51, 1  ;;  %v4056_v20 = vadd.f32 %v4055_v15, %v3891_v63  ;;  %5433 = vmatprep.subr.bf16.mxu0 %v5432_v17  ;;  %v3907_v57 = vld [vmem:[%s6632_s1 + $0x248] sm:$0xff]  ;;  %v2970_v63 = vld [vmem:[#allocation13 + $0x70] sm:$0xff]  ;;  %v2971_v23 = vld [vmem:[#allocation13 + $0x78] sm:$0xff] }
 0x367   : > { %v8043_v26 = vsel %vm3158_vm1, %v3328_v0, %v7961_v40  ;;  %v2652_v36 = vpop.xlane.xlu0 %2651  ;;  %vm3172_vm3 = vcmask 786112   ;;  %v3915_v42 = vld [vmem:[%s6632_s1 + $0x288] sm:$0xff]  ;;  %v3917_v40 = vld [vmem:[%s6632_s1 + $0x298] sm:$0xff]  ;;  %v3987_v30 = vadd.f32 %v3986_v35, %v3985_v49  ;;  %v4035_v31 = vadd.f32 %v4034_v41, %v4033_v47 }
 0x368   : > { %v3254_v58 = vrot.slane %v2652_v36, %v7968_v54  ;;  %v2787_v27 = vpop.xlane.xlu1 %2786  ;;  %5404 = vmatpush3.bf16.msra.mxu1 %v5403_v7  ;;  %v3919_v34 = vld [vmem:[%s6632_s1 + $0x2a8] sm:$0xff]  ;;  %v4013_v8 = vadd.f32 %v4012_v33, %v4011_v51  ;;  %v4057_v28 = vadd.f32 %v4056_v20, %v3893_v12  ;;  %v4080_v39 = vadd.f32 %v4079_v59, %v3903_v32  ;;  %v4184_v49 = vld [vmem:[#allocation16 + $0x70] sm:$0xff] }
 0x369   : > { %v3476_v61 = vrot.slane %v2787_v27, %v7353_v52  ;;  %5435 = vmatpush3.bf16.msra.mxu0 %v5434_v6  ;;  %5405 = vmatprep.subr.bf16.mxu1 %v8987_v21  ;;  %v5436_v62 = vpack.c.bf16 %v4201_v14, %v4200_v13  ;;  %v4036_v47 = vrot.slane %v4035_v31, 2  ;;  %v4105_v0 = vadd.f32 %v3917_v40, %v3915_v42  ;;  %v3921_v32 = vld [vmem:[%s6632_s1 + $0x2b8] sm:$0xff]  ;;  %v3923_v46 = vld [vmem:[%s6632_s1 + $0x2c8] sm:$0xff] }
 0x36a   : > { %v8056_v37 = vsel %vm3165_vm2, %v3254_v58, %v7978_v2  ;;  %v5406_v3 = vpack.c.bf16 %v2971_v23, %v2970_v63  ;;  %v4185_v2 = vld [vmem:[#allocation16 + $0x78] sm:$0xff]  ;;  %v4058_v21 = vadd.f32 %v4057_v28, %v3895_v50  ;;  %v4081_v51 = vadd.f32 %v4080_v39, %v3905_v4  ;;  %v3931_v36 = vld [vmem:[%s6632_s1 + $0x308] sm:$0xff] }
 0x36b   : > { %v8061_v5 = vsel %vm1953_vm7, %v3476_v61, %v7983_v43  ;;  %v2742_v12 = vpop.xlane.xlu0 %2741  ;;  %5437 = vmatprep.subr.bf16.mxu0 %v5436_v62  ;;  %v5438_v17 = vpack.c.bf16 %v4185_v2, %v4184_v49  ;;  %v3909_v24 = vld [vmem:[%s6632_s1 + $0x258] sm:$0xff]  ;;  %v4037_v38 = vadd.f32 %v4036_v47, %v4035_v31  ;;  %v4106_v43 = vadd.f32 %v4105_v0, %v3919_v34  ;;  %v3935_v55 = vld [vmem:[%s6632_s1 + $0x328] sm:$0xff] }
 0x36c   : > { %v3402_v15 = vrot.slane %v2742_v12, %v7855_v16  ;;  %v2877_v59 = vpop.xlane.xlu1 %2876  ;;  %v8069_v41 = vadd.s32 4294967184, %v8985_v56  ;;  %5407 = vmatpush3.bf16.msra.mxu1 %v5406_v3  ;;  %v3933_v7 = vld [vmem:[%s6632_s1 + $0x318] sm:$0xff]  ;;  %v4059_v50 = vadd.f32 %v4058_v21, %v3897_v25  ;;  %v4082_v4 = vadd.f32 %v4081_v51, %v3907_v57  ;;  %v3911_v20 = vld [vmem:[%s6632_s1 + $0x268] sm:$0xff] }
 0x36d   : > { %v3624_v35 = vrot.slane %v2877_v59, %v7337_v44  ;;  %5439 = vmatpush3.bf16.msra.mxu0 %v5438_v17  ;;  %v4038_v58 = vrot.slane %v4037_v38, 1  ;;  %v4107_v27 = vadd.f32 %v4106_v43, %v3921_v32  ;;  %v4131_v6 = vadd.f32 %v3933_v7, %v3931_v36  ;;  %v3925_v25 = vld [vmem:[%s6632_s1 + $0x2d8] sm:$0xff]  ;;  %v3947_v31 = vld [vmem:[%s6632_s1 + $0x388] sm:$0xff]  ;;  %v3836_v59 = vld [vmem:[%s6632_s1 + $0x10] sm:$0xff] }
 0x36e   : > { %v8076_v33 = vsel %vm3151_vm0, %v3402_v15, %v7999_v60  ;;  %v3937_v57 = vld [vmem:[%s6632_s1 + $0x338] sm:$0xff]  ;;  %v4060_v60 = vrot.slane %v4059_v50, 4  ;;  %v4083_v61 = vadd.f32 %v4082_v4, %v3909_v24  ;;  %v4232_v13 = vsel %vm2228_vm8, %v4013_v8, %v3987_v30  ;;  %v3951_v62 = vld [vmem:[%s6632_s1 + $0x3a8] sm:$0xff]  ;;  %v3834_v15 = vld [vmem:[%s6632_s1] sm:$0xff] }
 0x36f   : > { %v8081_v42 = vsel %vm1939_vm5, %v3624_v35, %v8004_v18  ;;  %v2832_v40 = vpop.xlane.xlu0 %2831  ;;  %v3913_v28 = vld [vmem:[%s6632_s1 + $0x278] sm:$0xff]  ;;  %v4039_v18 = vadd.f32 %v4038_v58, %v4037_v38  ;;  %v4108_v63 = vadd.f32 %v4107_v27, %v3923_v46  ;;  %v4132_v23 = vadd.f32 %v4131_v6, %v3935_v55  ;;  %v3927_v47 = vld [vmem:[%s6632_s1 + $0x2e8] sm:$0xff]  ;;  %v3838_v36 = vld [vmem:[%s6632_s1 + $0x20] sm:$0xff] }
 0x370   : > { %v3550_v14 = vrot.slane %v2832_v40, %v7342_v48  ;;  %v2607_v34 = vpop.xlane.xlu1 %2606  ;;  %v3949_v39 = vld [vmem:[%s6632_s1 + $0x398] sm:$0xff]  ;;  %v3939_v0 = vld [vmem:[%s6632_s1 + $0x348] sm:$0xff]  ;;  %v4061_v12 = vadd.f32 %v4060_v60, %v4059_v50  ;;  %v4084_v30 = vadd.f32 %v4083_v61, %v3911_v20  ;;  %v3962_v58 = vadd.f32 %v3836_v59, %v3834_v15 }
 0x371   : > { %v3171_v49 = vrot.slane %v2607_v34, %v7993_v9  ;;  %v4157_v8 = vadd.f32 %v3949_v39, %v3947_v31  ;;  %v3953_v2 = vld [vmem:[%s6632_s1 + $0x3b8] sm:$0xff]  ;;  %v4109_v32 = vadd.f32 %v4108_v63, %v3925_v25  ;;  %v4133_v21 = vadd.f32 %v4132_v23, %v3937_v57  ;;  %v3955_v50 = vld [vmem:[%s6632_s1 + $0x3c8] sm:$0xff]  ;;  %v3840_v57 = vld [vmem:[%s6632_s1 + $0x30] sm:$0xff] }
 0x372   : > { %v8096_v3 = vsel %vm1946_vm6, %v3550_v14, %v8022_v53  ;;  %v4233_v51 = vsel %vm2230_vm9, %v4039_v18, %v4232_v13  ;;  %v3929_v46 = vld [vmem:[%s6632_s1 + $0x2f8] sm:$0xff]  ;;  %v4062_v43 = vrot.slane %v4061_v12, 2  ;;  %v4085_v53 = vadd.f32 %v4084_v30, %v3913_v28  ;;  %v3943_v27 = vld [vmem:[%s6632_s1 + $0x368] sm:$0xff]  ;;  %v3842_v63 = vld [vmem:[%s6632_s1 + $0x40] sm:$0xff] }
 0x373   : > { %v8104_v17 = vsel %vm3172_vm3, %v3171_v49, %v8027_v10  ;;  %v2922_v24 = vpop.xlane.xlu0 %2921  ;;  %v3941_v38 = vld [vmem:[%s6632_s1 + $0x358] sm:$0xff]  ;;  %v4158_v35 = vadd.f32 %v4157_v8, %v3951_v62  ;;  %v4110_v4 = vadd.f32 %v4109_v32, %v3927_v47  ;;  %v4134_v20 = vadd.f32 %v4133_v21, %v3939_v0  ;;  %v3959_v49 = vld [vmem:[%s6632_s1 + $0x3e8] sm:$0xff]  ;;  %v3844_v32 = vld [vmem:[%s6632_s1 + $0x50] sm:$0xff] }
 0x374   : > { %v3698_v7 = vrot.slane %v2922_v24, %v7330_v29  ;;  %v2700_v55 = vpop.xlane.xlu1 %2699  ;;  %v4063_v6 = vadd.f32 %v4062_v43, %v4061_v12  ;;  %v4086_v40 = vrot.slane %v4085_v53, 4  ;;  %v3957_v29 = vld [vmem:[%s6632_s1 + $0x3d8] sm:$0xff]  ;;  %v3963_v13 = vadd.f32 %v3962_v58, %v3838_v36 }
 0x375   : > { %v3333_v10 = vrot.slane %v2700_v55, %v7968_v54  ;;  %v4159_v25 = vadd.f32 %v4158_v35, %v3953_v2  ;;  %v4111_v60 = vadd.f32 %v4110_v4, %v3929_v46  ;;  %v4135_v61 = vadd.f32 %v4134_v20, %v3941_v38  ;;  %v3945_v28 = vld [vmem:[%s6632_s1 + $0x378] sm:$0xff]  ;;  %v3850_v46 = vld [vmem:[%s6632_s1 + $0x80] sm:$0xff]  ;;  %v3852_v38 = vld [vmem:[%s6632_s1 + $0x90] sm:$0xff] }
 0x376   : > { %v8116_v31 = vsel %vm1932_vm4, %v3698_v7, %v8038_v19  ;;  %v4064_v39 = vrot.slane %v4063_v6, 1  ;;  %v4087_v62 = vadd.f32 %v4086_v40, %v4085_v53  ;;  %vm3179_vm4 = vcmask 851712   ;;  %v3961_v15 = vld [vmem:[%s6632_s1 + $0x3f8] sm:$0xff] }
 0x377   : > { %v8121_v14 = vsel %vm3165_vm2, %v3333_v10, %v8043_v26  ;;  %v2655_v34 = vpop.xlane.xlu0 %2654  ;;  %v4160_v18 = vadd.f32 %v4159_v25, %v3955_v50  ;;  %v4112_v47 = vrot.slane %v4111_v60, 4  ;;  %v4136_v0 = vadd.f32 %v4135_v61, %v3943_v27  ;;  %v3854_v10 = vld [vmem:[%s6632_s1 + $0xa0] sm:$0xff]  ;;  %v3856_v61 = vld [vmem:[%s6632_s1 + $0xb0] sm:$0xff] }
 0x378   : > { %v3259_v23 = vrot.slane %v2655_v34, %v7993_v9  ;;  %v2790_v19 = vpop.xlane.xlu1 %2789  ;;  %v3964_v12 = vadd.f32 %v3963_v13, %v3840_v57  ;;  %v4065_v30 = vadd.f32 %v4064_v39, %v4063_v6  ;;  %v4088_v8 = vrot.slane %v4087_v62, 2 }
 0x379   : > { %v3481_v26 = vrot.slane %v2790_v19, %v7855_v16  ;;  %v4161_v2 = vadd.f32 %v4160_v18, %v3957_v29  ;;  %v4113_v59 = vadd.f32 %v4112_v47, %v4111_v60  ;;  %v4137_v24 = vadd.f32 %v4136_v0, %v3945_v28  ;;  %v3866_v47 = vld [vmem:[%s6632_s1 + $0x100] sm:$0xff]  ;;  %v3868_v0 = vld [vmem:[%s6632_s1 + $0x110] sm:$0xff] }
 0x37a   : > { %v8131_v21 = vsel %vm3172_vm3, %v3259_v23, %v8056_v37  ;;  %v3965_v43 = vadd.f32 %v3964_v12, %v3842_v63  ;;  %v4089_v36 = vadd.f32 %v4088_v8, %v4087_v62  ;;  %v4234_v55 = vsel %vm2232_vm10, %v4065_v30, %v4233_v51  ;;  %v3846_v37 = vld [vmem:[%s6632_s1 + $0x60] sm:$0xff] }
 0x37b   : > { %v8138_v53 = vsel %vm3151_vm0, %v3481_v26, %v8061_v5  ;;  %v2745_v35 = vpop.xlane.xlu0 %2744  ;;  %v4162_v7 = vadd.f32 %v4161_v2, %v3959_v49  ;;  %v4114_v20 = vrot.slane %v4113_v59, 2  ;;  %v4138_v58 = vrot.slane %v4137_v24, 4  ;;  %v3848_v5 = vld [vmem:[%s6632_s1 + $0x70] sm:$0xff]  ;;  %v3858_v49 = vld [vmem:[%s6632_s1 + $0xc0] sm:$0xff] }
 0x37c   : > { %v3407_v50 = vrot.slane %v2745_v35, %v7912_v45  ;;  %v2880_v4 = vpop.xlane.xlu1 %2879  ;;  %v3966_v27 = vadd.f32 %v3965_v43, %v3844_v32  ;;  %v4090_v40 = vrot.slane %v4089_v36, 1  ;;  %v3988_v57 = vadd.f32 %v3852_v38, %v3850_v46 }
 0x37d   : > { %v3629_v6 = vrot.slane %v2880_v4, %v7342_v48  ;;  %v4163_v25 = vadd.f32 %v4162_v7, %v3961_v15  ;;  %v4115_v29 = vadd.f32 %v4114_v20, %v4113_v59  ;;  %v4139_v60 = vadd.f32 %v4138_v58, %v4137_v24  ;;  %v3860_v59 = vld [vmem:[%s6632_s1 + $0xd0] sm:$0xff]  ;;  %v3870_v24 = vld [vmem:[%s6632_s1 + $0x120] sm:$0xff] }
 0x37e   : > { %v8148_v51 = vsel %vm3158_vm1, %v3407_v50, %v8076_v33  ;;  %v3967_v13 = vadd.f32 %v3966_v27, %v3846_v37  ;;  %v4091_v39 = vadd.f32 %v4090_v40, %v4089_v36  ;;  %v3989_v18 = vadd.f32 %v3988_v57, %v3854_v10  ;;  %v3882_v36 = vld [vmem:[%s6632_s1 + $0x180] sm:$0xff]  ;;  %v3884_v7 = vld [vmem:[%s6632_s1 + $0x190] sm:$0xff] }
 0x37f   : > { %v8153_v34 = vsel %vm1946_vm6, %v3629_v6, %v8081_v42  ;;  %v2835_v28 = vpop.xlane.xlu0 %2834  ;;  %v4164_v62 = vrot.slane %v4163_v25, 4  ;;  %v4116_v33 = vrot.slane %v4115_v29, 1  ;;  %v4140_v19 = vrot.slane %v4139_v60, 2  ;;  %v3862_v58 = vld [vmem:[%s6632_s1 + $0xe0] sm:$0xff]  ;;  %v3872_v10 = vld [vmem:[%s6632_s1 + $0x130] sm:$0xff] }
 0x380   : > { %v3555_v63 = vrot.slane %v2835_v28, %v7353_v52  ;;  %v2610_v23 = vpop.xlane.xlu1 %2609  ;;  %v3968_v12 = vadd.f32 %v3967_v13, %v3848_v5  ;;  %v4235_v30 = vsel %vm2234_vm11, %v4091_v39, %v4234_v55  ;;  %v3990_v8 = vadd.f32 %v3989_v18, %v3856_v61  ;;  %v3886_v40 = vld [vmem:[%s6632_s1 + $0x1a0] sm:$0xff]  ;;  %v3888_v18 = vld [vmem:[%s6632_s1 + $0x1b0] sm:$0xff] }
 0x381   : > { %v3178_v42 = vrot.slane %v2610_v23, %v8007_v11  ;;  %v4165_v26 = vadd.f32 %v4164_v62, %v4163_v25  ;;  %v4117_v32 = vadd.f32 %v4116_v33, %v4115_v29  ;;  %v4141_v15 = vadd.f32 %v4140_v19, %v4139_v60  ;;  %v3864_v29 = vld [vmem:[%s6632_s1 + $0xf0] sm:$0xff]  ;;  %v3874_v60 = vld [vmem:[%s6632_s1 + $0x140] sm:$0xff] }
 0x382   : > { %v8163_v2 = vsel %vm1953_vm7, %v3555_v63, %v8096_v3  ;;  %v3969_v46 = vrot.slane %v3968_v12, 4  ;;  %v3991_v55 = vadd.f32 %v3990_v8, %v3858_v49  ;;  %v4014_v3 = vadd.f32 %v3868_v0, %v3866_v47  ;;  %v3898_v63 = vld [vmem:[%s6632_s1 + $0x200] sm:$0xff]  ;;  %v3900_v23 = vld [vmem:[%s6632_s1 + $0x210] sm:$0xff] }
 0x383   : > { %v8169_v38 = vsel %vm3179_vm4, %v3178_v42, %v8104_v17  ;;  %v2925_v43 = vpop.xlane.xlu0 %2924  ;;  %v4166_v35 = vrot.slane %v4165_v26, 2  ;;  %v4142_v4 = vrot.slane %v4141_v15, 1  ;;  %v4236_v20 = vsel %vm2236_vm12, %v4117_v32, %v4235_v30  ;;  %v3876_v47 = vld [vmem:[%s6632_s1 + $0x150] sm:$0xff]  ;;  %v3878_v30 = vld [vmem:[%s6632_s1 + $0x160] sm:$0xff] }
 0x384   : > { %v3703_v37 = vrot.slane %v2925_v43, %v7337_v44  ;;  %v2703_v50 = vpop.xlane.xlu1 %2702  ;;  %v3970_v17 = vadd.f32 %v3969_v46, %v3968_v12  ;;  %v3992_v25 = vadd.f32 %v3991_v55, %v3860_v59  ;;  %v4015_v5 = vadd.f32 %v4014_v3, %v3870_v24  ;;  %v3890_v8 = vld [vmem:[%s6632_s1 + $0x1c0] sm:$0xff]  ;;  %v3892_v43 = vld [vmem:[%s6632_s1 + $0x1d0] sm:$0xff] }
 0x385   : > { %v3338_v27 = vrot.slane %v2703_v50, %v7993_v9  ;;  %v4167_v6 = vadd.f32 %v4166_v35, %v4165_v26  ;;  %v4143_v44 = vadd.f32 %v4142_v4, %v4141_v15  ;;  %v4040_v13 = vadd.f32 %v3884_v7, %v3882_v36  ;;  %v3902_v32 = vld [vmem:[%s6632_s1 + $0x220] sm:$0xff]  ;;  %v3916_v36 = vld [vmem:[%s6632_s1 + $0x290] sm:$0xff] }
 0x386   : > { %v8181_v57 = vsel %vm1939_vm5, %v3703_v37, %v8116_v31  ;;  %v3971_v61 = vrot.slane %v3970_v17, 2  ;;  %v3993_v31 = vadd.f32 %v3992_v25, %v3862_v58  ;;  %v4016_v33 = vadd.f32 %v4015_v5, %v3872_v10  ;;  %v3914_v35 = vld [vmem:[%s6632_s1 + $0x280] sm:$0xff]  ;;  %v3904_v50 = vld [vmem:[%s6632_s1 + $0x230] sm:$0xff] }
 0x387   : > { %v8187_v28 = vsel %vm3172_vm3, %v3338_v27, %v8121_v14  ;;  %v2658_v39 = vpop.xlane.xlu0 %2657  ;;  %v4168_v62 = vrot.slane %v4167_v6, 1  ;;  %vm3186_vm5 = vcmask 917312   ;;  %v4237_v14 = vsel %vm2238_vm13, %v4143_v44, %v4236_v20  ;;  %v3932_v4 = vld [vmem:[%s6632_s1 + $0x310] sm:$0xff]  ;;  %v3894_v44 = vld [vmem:[%s6632_s1 + $0x1e0] sm:$0xff] }
 0x388   : > { %v3264_v19 = vrot.slane %v2658_v39, %v8007_v11  ;;  %v2793_v49 = vpop.xlane.xlu1 %2792  ;;  %v8195_v0 = vadd.f32 %v3971_v61, %v3970_v17  ;;  %v4041_v12 = vadd.f32 %v4040_v13, %v3886_v40  ;;  %v3994_v15 = vadd.f32 %v3993_v31, %v3864_v29  ;;  %v3880_v27 = vld [vmem:[%s6632_s1 + $0x170] sm:$0xff]  ;;  %v3906_v29 = vld [vmem:[%s6632_s1 + $0x240] sm:$0xff] }
 0x389   : > { %v3486_v42 = vrot.slane %v2793_v49, %v7912_v45  ;;  %v4169_v26 = vadd.f32 %v4168_v62, %v4167_v6  ;;  %v4017_v59 = vadd.f32 %v4016_v33, %v3874_v60  ;;  %v8207_v46 = vsub.s32 %v8069_v41, %v8986_v1  ;;  %v3930_v41 = vld [vmem:[%s6632_s1 + $0x300] sm:$0xff]  ;;  %v3896_v49 = vld [vmem:[%s6632_s1 + $0x1f0] sm:$0xff] }
 0x38a   : > { %v8203_v24 = vsel %vm3179_vm4, %v3264_v19, %v8131_v21  ;;  %v4042_v7 = vadd.f32 %v4041_v12, %v3888_v18  ;;  %v4066_v55 = vadd.f32 %v3900_v23, %v3898_v63  ;;  %v3995_v20 = vrot.slane %v3994_v15, 4  ;;  %v3918_v6 = vld [vmem:[%s6632_s1 + $0x2a0] sm:$0xff]  ;;  %v3920_v18 = vld [vmem:[%s6632_s1 + $0x2b0] sm:$0xff] }
 0x38b   : > { %v8214_v3 = vsel %vm3158_vm1, %v3486_v42, %v8138_v53  ;;  %v2748_v37 = vpop.xlane.xlu0 %2747  ;;  %v4238_v21 = vsel %vm2240_vm14, %v4169_v26, %v4237_v14  ;;  %v4018_v58 = vadd.f32 %v4017_v59, %v3876_v47  ;;  %v3973_v53 = vrot.slane %v8195_v0, 1  ;;  %v3934_v60 = vld [vmem:[%s6632_s1 + $0x320] sm:$0xff]  ;;  %v3908_v14 = vld [vmem:[%s6632_s1 + $0x250] sm:$0xff] }
 0x38c   : > { %v3412_v10 = vrot.slane %v2748_v37, %v7968_v54  ;;  %v2883_v17 = vpop.xlane.xlu1 %2882  ;;  %4305 = vmatprep.mubr.f32.mxu0 %v4238_v21  ;;  %v4043_v40 = vadd.f32 %v4042_v7, %v3890_v8  ;;  %v4067_v25 = vadd.f32 %v4066_v55, %v3902_v32  ;;  %v3996_v61 = vadd.f32 %v3995_v20, %v3994_v15  ;;  %v3936_v47 = vld [vmem:[%s6632_s1 + $0x330] sm:$0xff]  ;;  %v3922_v8 = vld [vmem:[%s6632_s1 + $0x2c0] sm:$0xff] }
 0x38d   : > { %v3634_v5 = vrot.slane %v2883_v17, %v7353_v52  ;;  %v4019_v13 = vadd.f32 %v4018_v58, %v3878_v30  ;;  %v4092_v39 = vadd.f32 %v3916_v36, %v3914_v35  ;;  %v4118_v31 = vadd.f32 %v3932_v4, %v3930_v41  ;;  %v3938_v35 = vld [vmem:[%s6632_s1 + $0x340] sm:$0xff]  ;;  %v3924_v21 = vld [vmem:[%s6632_s1 + $0x2d0] sm:$0xff] }
 0x38e   : > { %v8230_v62 = vsel %vm3165_vm2, %v3412_v10, %v8148_v51  ;;  %v4044_v63 = vadd.f32 %v4043_v40, %v3892_v43  ;;  %v4068_v23 = vadd.f32 %v4067_v25, %v3904_v50  ;;  %v3997_v12 = vrot.slane %v3996_v61, 2  ;;  %v3910_v43 = vld [vmem:[%s6632_s1 + $0x260] sm:$0xff]  ;;  %v3912_v10 = vld [vmem:[%s6632_s1 + $0x270] sm:$0xff] }
 0x38f   : > { %v8235_v33 = vsel %vm1953_vm7, %v3634_v5, %v8153_v34  ;;  %v2838_v19 = vpop.xlane.xlu0 %2837  ;;  %v4020_v42 = vadd.f32 %v4019_v13, %v3880_v27  ;;  %v4093_v26 = vadd.f32 %v4092_v39, %v3918_v6  ;;  %v4119_v59 = vadd.f32 %v4118_v31, %v3934_v60  ;;  %v3940_v17 = vld [vmem:[%s6632_s1 + $0x350] sm:$0xff]  ;;  %v3926_v5 = vld [vmem:[%s6632_s1 + $0x2e0] sm:$0xff] }
 0x390   : > { %v3560_v51 = vrot.slane %v2838_v19, %v7855_v16  ;;  %v2613_v30 = vpop.xlane.xlu1 %2612  ;;  %v4045_v32 = vadd.f32 %v4044_v63, %v3894_v44  ;;  %v4069_v15 = vadd.f32 %v4068_v23, %v3906_v29  ;;  %v3998_v36 = vadd.f32 %v3997_v12, %v3996_v61  ;;  %v3946_v44 = vld [vmem:[%s6632_s1 + $0x380] sm:$0xff]  ;;  %v3948_v29 = vld [vmem:[%s6632_s1 + $0x390] sm:$0xff] }
 0x391   : > { %v3185_v34 = vrot.slane %v2613_v30, %v8017_v22  ;;  %v4021_v7 = vrot.slane %v4020_v42, 4  ;;  %v4094_v55 = vadd.f32 %v4093_v26, %v3920_v18  ;;  %v4120_v4 = vadd.f32 %v4119_v59, %v3936_v47  ;;  %v3942_v39 = vld [vmem:[%s6632_s1 + $0x360] sm:$0xff]  ;;  %v3944_v12 = vld [vmem:[%s6632_s1 + $0x370] sm:$0xff] }
 0x392   : > { %v8247_v37 = vsel %vm3151_vm0, %v3560_v51, %v8163_v2  ;;  %v4046_v50 = vadd.f32 %v4045_v32, %v3896_v49  ;;  %v4070_v41 = vadd.f32 %v4069_v15, %v3908_v14  ;;  %v8257_v27 = vadd.f32 %v3973_v53, %v8195_v0  ;;  %v3950_v23 = vld [vmem:[%s6632_s1 + $0x3a0] sm:$0xff] }
 0x393   : > { %v8252_v20 = vsel %vm3186_vm5, %v3185_v34, %v8169_v38  ;;  %v2928_v58 = vpop.xlane.xlu0 %2927  ;;  %v4022_v6 = vadd.f32 %v4021_v7, %v4020_v42  ;;  %v4095_v2 = vadd.f32 %v4094_v55, %v3922_v8  ;;  %v4121_v61 = vadd.f32 %v4120_v4, %v3938_v35  ;;  %v3954_v55 = vld [vmem:[%s6632_s1 + $0x3c0] sm:$0xff] }
 0x394   : > { %v3708_v40 = vrot.slane %v2928_v58, %v7342_v48  ;;  %v2706_v25 = vpop.xlane.xlu1 %2705  ;;  %v4047_v60 = vrot.slane %v4046_v50, 4  ;;  %v4071_v38 = vadd.f32 %v4070_v41, %v3910_v43  ;;  %v3999_v18 = vrot.slane %v3998_v36, 1  ;;  %v3928_v48 = vld [vmem:[%s6632_s1 + $0x2f0] sm:$0xff] }
 0x395   : > { %v3343_v13 = vrot.slane %v2706_v25, %v8007_v11  ;;  %v4023_v0 = vrot.slane %v4022_v6, 2  ;;  %v4096_v53 = vadd.f32 %v4095_v2, %v3924_v21  ;;  %v4122_v49 = vadd.f32 %v4121_v61, %v3940_v17  ;;  %v3956_v25 = vld [vmem:[%s6632_s1 + $0x3d0] sm:$0xff] }
 0x396   : > { %v8267_v63 = vsel %vm1946_vm6, %v3708_v40, %v8181_v57  ;;  %v4048_v31 = vadd.f32 %v4047_v60, %v4046_v50  ;;  %v4072_v19 = vadd.f32 %v4071_v38, %v3912_v10  ;;  %v4144_v51 = vadd.f32 %v3948_v29, %v3946_v44  ;;  %v3952_v57 = vld [vmem:[%s6632_s1 + $0x3b0] sm:$0xff] }
 0x397   : > { %v8273_v14 = vsel %vm3179_vm4, %v3343_v13, %v8187_v28  ;;  %v2661_v47 = vpop.xlane.xlu0 %2660  ;;  %v4024_v42 = vadd.f32 %v4023_v0, %v4022_v6  ;;  %v4097_v26 = vadd.f32 %v4096_v53, %v3926_v5  ;;  %v4123_v59 = vadd.f32 %v4122_v49, %v3942_v39  ;;  %v4617_v0 = vld [vmem:[#allocation19 + $0x88] sm:$0xff] }
 0x398   : > { %v3269_v30 = vrot.slane %v2661_v47, %v8017_v22  ;;  %v2796_v8 = vpop.xlane.xlu1 %2795  ;;  %v4049_v32 = vrot.slane %v4048_v31, 2  ;;  %v4073_v15 = vrot.slane %v4072_v19, 4  ;;  %v4145_v28 = vadd.f32 %v4144_v51, %v3950_v23  ;;  %v3960_v47 = vld [vmem:[%s6632_s1 + $0x3f0] sm:$0xff]  ;;  %v4648_v51 = vld [vmem:[#allocation19 + $0x180] sm:$0xff] }
 0x399   : > { %v3491_v34 = vrot.slane %v2796_v8, %v7968_v54  ;;  %v4025_v43 = vrot.slane %v4024_v42, 1  ;;  %v4098_v35 = vadd.f32 %v4097_v26, %v3928_v48  ;;  %v4124_v41 = vadd.f32 %v4123_v59, %v3944_v12 }
 0x39a   : > { %v8281_v7 = vsel %vm3186_vm5, %v3269_v30, %v8203_v24  ;;  %v4050_v21 = vadd.f32 %v4049_v32, %v4048_v31  ;;  %v4074_v50 = vadd.f32 %v4073_v15, %v4072_v19  ;;  %v4000_v10 = vadd.f32 %v3999_v18, %v3998_v36  ;;  %v3958_v36 = vld [vmem:[%s6632_s1 + $0x3e0] sm:$0xff]  ;;  %v4649_v30 = vld [vmem:[#allocation19 + $0x188] sm:$0xff] }
 0x39b   : > { %v8286_v4 = vsel %vm3165_vm2, %v3491_v34, %v8214_v3  ;;  %v2751_v58 = vpop.xlane.xlu0 %2750  ;;  %v4099_v17 = vrot.slane %v4098_v35, 4  ;;  %v4146_v6 = vadd.f32 %v4145_v28, %v3952_v57  ;;  %v4125_v44 = vrot.slane %v4124_v41, 4  ;;  %v4616_v18 = vld [vmem:[#allocation19 + $0x80] sm:$0xff] }
 0x39c   : > { %v3417_v2 = vrot.slane %v2751_v58, %v7993_v9  ;;  %v2886_v40 = vpop.xlane.xlu1 %2885  ;;  %v4051_v5 = vrot.slane %v4050_v21, 1  ;;  %v4075_v24 = vrot.slane %v4074_v50, 2  ;;  %vm3193_vm6 = vcmask 982912  }
 0x39d   : > { %v3639_v29 = vrot.slane %v2886_v40, %v7855_v16  ;;  %v4100_v60 = vadd.f32 %v4099_v17, %v4098_v35  ;;  %v4147_v38 = vadd.f32 %v4146_v6, %v3954_v55  ;;  %v4026_v61 = vadd.f32 %v4025_v43, %v4024_v42 }
 0x39e   : > { %v8293_v3 = vsel %vm3172_vm3, %v3417_v2, %v8230_v62  ;;  %v4076_v13 = vadd.f32 %v4075_v24, %v4074_v50  ;;  %v4126_v39 = vadd.f32 %v4125_v44, %v4124_v41  ;;  %v4225_v19 = vsel %vm2228_vm8, %v4000_v10, %v8257_v27  ;;  %v8330_v24 = vld [vmem:[#allocation19 + $0x8] sm:$0xff]  ;;  %v8332_v44 = vld [vmem:[#allocation19 + $0x100] sm:$0xff] }
 0x39f   : > { %v8298_v53 = vsel %vm3151_vm0, %v3639_v29, %v8235_v33  ;;  %v2841_v48 = vpop.xlane.xlu0 %2840  ;;  %v4101_v23 = vrot.slane %v4100_v60, 2  ;;  %v4148_v31 = vadd.f32 %v4147_v38, %v3956_v25  ;;  %v4052_v12 = vadd.f32 %v4051_v5, %v4050_v21  ;;  %v8328_v5 = vld [vmem:[#allocation19] sm:$0xff]  ;;  %8989 = vst [vmem:[#allocation36_spill] sm:$0xff] %v8330_v24  ;;  %v8334_v29 = vld [vmem:[#allocation19 + $0x108] sm:$0xff] }
 0x3a0   : > { %v3565_v49 = vrot.slane %v2841_v48, %v7912_v45  ;;  %v2616_v62 = vpop.xlane.xlu1 %2615  ;;  %v4077_v42 = vrot.slane %v4076_v13, 1  ;;  %v4127_v26 = vrot.slane %v4126_v39, 2  ;;  %v5440_v32 = vpack.c.bf16 %v4617_v0, %v4616_v18  ;;  %8988 = vst [vmem:[#allocation35_spill] sm:$0xff] %v8328_v5  ;;  %v8348_v18 = vld [vmem:[#allocation19 + $0x110] sm:$0xff]  ;;  %v8350_v0 = vld [vmem:[#allocation19 + $0x118] sm:$0xff]  ;;  %v8352_v48 = vld [vmem:[#allocation19 + $0xa0] sm:$0xff] }
 0x3a1   : > { %v3192_v8 = vrot.slane %v2616_v62, %v8207_v46  ;;  %v4102_v57 = vadd.f32 %v4101_v23, %v4100_v60  ;;  %v4149_v33 = vadd.f32 %v4148_v31, %v3958_v36  ;;  %v4226_v27 = vsel %vm2230_vm9, %v4026_v61, %v4225_v19  ;;  %v8338_v60 = vld [vmem:[#allocation19 + $0x98] sm:$0xff]  ;;  %v8340_v36 = vld [vmem:[#allocation19 + $0x10] sm:$0xff]  ;;  %8994 = vst [vmem:[#allocation42_spill] sm:$0xff] %v8352_v48  ;;  %v8354_v23 = vld [vmem:[#allocation19 + $0xa8] sm:$0xff] }
 0x3a2   : > { %v8307_v15 = vsel %vm3158_vm1, %v3565_v49, %v8247_v37  ;;  %v4128_v59 = vadd.f32 %v4127_v26, %v4126_v39  ;;  %5441 = vmatprep.subr.bf16.mxu1 %v5440_v32  ;;  %v5472_v55 = vpack.c.bf16 %v4649_v30, %v4648_v51  ;;  %v4078_v41 = vadd.f32 %v4077_v42, %v4076_v13  ;;  %v8342_v61 = vld [vmem:[#allocation19 + $0x18] sm:$0xff]  ;;  %v8365_v42 = vld [vmem:[#allocation19 + $0x1a0] sm:$0xff]  ;;  %v8367_v26 = vld [vmem:[#allocation19 + $0x1a8] sm:$0xff] }
 0x3a3   : > { %v8312_v34 = vsel %vm3193_vm6, %v3192_v8, %v8252_v20  ;;  %v2931_v43 = vpop.xlane.xlu0 %2930  ;;  %v4103_v35 = vrot.slane %v4102_v57, 1  ;;  %v4150_v28 = vadd.f32 %v4149_v33, %v3960_v47  ;;  %v4227_v37 = vsel %vm2232_vm10, %v4052_v12, %v4226_v27  ;;  %8991 = vst [vmem:[#allocation39_spill] sm:$0xff] %v8338_v60  ;;  %8992 = vst [vmem:[#allocation41_spill] sm:$0xff] %v8340_v36  ;;  %v8346_v13 = vld [vmem:[#allocation19 + $0x198] sm:$0xff]  ;;  %v8361_v47 = vld [vmem:[#allocation19 + $0x20] sm:$0xff] }
 0x3a4   : > { %v3713_v21 = vrot.slane %v2931_v43, %v7353_v52  ;;  %v8315_v50 = vpop.xlane.xlu1 %2708  ;;  %5473 = vmatprep.subr.bf16.mxu0 %v5472_v55  ;;  %v4129_v20 = vrot.slane %v4128_v59, 1  ;;  %v3195_v52 = vadd.s32 4294967176, %v8985_v56  ;;  %v4228_v25 = vsel %vm2234_vm11, %v4078_v41, %v4227_v37  ;;  %8993 = vst [vmem:[#allocation37_spill] sm:$0xff] %v8342_v61  ;;  %v8344_v56 = vld [vmem:[#allocation19 + $0x190] sm:$0xff]  ;;  %8995 = vst [vmem:[#allocation43_spill] sm:$0xff] %v8354_v23  ;;  %v8363_v12 = vld [vmem:[#allocation19 + $0x28] sm:$0xff] }
 0x3a5   : > { %v4151_v58 = vrot.slane %v4150_v28, 4  ;;  %v4104_v6 = vadd.f32 %v4103_v35, %v4102_v57  ;;  %v3348_v31 = vrot.slane %v8315_v50, %v8017_v22  ;;  %8996 = vst [vmem:[#allocation40_spill] sm:$0xff] %v8361_v47  ;;  %8997 = vst [vmem:[#allocation33_spill] sm:$0xff] %v8363_v12  ;;  %v8369_v51 = vld [vmem:[#allocation19 + $0x120] sm:$0xff]  ;;  %v8371_v30 = vld [vmem:[#allocation19 + $0x128] sm:$0xff]  ;;  %v5474_v50 = vpack.c.bf16 %v8334_v29, %v8332_v44 }
 0x3a6   : > { %v8320_v10 = vsel %vm1953_vm7, %v3713_v21, %v8267_v63  ;;  %v8336_v63 = vld [vmem:[#allocation19 + $0x90] sm:$0xff]  ;;  %v4130_v39 = vadd.f32 %v4129_v20, %v4128_v59  ;;  %v8378_v33 = vsub.s32 %v3195_v52, %v8986_v1  ;;  %v8382_v59 = vld [vmem:[#allocation19 + $0xb8] sm:$0xff]  ;;  %v4317_v37 = vld [vmem:[%s6634_s18 + $0x28] sm:$0xff]  ;;  %vm3200_vm7 = vcmask 1048512  }
 0x3a7   : > { %v8322_v17 = vpop.xlane.xlu0 %2663  ;;  %v4152_v2 = vadd.f32 %v4151_v58, %v4150_v28  ;;  %8990 = vst [vmem:[#allocation38_spill] sm:$0xff] %v8336_v63  ;;  %v4229_v62 = vsel %vm2236_vm12, %v4104_v6, %v4228_v25  ;;  %v8380_v32 = vld [vmem:[#allocation19 + $0xb0] sm:$0xff]  ;;  %8999 = vst [vmem:[#allocation45_spill] sm:$0xff] %v8382_v59  ;;  %v8386_v43 = vld [vmem:[#allocation19 + $0x38] sm:$0xff]  ;;  %v5476_v52 = vpack.c.bf16 %v8346_v13, %v8344_v56 }
 0x3a8   : > { %v8324_v40 = vpop.xlane.xlu1 %2798  ;;  %v3274_v8 = vrot.slane %v8322_v17, %v8207_v46  ;;  %8998 = vst [vmem:[#allocation44_spill] sm:$0xff] %v8380_v32  ;;  %v8384_v27 = vld [vmem:[#allocation19 + $0x30] sm:$0xff]  ;;  %9001 = vst [vmem:[#allocation47_spill] sm:$0xff] %v8386_v43  ;;  %v8390_v28 = vld [vmem:[#allocation19 + $0x1b8] sm:$0xff]  ;;  %v4230_v6 = vsel %vm2238_vm13, %v4130_v39, %v4229_v62  ;;  %v8417_v41 = vsel %vm3186_vm5, %v3348_v31, %v8273_v14 }
 0x3a9   : > { %v4153_v38 = vrot.slane %v4152_v2, 2  ;;  %9000 = vst [vmem:[#allocation46_spill] sm:$0xff] %v8384_v27  ;;  %v8388_v35 = vld [vmem:[#allocation19 + $0x1b0] sm:$0xff]  ;;  %v4313_v58 = vld [vmem:[%s6634_s18 + $0x8] sm:$0xff]  ;;  %v3496_v17 = vrot.slane %v8324_v40, %v7993_v9  ;;  %v8410_v44 = vld [vmem:[#allocation19 + $0x138] sm:$0xff]  ;;  %v5478_v56 = vpack.c.bf16 %v8350_v0, %v8348_v18  ;;  %v5480_v31 = vpack.c.bf16 %v8367_v26, %v8365_v42 }
 0x3aa   : > { %v4321_v20 = vld [vmem:[%s6634_s18 + $0x48] sm:$0xff]  ;;  %v8408_v25 = vld [vmem:[#allocation19 + $0x130] sm:$0xff]  ;;  %v8430_v36 = vsel %vm3193_vm6, %v3274_v8, %v8281_v7  ;;  %v4383_v18 = vadd.f32 %v4317_v37, %v4313_v58  ;;  %v4320_v60 = vld [vmem:[%s6634_s18 + $0x40] sm:$0xff] }
 0x3ab   : > { %v8358_v19 = vpop.xlane.xlu0 %2753  ;;  %v4154_v49 = vadd.f32 %v4153_v38, %v4152_v2  ;;  %v4325_v29 = vld [vmem:[%s6634_s18 + $0x68] sm:$0xff]  ;;  %v8454_v26 = vsel %vm3172_vm3, %v3496_v17, %v8286_v4  ;;  %v4324_v5 = vld [vmem:[%s6634_s18 + $0x60] sm:$0xff] }
 0x3ac   : > { %v8375_v57 = vpop.xlane.xlu1 %2888  ;;  %v4329_v38 = vld [vmem:[%s6634_s18 + $0x88] sm:$0xff] }
 0x3ad   : > { %v4155_v55 = vrot.slane %v4154_v49, 1  ;;  %v4333_v40 = vld [vmem:[%s6634_s18 + $0xa8] sm:$0xff] }
 0x3ae   : > { %v4337_v2 = vld [vmem:[%s6634_s18 + $0xc8] sm:$0xff] }
 0x3af   : > { %v8419_v39 = vpop.xlane.xlu0 %2843  ;;  %v4156_v62 = vadd.f32 %v4155_v55, %v4154_v49  ;;  %v4341_v21 = vld [vmem:[%s6634_s18 + $0xe8] sm:$0xff] }
 0x3b0   : > { %v4345_v1 = vld [vmem:[%s6634_s18 + $0x108] sm:$0xff]  ;;  %v2619_v61 = vpop.xlane.xlu1 %2618  ;;  %v4467_v43 = vadd.f32 %v4341_v21, %v4337_v2  ;;  %v3422_v21 = vrot.slane %v8358_v19, %v8007_v11 }
 0x3b1   : > { %v4349_v0 = vld [vmem:[%s6634_s18 + $0x128] sm:$0xff]  ;;  %v4231_v13 = vsel %vm2240_vm14, %v4156_v62, %v4230_v6  ;;  %v4411_v6 = vadd.f32 %v4325_v29, %v4321_v20  ;;  %v4439_v62 = vadd.f32 %v4333_v40, %v4329_v38  ;;  %v4384_v29 = vrot.slane %v4383_v18, 4 }
 0x3b2   : > { %v4353_v49 = vld [vmem:[%s6634_s18 + $0x148] sm:$0xff]  ;;  %4306 = vmatmul.mubr.f32.vlgmr.msra.gmra.mrb[2].mxu0 %v4231_v13  ;;  %v4495_v32 = vadd.f32 %v4349_v0, %v4345_v1  ;;  %v3199_v1 = vrot.slane %v2619_v61, %v8378_v33  ;;  %v4468_v2 = vrot.slane %v4467_v43, 4  ;;  %v8481_v0 = vld [vmem:[#allocation19 + $0xd0] sm:$0xff] }
 0x3b3   : > { %v4357_v55 = vld [vmem:[%s6634_s18 + $0x168] sm:$0xff]  ;;  %v8456_v47 = vpop.xlane.xlu0 %2933  ;;  %5475 = vmatpush3.bf16.msra.mxu0 %v5474_v50  ;;  %v4412_v38 = vrot.slane %v4411_v6, 4  ;;  %v4440_v40 = vrot.slane %v4439_v62, 4  ;;  %9006 = vst [vmem:[#allocation52_spill] sm:$0xff] %v8481_v0 }
 0x3b4   : > { %v8448_v14 = vld [vmem:[#allocation19 + $0xc0] sm:$0xff]  ;;  %v8450_v42 = vld [vmem:[#allocation19 + $0xc8] sm:$0xff]  ;;  %v4523_v4 = vadd.f32 %v4357_v55, %v4353_v49  ;;  %v8466_v17 = vpop.xlane.xlu1 %2711  ;;  %5477 = vmatprep.subr.bf16.mxu0 %v5476_v52  ;;  %v4496_v13 = vrot.slane %v4495_v32, 4  ;;  %v8483_v49 = vld [vmem:[#allocation19 + $0xd8] sm:$0xff]  ;;  %v4385_v55 = vadd.f32 %v4384_v29, %v4383_v18  ;;  %v4469_v19 = vadd.f32 %v4468_v2, %v4467_v43 }
 0x3b5   : > { %9002 = vst [vmem:[#allocation48_spill] sm:$0xff] %v8448_v14  ;;  %9003 = vst [vmem:[#allocation49_spill] sm:$0xff] %v8450_v42  ;;  %v8460_v48 = vld [vmem:[#allocation19 + $0x40] sm:$0xff]  ;;  %v8462_v8 = vld [vmem:[#allocation19 + $0x48] sm:$0xff]  ;;  %v4413_v58 = vadd.f32 %v4412_v38, %v4411_v6  ;;  %v4441_v7 = vadd.f32 %v4440_v40, %v4439_v62  ;;  %v3201_v29 = vsel %vm3200_vm7, %v3199_v1, %v8312_v34 }
 0x3b6   : > { %9004 = vst [vmem:[#allocation50_spill] sm:$0xff] %v8460_v48  ;;  %9005 = vst [vmem:[#allocation51_spill] sm:$0xff] %v8462_v8  ;;  %v8464_v27 = vld [vmem:[#allocation19 + $0x1c0] sm:$0xff]  ;;  %v8470_v37 = vld [vmem:[#allocation19 + $0x1c8] sm:$0xff]  ;;  %v4524_v59 = vrot.slane %v4523_v4, 4  ;;  %v4386_v18 = vrot.slane %v4385_v55, 2  ;;  %v8516_v43 = vsel %vm3179_vm4, %v3422_v21, %v8293_v3 }
 0x3b7   : > { %v8472_v50 = vld [vmem:[#allocation19 + $0x140] sm:$0xff]  ;;  %v8474_v20 = vld [vmem:[#allocation19 + $0x148] sm:$0xff]  ;;  %9007 = vst [vmem:[#allocation53_spill] sm:$0xff] %v8483_v49  ;;  %v2667_v14 = vpop.xlane.xlu0 %2666  ;;  %5479 = vmatpush3.bf16.msra.mxu0 %v5478_v56  ;;  %v8492_v48 = vld [vmem:[#allocation19 + $0x1d0] sm:$0xff]  ;;  %v4414_v6 = vrot.slane %v4413_v58, 2  ;;  %v4442_v62 = vrot.slane %v4441_v7, 2  ;;  %v3644_v56 = vrot.slane %v8375_v57, %v7912_v45 }
 0x3b8   : > { %v3279_v12 = vrot.slane %v2667_v14, %v8378_v33  ;;  %v8490_v52 = vpop.xlane.xlu1 %2801  ;;  %5481 = vmatprep.subr.bf16.mxu0 %v5480_v31  ;;  %v8500_v38 = vld [vmem:[#allocation19 + $0x1d8] sm:$0xff]  ;;  %v8502_v14 = vld [vmem:[#allocation19 + $0x150] sm:$0xff]  ;;  %v4497_v31 = vadd.f32 %v4496_v13, %v4495_v32  ;;  %v8508_v61 = vld [vmem:[#allocation19 + $0x1e0] sm:$0xff]  ;;  %v4387_v34 = vadd.f32 %v4386_v18, %v4385_v55  ;;  %v4470_v8 = vrot.slane %v4469_v19, 2 }
 0x3b9   : > { %v8504_v40 = vld [vmem:[#allocation19 + $0x158] sm:$0xff]  ;;  %v8510_v42 = vld [vmem:[#allocation19 + $0x1e8] sm:$0xff]  ;;  %v8512_v57 = vld [vmem:[#allocation19 + $0x160] sm:$0xff]  ;;  %v4415_v1 = vadd.f32 %v4414_v6, %v4413_v58  ;;  %v3570_v32 = vrot.slane %v8419_v39, %v7968_v54  ;;  %v4525_v21 = vadd.f32 %v4524_v59, %v4523_v4  ;;  %v3353_v39 = vrot.slane %v8466_v17, %v8207_v46 }
 0x3ba   : > { %v3280_v2 = vsel %vm3200_vm7, %v3279_v12, %v8430_v36  ;;  %v9008_v12 = vpack.c.bf16 %v8371_v30, %v8369_v51  ;;  %v8526_v55 = vld [vmem:[#allocation19 + $0x168] sm:$0xff]  ;;  %v8528_v58 = vld [vmem:[#allocation19 + $0x1f0] sm:$0xff]  ;;  %v8530_v3 = vld [vmem:[#allocation19 + $0x1f8] sm:$0xff]  ;;  %v9009_v6 = vpack.c.bf16 %v8390_v28, %v8388_v35  ;;  %v5492_v51 = vpack.c.bf16 %v8500_v38, %v8492_v48 }
 0x3bb   : > { %v3755_v13 = vsel %vm2228_vm8, %v3280_v2, %v3201_v29  ;;  %v8521_v36 = vpop.xlane.xlu0 %2756  ;;  %v8543_v29 = vld [vmem:[#allocation19 + $0x170] sm:$0xff]  ;;  %v8545_v59 = vld [vmem:[#allocation19 + $0x178] sm:$0xff]  ;;  %v4361_v4 = vld [vmem:[%s6634_s18 + $0x188] sm:$0xff]  ;;  %v4443_v17 = vadd.f32 %v4442_v62, %v4441_v7  ;;  %v8550_v2 = vsel %vm3158_vm1, %v3644_v56, %v8298_v53  ;;  %v4471_v49 = vadd.f32 %v4470_v8, %v4469_v19 }
 0x3bc   : > { %5483 = vmatpush3.bf16.msra.mxu0 %v9008_v12  ;;  %v8534_v18 = vpop.xlane.xlu1 %2891  ;;  %9010 = vst [vmem:[#allocation54_spill] sm:$0xff] %v8543_v29  ;;  %9011 = vst [vmem:[#allocation55_spill] sm:$0xff] %v8545_v59  ;;  %v4365_v28 = vld [vmem:[%s6634_s18 + $0x1a8] sm:$0xff]  ;;  %v4388_v12 = vrot.slane %v4387_v34, 1  ;;  %v4498_v7 = vrot.slane %v4497_v31, 2  ;;  %v4312_v53 = vld [vmem:[%s6634_s18] sm:$0xff]  ;;  %v8565_v56 = vsel %vm3165_vm2, %v3570_v32, %v8307_v15  ;;  %v3718_v35 = vrot.slane %v8456_v47, %v7855_v16 }
 0x3bd   : > { %5485 = vmatprep.subr.bf16.mxu0 %v9009_v6  ;;  %v4369_v48 = vld [vmem:[%s6634_s18 + $0x1c8] sm:$0xff]  ;;  %v4416_v6 = vrot.slane %v4415_v1, 1  ;;  %v4316_v62 = vld [vmem:[%s6634_s18 + $0x20] sm:$0xff]  ;;  %v9012_v30 = vpack.c.bf16 %v8410_v44, %v8408_v25  ;;  %v4526_v19 = vrot.slane %v4525_v21, 2  ;;  %v3354_v0 = vsel %vm3193_vm6, %v3353_v39, %v8417_v41 }
 0x3be   : > { %v4373_v38 = vld [vmem:[%s6634_s18 + $0x1e8] sm:$0xff]  ;;  %v9013_v15 = vpack.c.bf16 %v8470_v37, %v8464_v27  ;;  %v4444_v32 = vrot.slane %v4443_v17, 1  ;;  %v4551_v16 = vadd.f32 %v4365_v28, %v4361_v4  ;;  %v4389_v44 = vadd.f32 %v4388_v12, %v4387_v34  ;;  %v4328_v12 = vld [vmem:[%s6634_s18 + $0x80] sm:$0xff] }
 0x3bf   : > { %v8569_v23 = vpop.xlane.xlu0 %2846  ;;  %v4579_v47 = vadd.f32 %v4373_v38, %v4369_v48  ;;  %v4376_v24 = vadd.f32 %v4316_v62, %v4312_v53  ;;  %v4472_v8 = vrot.slane %v4471_v49, 1  ;;  %v4499_v29 = vadd.f32 %v4498_v7, %v4497_v31 }
 0x3c0   : > { %5487 = vmatpush3.bf16.msra.mxu0 %v9012_v30  ;;  %v2715_v63 = vpop.xlane.xlu1 %2714  ;;  %v4417_v30 = vadd.f32 %v4416_v6, %v4415_v1  ;;  %v4552_v59 = vrot.slane %v4551_v16, 4  ;;  %v9014_v37 = vpack.c.bf16 %v8474_v20, %v8472_v50  ;;  %v4527_v4 = vadd.f32 %v4526_v19, %v4525_v21  ;;  %v4332_v6 = vld [vmem:[%s6634_s18 + $0xa0] sm:$0xff] }
 0x3c1   : > { %5489 = vmatprep.subr.bf16.mxu0 %v9013_v15  ;;  %v3358_v25 = vrot.slane %v2715_v63, %v8378_v33  ;;  %v4580_v41 = vrot.slane %v4579_v47, 4  ;;  %v4377_v28 = vrot.slane %v4376_v24, 4  ;;  %v4404_v63 = vadd.f32 %v4324_v5, %v4320_v60 }
 0x3c2   : > { %v4445_v48 = vadd.f32 %v4444_v32, %v4443_v17  ;;  %v4553_v38 = vadd.f32 %v4552_v59, %v4551_v16  ;;  %v3501_v50 = vrot.slane %v8490_v52, %v8007_v11  ;;  %v3427_v20 = vrot.slane %v8521_v36, %v8017_v22  ;;  %v4336_v16 = vld [vmem:[%s6634_s18 + $0xc0] sm:$0xff] }
 0x3c3   : > { %v3359_v39 = vsel %vm3200_vm7, %v3358_v25, %v3354_v0  ;;  %v8585_v27 = vpop.xlane.xlu0 %2936  ;;  %v4581_v0 = vadd.f32 %v4580_v41, %v4579_v47  ;;  %v4710_v60 = vsel %vm2228_vm8, %v4417_v30, %v4389_v44  ;;  %v3649_v21 = vrot.slane %v8534_v18, %v7968_v54 }
 0x3c4   : > { %5491 = vmatpush3.bf16.msra.mxu0 %v9014_v37  ;;  %v8591_v34 = vsel %vm2230_vm9, %v3359_v39, %v3755_v13  ;;  %v8593_v1 = vpop.f32.mrb[0].mxu0  ;;  %v8595_v31 = vpop.xlane.xlu1 %2804  ;;  %v4378_v13 = vadd.f32 %v4377_v28, %v4376_v24  ;;  %v4554_v59 = vrot.slane %v4553_v38, 2  ;;  %v4405_v17 = vrot.slane %v4404_v63, 4  ;;  %v4348_v37 = vld [vmem:[%s6634_s18 + $0x120] sm:$0xff] }
 0x3c5   : > { %5493 = vmatprep.subr.bf16.mxu0 %v5492_v51  ;;  %v5336_v5 = vpop.f32.mrb[1].mxu0  ;;  %v4500_v51 = vrot.slane %v4499_v29, 1  ;;  %v3575_v7 = vrot.slane %v8569_v23, %v7993_v9  ;;  %v9015_v52 = vpack.c.bf16 %v8504_v40, %v8502_v14  ;;  %v4473_v36 = vadd.f32 %v4472_v8, %v4471_v49  ;;  %v4340_v23 = vld [vmem:[%s6634_s18 + $0xe0] sm:$0xff] }
 0x3c6   : > { %v4528_v62 = vrot.slane %v4527_v4, 1  ;;  %v4432_v19 = vadd.f32 %v4332_v6, %v4328_v12  ;;  %v9016_v24 = vpack.c.bf16 %v8510_v42, %v8508_v61  ;;  %v4582_v18 = vrot.slane %v4581_v0, 2 }
 0x3c7   : > { %v2760_v53 = vpop.xlane.xlu0 %2759  ;;  %v4711_v32 = vsel %vm2230_vm9, %v4445_v48, %v4710_v60  ;;  %v4379_v47 = vrot.slane %v4378_v13, 2  ;;  %v4406_v25 = vadd.f32 %v4405_v17, %v4404_v63  ;;  %v3719_v49 = vsel %vm3151_vm0, %v3718_v35, %v8320_v10  ;;  %v4344_v35 = vld [vmem:[%s6634_s18 + $0x100] sm:$0xff] }
 0x3c8   : > { %5495 = vmatpush3.bf16.msra.mxu0 %v9015_v52  ;;  %v8611_v15 = vpop.xlane.xlu1 %2894  ;;  %v8623_v14 = vsel %vm3179_vm4, %v3501_v50, %v8454_v26  ;;  %v4555_v40 = vadd.f32 %v4554_v59, %v4553_v38  ;;  %v4433_v8 = vrot.slane %v4432_v19, 4  ;;  %v3428_v42 = vsel %vm3186_vm5, %v3427_v20, %v8516_v43  ;;  %v4356_v60 = vld [vmem:[%s6634_s18 + $0x160] sm:$0xff]  ;;  %v9020_v59 = vld [vmem:[#allocation54_spill] sm:$0xff] }
 0x3c9   : > { %5497 = vmatprep.subr.bf16.mxu0 %v9016_v24  ;;  %v3432_v61 = vrot.slane %v2760_v53, %v8207_v46  ;;  %v4501_v44 = vadd.f32 %v4500_v51, %v4499_v29  ;;  %v4407_v30 = vrot.slane %v4406_v25, 2  ;;  %v8630_v41 = vsel %vm3165_vm2, %v3649_v21, %v8550_v2  ;;  %v9019_v51 = vld [vmem:[#allocation55_spill] sm:$0xff] }
 0x3ca   : > { %v9017_v10 = vpack.c.bf16 %v8526_v55, %v8512_v57  ;;  %v4712_v26 = vsel %vm2232_vm10, %v4473_v36, %v4711_v32  ;;  %v4434_v43 = vadd.f32 %v4433_v8, %v4432_v19  ;;  %v4460_v28 = vadd.f32 %v4340_v23, %v4336_v16  ;;  %v4364_v53 = vld [vmem:[%s6634_s18 + $0x1a0] sm:$0xff] }
 0x3cb   : > { %v8632_v39 = vpop.xlane.xlu0 %2849  ;;  %v3576_v29 = vsel %vm3172_vm3, %v3575_v7, %v8565_v56  ;;  %v9018_v2 = vpack.c.bf16 %v8530_v3, %v8528_v58  ;;  %v4529_v48 = vadd.f32 %v4528_v62, %v4527_v4  ;;  %v4583_v38 = vadd.f32 %v4582_v18, %v4581_v0  ;;  %v4352_v56 = vld [vmem:[%s6634_s18 + $0x140] sm:$0xff] }
 0x3cc   : > { %5499 = vmatpush3.bf16.msra.mxu0 %v9017_v10  ;;  %v2763_v63 = vpop.xlane.xlu1 %2762  ;;  %v4380_v57 = vadd.f32 %v4379_v47, %v4378_v13  ;;  %v4556_v12 = vrot.slane %v4555_v40, 1  ;;  %v4435_v6 = vrot.slane %v4434_v43, 2  ;;  %v4461_v50 = vrot.slane %v4460_v28, 4  ;;  %v4360_v7 = vld [vmem:[%s6634_s18 + $0x180] sm:$0xff] }
 0x3cd   : > { %5501 = vmatprep.subr.bf16.mxu0 %v9018_v2  ;;  %v3437_v55 = vrot.slane %v2763_v63, %v8378_v33  ;;  %v3433_v20 = vsel %vm3193_vm6, %v3432_v61, %v3428_v42  ;;  %v4713_v5 = vsel %vm2234_vm11, %v4501_v44, %v4712_v26  ;;  %v4408_v21 = vadd.f32 %v4407_v30, %v4406_v25  ;;  %v4372_v18 = vld [vmem:[%s6634_s18 + $0x1e0] sm:$0xff] }
 0x3ce   : > { %v4488_v58 = vadd.f32 %v4348_v37, %v4344_v35  ;;  %v3723_v3 = vrot.slane %v8585_v27, %v7912_v45  ;;  %v3506_v4 = vrot.slane %v8595_v31, %v8017_v22  ;;  %v9021_v17 = vpack.c.bf16 %v9019_v51, %v9020_v59  ;;  %v4368_v31 = vld [vmem:[%s6634_s18 + $0x1c0] sm:$0xff] }
 0x3cf   : > { %v3438_v0 = vsel %vm3200_vm7, %v3437_v55, %v3433_v20  ;;  %v2940_v13 = vpop.xlane.xlu0 %2939  ;;  %v4462_v52 = vadd.f32 %v4461_v50, %v4460_v28  ;;  %v4584_v19 = vrot.slane %v4583_v38, 1  ;;  %v4381_v45 = vrot.slane %v4380_v57, 1 }
 0x3d0   : > { %5503 = vmatpush3.bf16.msra.mxu0 %v9021_v17  ;;  %v8662_v36 = vsel %vm2232_vm10, %v3438_v0, %v8591_v34  ;;  %v2853_v62 = vpop.xlane.xlu1 %2852  ;;  %v4489_v27 = vrot.slane %v4488_v58, 4  ;;  %v4557_v24 = vadd.f32 %v4556_v12, %v4555_v40  ;;  %v4436_v32 = vadd.f32 %v4435_v6, %v4434_v43  ;;  %v4315_v12 = vld [vmem:[%s6634_s18 + $0x18] sm:$0xff] }
 0x3d1   : > { %v4463_v16 = vrot.slane %v4462_v52, 2  ;;  %v4516_v23 = vadd.f32 %v4356_v60, %v4352_v56  ;;  %v4714_v47 = vsel %vm2236_vm12, %v4529_v48, %v4713_v5  ;;  %v4409_v25 = vrot.slane %v4408_v21, 1  ;;  %v4319_v6 = vld [vmem:[%s6634_s18 + $0x38] sm:$0xff] }
 0x3d2   : > { %v4490_v8 = vadd.f32 %v4489_v27, %v4488_v58  ;;  %v4544_v42 = vadd.f32 %v4364_v53, %v4360_v7  ;;  %v3724_v61 = vsel %vm3158_vm1, %v3723_v3, %v3719_v49  ;;  %v3654_v34 = vrot.slane %v8611_v15, %v7993_v9  ;;  %v4323_v3 = vld [vmem:[%s6634_s18 + $0x58] sm:$0xff] }
 0x3d3   : > { %v3580_v44 = vrot.slane %v8632_v39, %v8007_v11  ;;  %v2808_v40 = vpop.xlane.xlu0 %2807  ;;  %v4517_v30 = vrot.slane %v4516_v23, 4  ;;  %v3728_v10 = vrot.slane %v2940_v13, %v7968_v54  ;;  %v4585_v35 = vadd.f32 %v4584_v19, %v4583_v38 }
 0x3d4   : > { %v2943_v26 = vpop.xlane.xlu1 %2942  ;;  %v4382_v37 = vadd.f32 %v4381_v45, %v4380_v57  ;;  %v4572_v43 = vadd.f32 %v4372_v18, %v4368_v31  ;;  %v3585_v28 = vrot.slane %v2853_v62, %v8017_v22  ;;  %v4715_v49 = vsel %vm2238_vm13, %v4557_v24, %v4714_v47  ;;  %v4335_v62 = vld [vmem:[%s6634_s18 + $0xb8] sm:$0xff] }
 0x3d5   : > { %v4437_v63 = vrot.slane %v4436_v32, 1  ;;  %v4464_v2 = vadd.f32 %v4463_v16, %v4462_v52  ;;  %v3511_v15 = vrot.slane %v2808_v40, %v8207_v46  ;;  %v4410_v39 = vadd.f32 %v4409_v25, %v4408_v21  ;;  %v4331_v52 = vld [vmem:[%s6634_s18 + $0x98] sm:$0xff] }
 0x3d6   : > { %v4491_v48 = vrot.slane %v4490_v8, 2  ;;  %v4545_v55 = vrot.slane %v4544_v42, 4  ;;  %v3507_v54 = vsel %vm3186_vm5, %v3506_v4, %v8623_v14  ;;  %v3655_v38 = vsel %vm3172_vm3, %v3654_v34, %v8630_v41  ;;  %v4327_v14 = vld [vmem:[%s6634_s18 + $0x78] sm:$0xff] }
 0x3d7   : > { %v3581_v57 = vsel %vm3179_vm4, %v3580_v44, %v3576_v29  ;;  %v2898_v50 = vpop.xlane.xlu0 %2897  ;;  %v4518_v20 = vadd.f32 %v4517_v30, %v4516_v23  ;;  %v3729_v5 = vsel %vm3165_vm2, %v3728_v10, %v3724_v61  ;;  %v3733_v56 = vrot.slane %v2943_v26, %v7993_v9  ;;  %v4339_v34 = vld [vmem:[%s6634_s18 + $0xd8] sm:$0xff] }
 0x3d8   : > { %v2856_v60 = vpop.xlane.xlu1 %2855  ;;  %v8686_v21 = vsel %vm2240_vm14, %v4585_v35, %v4715_v49  ;;  %v4573_v58 = vrot.slane %v4572_v43, 4  ;;  %v3586_v4 = vsel %vm3186_vm5, %v3585_v28, %v3581_v57  ;;  %v4438_v41 = vadd.f32 %v4437_v63, %v4436_v32  ;;  %v4343_v44 = vld [vmem:[%s6634_s18 + $0xf8] sm:$0xff] }
 0x3d9   : > { %v4465_v0 = vrot.slane %v4464_v2, 1  ;;  %v4397_v29 = vadd.f32 %v4319_v6, %v4315_v12  ;;  %v3512_v13 = vsel %vm3193_vm6, %v3511_v15, %v3507_v54  ;;  %v8692_v51 = vadd.f32 %v4491_v48, %v4490_v8  ;;  %v4347_v35 = vld [vmem:[%s6634_s18 + $0x118] sm:$0xff] }
 0x3da   : > { %v8694_v59 = vadd.f32 %v4545_v55, %v4544_v42  ;;  %v4703_v9 = vsel %vm2228_vm8, %v4410_v39, %v4382_v37  ;;  %v3659_v17 = vrot.slane %v2898_v50, %v8007_v11  ;;  %v4519_v53 = vrot.slane %v4518_v20, 2  ;;  %v4351_v37 = vld [vmem:[%s6634_s18 + $0x138] sm:$0xff] }
 0x3db   : > { %v2811_v7 = vpop.xlane.xlu0 %2810  ;;  %v4398_v19 = vrot.slane %v4397_v29, 4  ;;  %v4425_v45 = vadd.f32 %v4327_v14, %v4323_v3  ;;  %v3734_v27 = vsel %vm3172_vm3, %v3733_v56, %v3729_v5  ;;  %v3590_v24 = vrot.slane %v2856_v60, %v8207_v46  ;;  %v4359_v15 = vld [vmem:[%s6634_s18 + $0x178] sm:$0xff] }
 0x3dc   : > { %v3516_v31 = vrot.slane %v2811_v7, %v8378_v33  ;;  %v2946_v18 = vpop.xlane.xlu1 %2945  ;;  %v8703_v32 = vadd.f32 %v4573_v58, %v4572_v43  ;;  %v8706_v23 = vadd.f32 %v4465_v0, %v4464_v2  ;;  %v4493_v42 = vrot.slane %v8692_v51, 1  ;;  %v4355_v2 = vld [vmem:[%s6634_s18 + $0x158] sm:$0xff] }
 0x3dd   : > { %v3738_v16 = vrot.slane %v2946_v18, %v8007_v11  ;;  %v4399_v47 = vadd.f32 %v4398_v19, %v4397_v29  ;;  %v4426_v25 = vrot.slane %v4425_v45, 4  ;;  %v8711_v61 = vsel %vm2230_vm9, %v4438_v41, %v4703_v9  ;;  %v4371_v18 = vld [vmem:[%s6634_s18 + $0x1d8] sm:$0xff] }
 0x3de   : > { %v3517_v8 = vsel %vm3200_vm7, %v3516_v31, %v3512_v13  ;;  %v4453_v40 = vadd.f32 %v4335_v62, %v4331_v52  ;;  %v3660_v30 = vsel %vm3179_vm4, %v3659_v17, %v3655_v38  ;;  %v8718_v26 = vadd.f32 %v4519_v53, %v4518_v20  ;;  %v4363_v53 = vld [vmem:[%s6634_s18 + $0x198] sm:$0xff] }
 0x3df   : > { %v3758_v11 = vsel %vm2234_vm11, %v3517_v8, %v8662_v36  ;;  %v2901_v10 = vpop.xlane.xlu0 %2900  ;;  %v4400_v43 = vrot.slane %v4399_v47, 2  ;;  %v3591_v28 = vsel %vm3193_vm6, %v3590_v24, %v3586_v4  ;;  %v4427_v39 = vadd.f32 %v4426_v25, %v4425_v45  ;;  %v4367_v31 = vld [vmem:[%s6634_s18 + $0x1b8] sm:$0xff] }
 0x3e0   : > { %v3664_v49 = vrot.slane %v2901_v10, %v8017_v22  ;;  %v2904_v63 = vpop.xlane.xlu1 %2903  ;;  %v4454_v48 = vrot.slane %v4453_v40, 4  ;;  %v3739_v55 = vsel %vm3179_vm4, %v3738_v16, %v3734_v27  ;;  %v4481_v6 = vadd.f32 %v4343_v44, %v4339_v34  ;;  %v4375_v16 = vld [vmem:[%s6634_s18 + $0x1f8] sm:$0xff] }
 0x3e1   : > { %v3669_v12 = vrot.slane %v2904_v63, %v8207_v46  ;;  %v4401_v36 = vadd.f32 %v4400_v43, %v4399_v47  ;;  %v4428_v38 = vrot.slane %v4427_v39, 2  ;;  %v4509_v50 = vadd.f32 %v4351_v37, %v4347_v35 }
 0x3e2   : > { %v3665_v54 = vsel %vm3186_vm5, %v3664_v49, %v3660_v30  ;;  %v4455_v57 = vadd.f32 %v4454_v48, %v4453_v40  ;;  %v4482_v60 = vrot.slane %v4481_v6, 4  ;;  %v4537_v58 = vadd.f32 %v4359_v15, %v4355_v2  ;;  %v4314_v2 = vld [vmem:[%s6634_s18 + $0x10] sm:$0xff] }
 0x3e3   : > { %v3670_v20 = vsel %vm3193_vm6, %v3669_v12, %v3665_v54  ;;  %v2859_v5 = vpop.xlane.xlu0 %2858  ;;  %v4402_v56 = vrot.slane %v4401_v36, 1  ;;  %v4429_v4 = vadd.f32 %v4428_v38, %v4427_v39  ;;  %v4510_v0 = vrot.slane %v4509_v50, 4 }
 0x3e4   : > { %v3595_v3 = vrot.slane %v2859_v5, %v8378_v33  ;;  %v2907_v14 = vpop.xlane.xlu1 %2906  ;;  %v4456_v41 = vrot.slane %v4455_v57, 2  ;;  %v4483_v9 = vadd.f32 %v4482_v60, %v4481_v6  ;;  %v4538_v17 = vrot.slane %v4537_v58, 4  ;;  %v4326_v6 = vld [vmem:[%s6634_s18 + $0x70] sm:$0xff] }
 0x3e5   : > { %v3674_v29 = vrot.slane %v2907_v14, %v8378_v33  ;;  %v4403_v13 = vadd.f32 %v4402_v56, %v4401_v36  ;;  %v4430_v52 = vrot.slane %v4429_v4, 1  ;;  %v4511_v19 = vadd.f32 %v4510_v0, %v4509_v50  ;;  %v4330_v56 = vld [vmem:[%s6634_s18 + $0x90] sm:$0xff] }
 0x3e6   : > { %v3596_v7 = vsel %vm3200_vm7, %v3595_v3, %v3591_v28  ;;  %v4457_v62 = vadd.f32 %v4456_v41, %v4455_v57  ;;  %v4484_v47 = vrot.slane %v4483_v9, 2  ;;  %v4539_v25 = vadd.f32 %v4538_v17, %v4537_v58  ;;  %v4338_v41 = vld [vmem:[%s6634_s18 + $0xd0] sm:$0xff] }
 0x3e7   : > { %v3675_v45 = vsel %vm3200_vm7, %v3674_v29, %v3670_v20  ;;  %v2949_v27 = vpop.xlane.xlu0 %2948  ;;  %v3759_v24 = vsel %vm2236_vm12, %v3596_v7, %v3758_v11  ;;  %v4431_v40 = vadd.f32 %v4430_v52, %v4429_v4  ;;  %v4512_v11 = vrot.slane %v4511_v19, 2  ;;  %v4334_v4 = vld [vmem:[%s6634_s18 + $0xb0] sm:$0xff] }
 0x3e8   : > { %v3743_v8 = vrot.slane %v2949_v27, %v8017_v22  ;;  %v2955_v34 = vpop.xlane.xlu1 %2954  ;;  %v3760_v44 = vsel %vm2238_vm13, %v3675_v45, %v3759_v24  ;;  %v4458_v30 = vrot.slane %v4457_v62, 1  ;;  %v4485_v35 = vadd.f32 %v4484_v47, %v4483_v9  ;;  %v4318_v22 = vld [vmem:[%s6634_s18 + $0x30] sm:$0xff] }
 0x3e9   : > { %v3753_v10 = vrot.slane %v2955_v34, %v8378_v33  ;;  %v4540_v37 = vrot.slane %v4539_v25, 2  ;;  %v4565_v49 = vadd.f32 %v4367_v31, %v4363_v53  ;;  %v4593_v63 = vadd.f32 %v4375_v16, %v4371_v18  ;;  %v4322_v33 = vld [vmem:[%s6634_s18 + $0x50] sm:$0xff] }
 0x3ea   : > { %v3744_v43 = vsel %vm3186_vm5, %v3743_v8, %v3739_v55  ;;  %v4459_v28 = vadd.f32 %v4458_v30, %v4457_v62  ;;  %v4486_v39 = vrot.slane %v4485_v35, 1  ;;  %v4513_v48 = vadd.f32 %v4512_v11, %v4511_v19  ;;  %v4346_v62 = vld [vmem:[%s6634_s18 + $0x110] sm:$0xff]  ;;  %v9023_v8 = vld [vmem:[#allocation35_spill] sm:$0xff] }
 0x3eb   : > { %v2952_v15 = vpop.xlane.xlu0 %2951  ;;  %v4541_v12 = vadd.f32 %v4540_v37, %v4539_v25  ;;  %v4724_v36 = vsel %vm2228_vm8, %v4431_v40, %v4403_v13  ;;  %v4566_v55 = vrot.slane %v4565_v49, 4  ;;  %v4594_v38 = vrot.slane %v4593_v63, 4  ;;  %v4350_v27 = vld [vmem:[%s6634_s18 + $0x130] sm:$0xff]  ;;  %v9022_v25 = vld [vmem:[#allocation36_spill] sm:$0xff] }
 0x3ec   : > { %v3748_v54 = vrot.slane %v2952_v15, %v8207_v46  ;;  %v4725_v57 = vsel %vm2230_vm9, %v4459_v28, %v4724_v36  ;;  %v4487_v50 = vadd.f32 %v4486_v39, %v4485_v35  ;;  %v4514_v20 = vrot.slane %v4513_v48, 1  ;;  %v4342_v46 = vld [vmem:[%s6634_s18 + $0xf0] sm:$0xff]  ;;  %v9025_v35 = vld [vmem:[#allocation39_spill] sm:$0xff] }
 0x3ed   : > { %v4542_v5 = vrot.slane %v4541_v12, 1  ;;  %v4390_v60 = vadd.f32 %v4318_v22, %v4314_v2  ;;  %v4567_v3 = vadd.f32 %v4566_v55, %v4565_v49  ;;  %v4595_v14 = vadd.f32 %v4594_v38, %v4593_v63  ;;  %v4354_v24 = vld [vmem:[%s6634_s18 + $0x150] sm:$0xff] }
 0x3ee   : > { %v3749_v58 = vsel %vm3193_vm6, %v3748_v54, %v3744_v43  ;;  %v4418_v0 = vadd.f32 %v4326_v6, %v4322_v33  ;;  %v4515_v13 = vadd.f32 %v4514_v20, %v4513_v48  ;;  %v4726_v17 = vsel %vm2232_vm10, %v4487_v50, %v4725_v57  ;;  %v4358_v31 = vld [vmem:[%s6634_s18 + $0x170] sm:$0xff] }
 0x3ef   : > { %v3754_v29 = vsel %vm3200_vm7, %v3753_v10, %v3749_v58  ;;  %v4543_v9 = vadd.f32 %v4542_v5, %v4541_v12  ;;  %v4568_v53 = vrot.slane %v4567_v3, 2  ;;  %v4596_v52 = vrot.slane %v4595_v14, 2  ;;  %v9026_v11 = vld [vmem:[#allocation38_spill] sm:$0xff]  ;;  %v9028_v54 = vld [vmem:[#allocation37_spill] sm:$0xff] }
 0x3f0   : > { %v3761_v7 = vsel %vm2240_vm14, %v3754_v29, %v3760_v44  ;;  %v4391_v19 = vrot.slane %v4390_v60, 4  ;;  %v4727_v45 = vsel %vm2234_vm11, %v4515_v13, %v4726_v17  ;;  %v4419_v18 = vrot.slane %v4418_v0, 4  ;;  %v4362_v48 = vld [vmem:[%s6634_s18 + $0x190] sm:$0xff] }
 0x3f1   : > { %5370 = vmatmul.mubr.f32.vlgmr.msra.gmra.mrb[0].mxu1 %v3761_v7  ;;  %v4446_v16 = vadd.f32 %v4334_v4, %v4330_v56  ;;  %v4474_v47 = vadd.f32 %v4342_v46, %v4338_v41  ;;  %v9024_v34 = vpack.c.bf16 %v9022_v25, %v9023_v8  ;;  %v4547_v44 = vrot.slane %v8694_v59, 2  ;;  %v9029_v55 = vld [vmem:[#allocation41_spill] sm:$0xff]  ;;  %v9031_v56 = vld [vmem:[#allocation43_spill] sm:$0xff]  ;;  %v9038_v25 = vld [vmem:[#allocation44_spill] sm:$0xff] }
 0x3f2   : > { %4799 = vmatprep.mubr.f32.mxu1 %v8686_v21  ;;  %v4569_v40 = vadd.f32 %v4568_v53, %v4567_v3  ;;  %v4597_v30 = vadd.f32 %v4596_v52, %v4595_v14  ;;  %v4728_v10 = vsel %vm2236_vm12, %v4543_v9, %v4727_v45  ;;  %v9027_v37 = vpack.c.bf16 %v9025_v35, %v9026_v11  ;;  %v4366_v21 = vld [vmem:[%s6634_s18 + $0x1b0] sm:$0xff]  ;;  %v9035_v45 = vld [vmem:[#allocation40_spill] sm:$0xff] }
 0x3f3   : > { %5443 = vmatpush3.bf16.msra.mxu1 %v9024_v34  ;;  %v4392_v43 = vadd.f32 %v4391_v19, %v4390_v60  ;;  %v4420_v28 = vadd.f32 %v4419_v18, %v4418_v0  ;;  %v4447_v49 = vrot.slane %v4446_v16, 4  ;;  %v4475_v63 = vrot.slane %v4474_v47, 4  ;;  %v9032_v60 = vld [vmem:[#allocation42_spill] sm:$0xff]  ;;  %v9034_v19 = vld [vmem:[#allocation33_spill] sm:$0xff] }
 0x3f4   : > { %5445 = vmatprep.subr.bf16.mxu1 %v9027_v37  ;;  %v4570_v2 = vrot.slane %v4569_v40, 1  ;;  %v4598_v22 = vrot.slane %v4597_v30, 1  ;;  %v4502_v15 = vadd.f32 %v4350_v27, %v4346_v62  ;;  %v4530_v39 = vadd.f32 %v4358_v31, %v4354_v24  ;;  %v4370_v0 = vld [vmem:[%s6634_s18 + $0x1d0] sm:$0xff] }
 0x3f5   : > { %v4393_v12 = vrot.slane %v4392_v43, 2  ;;  %v4421_v36 = vrot.slane %v4420_v28, 2  ;;  %v4448_v33 = vadd.f32 %v4447_v49, %v4446_v16  ;;  %v4476_v6 = vadd.f32 %v4475_v63, %v4474_v47  ;;  %v4374_v29 = vld [vmem:[%s6634_s18 + $0x1f0] sm:$0xff] }
 0x3f6   : > { %v9030_v38 = vpack.c.bf16 %v9028_v54, %v9029_v55  ;;  %v4571_v57 = vadd.f32 %v4570_v2, %v4569_v40  ;;  %v4599_v50 = vadd.f32 %v4598_v22, %v4597_v30  ;;  %v4503_v20 = vrot.slane %v4502_v15, 4  ;;  %v9037_v47 = vld [vmem:[#allocation45_spill] sm:$0xff]  ;;  %v9040_v22 = vld [vmem:[#allocation47_spill] sm:$0xff]  ;;  %v9044_v55 = vld [vmem:[#allocation48_spill] sm:$0xff] }
 0x3f7   : > { %v4531_v5 = vrot.slane %v4530_v39, 4  ;;  %v9033_v58 = vpack.c.bf16 %v9031_v56, %v9032_v60  ;;  %v4394_v3 = vadd.f32 %v4393_v12, %v4392_v43  ;;  %v4422_v14 = vadd.f32 %v4421_v36, %v4420_v28  ;;  %v9043_v54 = vld [vmem:[#allocation49_spill] sm:$0xff] }
 0x3f8   : > { %5447 = vmatpush3.bf16.msra.mxu1 %v9030_v38  ;;  %v4449_v4 = vrot.slane %v4448_v33, 2  ;;  %v4477_v41 = vrot.slane %v4476_v6, 2  ;;  %v4729_v46 = vsel %vm2238_vm13, %v4571_v57, %v4728_v10  ;;  %v4504_v13 = vadd.f32 %v4503_v20, %v4502_v15  ;;  %v9041_v15 = vld [vmem:[#allocation46_spill] sm:$0xff]  ;;  %v4628_v56 = vld [vmem:[#allocation19 + $0xe0] sm:$0xff] }
 0x3f9   : > { %5449 = vmatprep.subr.bf16.mxu1 %v9033_v58  ;;  %v4532_v9 = vadd.f32 %v4531_v5, %v4530_v39  ;;  %v4558_v17 = vadd.f32 %v4366_v21, %v4362_v48  ;;  %v4730_v7 = vsel %vm2240_vm14, %v4599_v50, %v4729_v46  ;;  %v4395_v53 = vrot.slane %v4394_v3, 1  ;;  %v4610_v48 = vld [vmem:[#allocation19 + $0x50] sm:$0xff]  ;;  %v4611_v21 = vld [vmem:[#allocation19 + $0x58] sm:$0xff]  ;;  %v4629_v60 = vld [vmem:[#allocation19 + $0xe8] sm:$0xff] }
 0x3fa   : > { %v4423_v52 = vrot.slane %v4422_v14, 1  ;;  %v4450_v62 = vadd.f32 %v4449_v4, %v4448_v33  ;;  %v9036_v27 = vpack.c.bf16 %v9034_v19, %v9035_v45  ;;  %4869 = vmatprep.mubr.f32.mxu0 %v4730_v7  ;;  %v4478_v24 = vadd.f32 %v4477_v41, %v4476_v6 }
 0x3fb   : > { %v4505_v31 = vrot.slane %v4504_v13, 2  ;;  %v4533_v18 = vrot.slane %v4532_v9, 2  ;;  %v4559_v16 = vrot.slane %v4558_v17, 4  ;;  %v9039_v8 = vpack.c.bf16 %v9037_v47, %v9038_v25 }
 0x3fc   : > { %5451 = vmatpush3.bf16.msra.mxu1 %v9036_v27  ;;  %v4396_v34 = vadd.f32 %v4395_v53, %v4394_v3  ;;  %v4424_v40 = vadd.f32 %v4423_v52, %v4422_v14  ;;  %v4451_v30 = vrot.slane %v4450_v62, 1  ;;  %v4586_v10 = vadd.f32 %v4374_v29, %v4370_v0  ;;  %v9046_v29 = vld [vmem:[#allocation51_spill] sm:$0xff]  ;;  %v9049_v53 = vld [vmem:[#allocation53_spill] sm:$0xff]  ;;  %v9050_v52 = vld [vmem:[#allocation52_spill] sm:$0xff] }
 0x3fd   : > { %5453 = vmatprep.subr.bf16.mxu1 %v9039_v8  ;;  %v4479_v35 = vrot.slane %v4478_v24, 1  ;;  %v4506_v11 = vadd.f32 %v4505_v31, %v4504_v13  ;;  %v4534_v37 = vadd.f32 %v4533_v18, %v4532_v9  ;;  %v4560_v43 = vadd.f32 %v4559_v16, %v4558_v17  ;;  %v9047_v13 = vld [vmem:[#allocation50_spill] sm:$0xff] }
 0x3fe   : > { %v4575_v28 = vrot.slane %v8703_v32, 2  ;;  %v4452_v49 = vadd.f32 %v4451_v30, %v4450_v62  ;;  %v4587_v63 = vrot.slane %v4586_v10, 4  ;;  %v4717_v2 = vsel %vm2228_vm8, %v4424_v40, %v4396_v34  ;;  %v4630_v31 = vld [vmem:[#allocation19 + $0xf0] sm:$0xff]  ;;  %v4615_v30 = vld [vmem:[#allocation19 + $0x78] sm:$0xff] }
 0x3ff   : > { %v9042_v39 = vpack.c.bf16 %v9040_v22, %v9041_v15  ;;  %v4480_v12 = vadd.f32 %v4479_v35, %v4478_v24  ;;  %v4507_v36 = vrot.slane %v4506_v11, 1  ;;  %v4535_v33 = vrot.slane %v4534_v37, 1  ;;  %v4614_v40 = vld [vmem:[#allocation19 + $0x70] sm:$0xff]  ;;  %v5171_v15 = vld [vmem:[#allocation11] ss:$0 sm:$0xff] }
 0x400   : > { %v4561_v6 = vrot.slane %v4560_v43, 2  ;;  %v9045_v38 = vpack.c.bf16 %v9043_v54, %v9044_v55  ;;  %v4521_v57 = vrot.slane %v8718_v26, 1  ;;  %v4548_v50 = vadd.f32 %v4547_v44, %v8694_v59  ;;  %v5173_v55 = vld [vmem:[#allocation14] ss:$0 sm:$0xff] }
 0x401   : > { %5455 = vmatpush3.bf16.msra.mxu1 %v9042_v39  ;;  %v4588_v20 = vadd.f32 %v4587_v63, %v4586_v10  ;;  %v4718_v5 = vsel %vm2230_vm9, %v4452_v49, %v4717_v2  ;;  %v4508_v58 = vadd.f32 %v4507_v36, %v4506_v11  ;;  %v4536_v3 = vadd.f32 %v4535_v33, %v4534_v37  ;;  %v5174_v39 = vld [vmem:[#allocation17] ss:$0 sm:$0xff]  ;;  %v4876_v36 = vld [vmem:[#allocation22] sm:$0xf] }
 0x402   : > { %5457 = vmatprep.subr.bf16.mxu1 %v9045_v38  ;;  %v4562_v14 = vadd.f32 %v4561_v6, %v4560_v43  ;;  %v4719_v4 = vsel %vm2232_vm10, %v4480_v12, %v4718_v5  ;;  %v5462_v41 = vpack.c.bf16 %v4611_v21, %v4610_v48  ;;  %v4494_v46 = vadd.f32 %v4493_v42, %v8692_v51  ;;  %v4612_v51 = vld [vmem:[#allocation19 + $0x60] sm:$0xff]  ;;  %v4613_v42 = vld [vmem:[#allocation19 + $0x68] sm:$0xff] }
 0x403   : > { %v4589_v0 = vrot.slane %v4588_v20, 2  ;;  %v9048_v9 = vpack.c.bf16 %v9046_v29, %v9047_v13  ;;  %v4576_v59 = vadd.f32 %v4575_v28, %v8703_v32  ;;  %v4705_v44 = vsel %vm2232_vm10, %v8706_v23, %v8711_v61  ;;  %v4631_v32 = vld [vmem:[#allocation19 + $0xf8] sm:$0xff]  ;;  %v9052_v21 = vld [vmem:[#allocation34_spill] sm:$0xff] }
 0x404   : > { %v4563_v17 = vrot.slane %v4562_v14, 1  ;;  %v4720_v7 = vsel %vm2234_vm11, %v4508_v58, %v4719_v4  ;;  %v9051_v62 = vpack.c.bf16 %v9049_v53, %v9050_v52  ;;  %v5464_v19 = vpack.c.bf16 %v4629_v60, %v4628_v56 }
 0x405   : > { %5459 = vmatpush3.bf16.msra.mxu1 %v9048_v9  ;;  %v4549_v45 = vrot.slane %v4548_v50, 1  ;;  %v4590_v27 = vadd.f32 %v4589_v0, %v4588_v20  ;;  %v4721_v24 = vsel %vm2236_vm12, %v4536_v3, %v4720_v7  ;;  %v4522_v18 = vadd.f32 %v4521_v57, %v8718_v26 }
 0x406   : > { %5461 = vmatprep.subr.bf16.mxu1 %v9051_v62  ;;  %v4564_v16 = vadd.f32 %v4563_v17, %v4562_v14  ;;  %v4706_v23 = vsel %vm2234_vm11, %v4494_v46, %v4705_v44  ;;  %v5466_v47 = vpack.c.bf16 %v4613_v42, %v4612_v51  ;;  %v4577_v25 = vrot.slane %v4576_v59, 1 }
 0x407   : > { %v4591_v61 = vrot.slane %v4590_v27, 1  ;;  %v5468_v34 = vpack.c.bf16 %v4631_v32, %v4630_v31  ;;  %v4550_v10 = vadd.f32 %v4549_v45, %v4548_v50  ;;  %v4707_v11 = vsel %vm2236_vm12, %v4522_v18, %v4706_v23  ;;  %v5176_v45 = vld [vmem:[#allocation2] ss:$0 sm:$0xff] }
 0x408   : > { %v4722_v8 = vsel %vm2238_vm13, %v4564_v16, %v4721_v24  ;;  %v5470_v26 = vpack.c.bf16 %v4615_v30, %v4614_v40  ;;  %v4578_v43 = vadd.f32 %v4577_v25, %v4576_v59  ;;  %v2312_v48 = vadd.f32 %v5171_v15, %v8593_v1  ;;  %v5175_v59 = vld [vmem:[#allocation20] ss:$0 sm:$0xff] }
 0x409   : > { %5463 = vmatpush3.bf16.msra.mxu1 %v5462_v41  ;;  %v4592_v35 = vadd.f32 %v4591_v61, %v4590_v27  ;;  %v4708_v28 = vsel %vm2238_vm13, %v4550_v10, %v4707_v11  ;;  %v4879_v12 = vsub.s32 0, %v9052_v21  ;;  %v4884_v33 = vsub.s32 1, %v9052_v21 }
 0x40a   : > { %5465 = vmatprep.subr.bf16.mxu1 %v5464_v19  ;;  %v4709_v49 = vsel %vm2240_vm14, %v4578_v43, %v4708_v28  ;;  %v4890_v54 = vsub.s32 2, %v9052_v21  ;;  %v2315_v38 = vmax.f32 %v2312_v48, 0.0  ;;  %v4896_v7 = vsub.s32 3, %v9052_v21 }
 0x40b   : > { %v4723_v37 = vsel %vm2240_vm14, %v4592_v35, %v4722_v8  ;;  %v4880_v57 = vrot.slane %v4876_v36, %v4879_v12  ;;  %v4885_v5 = vrot.slane %v4876_v36, %v4884_v33  ;;  %vm4910_vm8 = vcmask 7168  }
 0x40c   : > { %4870 = vmatmul.mubr.f32.vlgmr.msra.gmra.mrb[4].mxu0 %v4723_v37  ;;  %v4891_v60 = vrot.slane %v4876_v36, %v4890_v54  ;;  %v4897_v62 = vrot.slane %v4876_v36, %v4896_v7 }
 0x40d   : > { %5467 = vmatpush3.bf16.msra.mxu1 %v5466_v47  ;;  %v4881_v14 = vmul.f32 %v4880_v57, %v2315_v38 }
 0x40e   : > { %5469 = vmatprep.subr.bf16.mxu1 %v5468_v34 }
 0x411   : > { %5471 = vmatpush3.bf16.msra.mxu1 %v5470_v26 }
 0x414   : > { %4800 = vmatmul.mubr.f32.vlgmr.msra.gmra.mrb[2].mxu1 %v4709_v49 }
 0x485   : > { %v5245_v63 = vpop.f32.mrb[2].mxu0 }
 0x486   : > { %v5246_v2 = vpop.f32.mrb[3].mxu0 }
 0x487   : > { %v5247_v22 = vadd.f32 %v5246_v2, %v5245_v63 }
 0x489   : > { %v4308_v6 = vadd.f32 %v5247_v22, %v5174_v39 }
 0x48b   : > { %v4311_v56 = vmax.f32 %v4308_v6, 0.0 }
 0x48d   : > { %v4892_v4 = vmul.f32 %v4891_v60, %v4311_v56 }
 0x4c4   : > { %v3829_v50 = vpop.f32.mrb[0].mxu1 }
 0x4c5   : > { %v3830_v20 = vadd.f32 %v5173_v55, %v3829_v50  ;;  %v5371_v58 = vpop.f32.mrb[1].mxu1 }
 0x4c7   : > { %v3833_v3 = vmax.f32 %v3830_v20, 0.0 }
 0x4c9   : > { %v4886_v1 = vmul.f32 %v4885_v5, %v3833_v3 }
 0x4cb   : > { %v4887_v41 = vadd.f32 %v4886_v1, %v4881_v14 }
 0x4cd   : > { %v4893_v46 = vadd.f32 %v4892_v4, %v4887_v41 }
 0x4df   : > { %v5315_v0 = vpop.f32.mrb[4].mxu0 }
 0x4e0   : > { %v5316_v29 = vpop.f32.mrb[5].mxu0 }
 0x4e1   : > { %v5317_v13 = vadd.f32 %v5316_v29, %v5315_v0 }
 0x4e7   : > { %v5280_v9 = vpop.f32.mrb[2].mxu1 }
 0x4e8   : > { %v5281_v44 = vpop.f32.mrb[3].mxu1 }
 0x4e9   : > { %v5282_v17 = vadd.f32 %v5281_v44, %v5280_v9 }
 0x4eb   : > { %v4802_v53 = vadd.f32 %v5282_v17, %v5175_v59 }
 0x4ed   : > { %v4872_v52 = vadd.f32 %v5317_v13, %v4802_v53 }
 0x4ef   : > { %v4875_v19 = vmax.f32 %v4872_v52, 0.0 }
 0x4f1   : > { %v4898_v51 = vmul.f32 %v4897_v62, %v4875_v19 }
 0x4f3   : > { %v4899_v42 = vadd.f32 %v4898_v51, %v4893_v46 }
 0x4f5   : > { %4900 = vadd.xlane.f32.xlu0 %v4899_v42 }
 0x582   : > { %v4901_v27 = vpop.xlane.xlu0 %4900 }
 0x583   : > { %v4909_v24 = vadd.f32 %v5176_v45, %v4901_v27 }
 0x585   : > { %4911 = vst.msk [vmem:[%s732_s5] sm:$0xff] %vm4910_vm8, %v4909_v24 }
 0x586 PF: > { %s9054_s28 = sld [smem:[#allocation32_spill]]  ;;  %p36_p1 = scmp.ge.s32.totalorder %s6359_s30, 4  }
 0x587   : > { %s9055_s15 = smov %s6086_s16  ;;  %s9056_s16 = smov %s6090_s17 }
 0x588   : > { %s9058_s18 = smov %s6359_s30  ;;  %38 = sbr.rel (!%p36_p1) target bundleno = 22 (0x16), region = 189 }
 0x58c   : > { %s9057_s17 = smov %s9054_s28 }
 0x58f   :  { %4931 = vsyncpa [#allocation4], 1 }
 0x590   :  { %4933 = vsyncpa [#allocation4 + $0x1], 1 }
 0x591   :  { %4934 = vsyncpa [#allocation6], 1 }
 0x592   :  { %4936 = vsyncpa [#allocation6 + $0x1], 1 }
 0x593   :  { %4937 = vsyncpa [#allocation9], 1 }
 0x594   :  { %4939 = vsyncpa [#allocation9 + $0x1], 1 }
 0x595   :  { %4940 = vsyncpa [#allocation12], 1 }
 0x596   :  { %4941 = vsyncpa [#allocation15], 1 }
 0x597   :  { %4942 = vsyncpa [#allocation18], 1 }
 0x598   :  { %4943 = vsyncpa [#allocation21], 1 }

</bundles_post_ra>
